<compile_context>
chip_gen: v5e
topology: v5e:2x2
jax: 0.10.0
libtpu: 0.0.40
codegen_flags: <defaults>
</compile_context>

<pallas_src>
import jax
import jax.numpy as jnp
from jax.experimental import pallas as pl
from jax.experimental.pallas import tpu as pltpu

# ----------------------------- configuration -------------------------------
BATCH = 2
C_IN = 16        # decoder input channels (content latent dim)
C_COND = 32      # condition (speaker embedding) dim
C_H = 32         # hidden channels
C_OUT = 4        # output channels (mel bins)
KERNEL = 5
N_CONV = 2
UPSAMPLE = (2, 1)
T_IN = 16
ACT = 'relu'     # get_act: anything != 'lrelu' -> ReLU
IN_EPS = 1e-5    # nn.InstanceNorm1d default eps

PAD_L = KERNEL // 2
PAD_R = KERNEL // 2 - 1 + KERNEL % 2


# --------------------------- in-kernel helpers ------------------------------
def _act(x):
    if ACT == 'lrelu':
        return jnp.where(x >= 0.0, x, 0.01 * x)
    return jnp.maximum(x, 0.0)


def _inorm(x):
    """InstanceNorm1d(affine=False): per-row (channel) mean/var over time (lanes)."""
    m = jnp.mean(x, axis=-1, keepdims=True)
    v = jnp.mean(jnp.square(x - m), axis=-1, keepdims=True)
    return (x - m) * jax.lax.rsqrt(v + IN_EPS)


def _reflect_pad(x):
    """ReflectionPad1d((PAD_L, PAD_R)) on a (C, T) tile, built from static slices."""
    t = x.shape[1]
    cols = [x[:, i:i + 1] for i in range(PAD_L, 0, -1)]
    cols.append(x)
    cols += [x[:, t - 2 - i:t - 1 - i] for i in range(PAD_R)]
    return jnp.concatenate(cols, axis=1)


def _conv_from_padded(xp, t, wks, bias):
    """Stride-1 Conv1d over an already reflection-padded tile as K shifted matmuls.
    xp: (C_in, T + K - 1); wks[k]: (C_out, C_in); bias: (C_out, 1)."""
    acc = None
    for k, wk in enumerate(wks):
        p = jnp.dot(wk, xp[:, k:k + t], preferred_element_type=jnp.float32)
        acc = p if acc is None else acc + p
    return acc + bias


def _affine(wa_ref, ba_ref, cond_row):
    """AffineLayer's Linear(c_cond -> 2*c_h) for one batch element.
    cond_row: (1, c_cond).  Returns (mean, std) columns of shape (c_h, 1)."""
    h = jnp.sum(wa_ref[...] * cond_row, axis=-1, keepdims=True) + ba_ref[...]
    return h[:C_H], h[C_H:]


# ------------------------------- the kernel ---------------------------------
def _decoder_kernel(*refs):
    z_ref, cond_ref = refs[0], refs[1]
    w_in_ref, b_in_ref = refs[2], refs[3]
    blocks = [refs[4 + 9 * i: 4 + 9 * (i + 1)] for i in range(N_CONV)]
    w_out_ref, b_out_ref = refs[4 + 9 * N_CONV], refs[5 + 9 * N_CONV]
    o_ref = refs[6 + 9 * N_CONV]

    cond_row = cond_ref[0]                                        # (1, c_cond)

    # ---- in_conv (1x1) -> InstanceNorm -> act ; dropout = identity ----
    x = z_ref[0]                                                  # (c_in, T0)
    out = jnp.dot(w_in_ref[...], x,
                  preferred_element_type=jnp.float32) + b_in_ref[...]
    out = _act(_inorm(out))

    for (w1_ref, b1_ref, w2_ref, b2_ref,
         wa1_ref, ba1_ref, wa2_ref, ba2_ref, e_ref) in blocks:
        up = e_ref.shape[0]
        t = out.shape[1]

        # -- first conv -> norm_layer -> AffineLayer(IN, *std+mean) -> act --
        w1 = w1_ref[...]                                          # (K, c_h, c_h)
        xp = _reflect_pad(out)
        y = _conv_from_padded(xp, t, [w1[k] for k in range(KERNEL)], b1_ref[...])
        y = _inorm(y)                                             # self.norm_layer
        mean1, std1 = _affine(wa1_ref, ba1_ref, cond_row)
        y = _act(_inorm(y) * std1 + mean1)                        # AffineLayer + act

        # -- second conv (phase-grouped) -> PixelShuffle via 0/1 scatter matmul --
        w2 = w2_ref[...]                                          # (up, K, c_h, c_h)
        b2 = b2_ref[...]                                          # (up, c_h, 1)
        yp = _reflect_pad(y)                                      # pad once, reuse
        if up > 1:
            e = e_ref[...]                                        # (up, t, t*up)
            y2 = None
            for s in range(up):
                part = _conv_from_padded(yp, t,
                                         [w2[s, k] for k in range(KERNEL)],
                                         b2[s])                   # (c_h, t)
                part = jnp.dot(part, e[s], preferred_element_type=jnp.float32)
                y2 = part if y2 is None else y2 + part            # (c_h, t*up)
            # nearest-neighbour upsample of the residual path
            out = jnp.dot(out, jnp.sum(e, axis=0),
                          preferred_element_type=jnp.float32)
        else:
            y2 = _conv_from_padded(yp, t,
                                   [w2[0, k] for k in range(KERNEL)], b2[0])

        # -- norm_layer -> AffineLayer -> act -> residual add --
        y2 = _inorm(y2)
        mean2, std2 = _affine(wa2_ref, ba2_ref, cond_row)
        y2 = _act(_inorm(y2) * std2 + mean2)
        out = y2 + out

    # ---- out_conv (1x1) ----
    res = jnp.dot(w_out_ref[...], out,
                  preferred_element_type=jnp.float32) + b_out_ref[...]
    o_ref[0] = res.astype(o_ref.dtype)


# ------------------------------ host wrapper ---------------------------------
def _const_spec(a):
    """Whole-array VMEM block with a constant index map (weights / phase matrices)."""
    zero = (0,) * a.ndim
    return pl.BlockSpec(a.shape, lambda i, _z=zero: _z)


@jax.jit
def decoder_forward(z, cond, flat_params):
    b, c_in, t0 = z.shape
    t_out = t0
    for up in UPSAMPLE:
        t_out *= up
    cond3 = cond.astype(jnp.float32).reshape(b, 1, C_COND)
    inputs = (z.astype(jnp.float32), cond3) + tuple(flat_params)
    in_specs = [pl.BlockSpec((1, c_in, t0), lambda i: (i, 0, 0)),
                pl.BlockSpec((1, 1, C_COND), lambda i: (i, 0, 0))]
    in_specs += [_const_spec(a) for a in inputs[2:]]
    return pl.pallas_call(
        _decoder_kernel,
        out_shape=jax.ShapeDtypeStruct((b, C_OUT, t_out), jnp.float32),
        grid=(b,),
        in_specs=in_specs,
        out_specs=pl.BlockSpec((1, C_OUT, t_out), lambda i: (i, 0, 0)),
        compiler_params=pltpu.CompilerParams(dimension_semantics=("parallel",)),
    )(*inputs)


# ---------------------- parameters (PyTorch layout) --------------------------
class ParamGen:
    def __init__(self, seed=0):
        self.key = jax.random.PRNGKey(seed)

    def next(self, shape, scale=0.1):
        self.key, sub = jax.random.split(self.key)
        return (scale * jax.random.normal(sub, shape)).astype(jnp.float32)


def init_decoder_params(pg):
    """Parameters in native PyTorch layouts (Conv1d: (out,in,K); Linear: (out,in))."""
    return dict(
        in_conv=(pg.next((C_H, C_IN, 1)), pg.next((C_H,))),
        first=[(pg.next((C_H, C_H, KERNEL)), pg.next((C_H,))) for _ in range(N_CONV)],
        second=[(pg.next((C_H * UPSAMPLE[i], C_H, KERNEL)),
                 pg.next((C_H * UPSAMPLE[i],))) for i in range(N_CONV)],
        aff1=[(pg.next((2 * C_H, C_COND)), pg.next((2 * C_H,))) for _ in range(N_CONV)],
        aff2=[(pg.next((2 * C_H, C_COND)), pg.next((2 * C_H,))) for _ in range(N_CONV)],
        out_conv=(pg.next((C_OUT, C_H, 1)), pg.next((C_OUT,))),
    )


def make_shuffle_matrix(t, up):
    """E[s, l, l*up + s] = 1. Right-multiplying by E[s] scatters the phase-s conv
    output to its pixel-shuffled time positions; sum_s E[s] is nearest-upsample."""
    l = jnp.arange(t)
    m = jnp.arange(t * up)
    s = jnp.arange(up)
    e = (m[None, None, :] == (l[None, :, None] * up + s[:, None, None]))
    return e.astype(jnp.float32)                                  # (up, t, t*up)


def prepare_decoder_params(p, t0):
    """One-time pre-transform of PyTorch-layout weights into kernel layout."""
    flat = []
    w, b = p['in_conv']
    flat += [w[:, :, 0], b.reshape(C_H, 1)]
    t = t0
    for i in range(N_CONV):
        up = UPSAMPLE[i]
        w1, b1 = p['first'][i]
        flat += [jnp.transpose(w1, (2, 0, 1)), b1.reshape(C_H, 1)]     # (K,c_h,c_h)
        w2, b2 = p['second'][i]
        w2g = jnp.stack([jnp.transpose(w2[s::up], (2, 0, 1)) for s in range(up)], 0)
        b2g = jnp.stack([b2[s::up].reshape(C_H, 1) for s in range(up)], 0)
        wa1, ba1 = p['aff1'][i]
        wa2, ba2 = p['aff2'][i]
        flat += [w2g, b2g,
                 wa1, ba1.reshape(2 * C_H, 1),
                 wa2, ba2.reshape(2 * C_H, 1),
                 make_shuffle_matrix(t, up)]
        t *= up
    w, b = p['out_conv']
    flat += [w[:, :, 0], b.reshape(C_OUT, 1)]
    return [a.astype(jnp.float32) for a in flat]


# -------------------------- pure-JAX reference -------------------------------
def _conv1d_ref(x, w, b, pad):
    xp = jnp.pad(x, ((0, 0), (0, 0), pad), mode='reflect') if sum(pad) else x
    y = jax.lax.conv_general_dilated(
        xp, w, window_strides=(1,), padding='VALID',
        dimension_numbers=('NCH', 'OIH', 'NCH'),
        precision=jax.lax.Precision.HIGHEST)
    return y + b[None, :, None]


def _inorm_ref(x):
    m = jnp.mean(x, axis=-1, keepdims=True)
    v = jnp.mean((x - m) ** 2, axis=-1, keepdims=True)
    return (x - m) / jnp.sqrt(v + IN_EPS)


def _act_ref(x):
    return jnp.where(x >= 0, x, 0.01 * x) if ACT == 'lrelu' else jnp.maximum(x, 0.0)


def _pixel_shuffle_ref(x, up):
    if up == 1:
        return x
    b, c, t = x.shape
    x = x.reshape(b, c // up, up, t)
    x = jnp.transpose(x, (0, 1, 3, 2))
    return x.reshape(b, c // up, t * up)


def decoder_forward_ref(z, cond, p):
    pad = (PAD_L, PAD_R)
    out = _conv1d_ref(z, *p['in_conv'], (0, 0))
    out = _act_ref(_inorm_ref(out))
    for i in range(N_CONV):
        up = UPSAMPLE[i]
        wa1, ba1 = p['aff1'][i]
        wa2, ba2 = p['aff2'][i]
        h1 = jnp.dot(cond, wa1.T, precision=jax.lax.Precision.HIGHEST) + ba1
        h2 = jnp.dot(cond, wa2.T, precision=jax.lax.Precision.HIGHEST) + ba2
        y = _conv1d_ref(out, *p['first'][i], pad)
        y = _inorm_ref(y)
        y = _inorm_ref(y) * h1[:, C_H:, None] + h1[:, :C_H, None]
        y = _act_ref(y)
        y = _conv1d_ref(y, *p['second'][i], pad)
        y = _pixel_shuffle_ref(y, up)
        y = _inorm_ref(y)
        y = _inorm_ref(y) * h2[:, C_H:, None] + h2[:, :C_H, None]
        y = _act_ref(y)
        out = y + jnp.repeat(out, up, axis=-1)
    return _conv1d_ref(out, *p['out_conv'], (0, 0))


# ---------------------------------- main -------------------------------------
if __name__ == "__main__":
    pg = ParamGen(seed=0)
    torch_params = init_decoder_params(pg)
    flat_params = tuple(prepare_decoder_params(torch_params, T_IN))

    key = jax.random.PRNGKey(0)
    kz, kc = jax.random.split(key)
    z = jax.random.normal(kz, (BATCH, C_IN, T_IN), dtype=jnp.float32)
    cond = jax.random.normal(kc, (BATCH, C_COND), dtype=jnp.float32)

    out = decoder_forward(z, cond, flat_params)
    out = jax.block_until_ready(out)

    t_out = T_IN
    for up in UPSAMPLE:
        t_out *= up
    assert out.shape == (BATCH, C_OUT, t_out)
    assert bool(jnp.all(jnp.isfinite(out)))

    ref = decoder_forward_ref(z, cond, torch_params)
    max_err = float(jnp.max(jnp.abs(out - ref)))
    assert jnp.allclose(out, ref, atol=2e-2, rtol=2e-2), max_err

    print("KERNEL_OK")
</pallas_src>

<mosaic_0001>
module attributes {stable_mosaic.version = 11 : i64} {
  func.func @_decoder_kernel(%arg0: i32, %arg1: memref<1x16x16xf32, #tpu.memory_space<vmem>>, %arg2: memref<1x1x32xf32, #tpu.memory_space<vmem>>, %arg3: memref<32x16xf32, #tpu.memory_space<vmem>>, %arg4: memref<32x1xf32, #tpu.memory_space<vmem>>, %arg5: memref<5x32x32xf32, #tpu.memory_space<vmem>>, %arg6: memref<32x1xf32, #tpu.memory_space<vmem>>, %arg7: memref<2x5x32x32xf32, #tpu.memory_space<vmem>>, %arg8: memref<2x32x1xf32, #tpu.memory_space<vmem>>, %arg9: memref<64x32xf32, #tpu.memory_space<vmem>>, %arg10: memref<64x1xf32, #tpu.memory_space<vmem>>, %arg11: memref<64x32xf32, #tpu.memory_space<vmem>>, %arg12: memref<64x1xf32, #tpu.memory_space<vmem>>, %arg13: memref<2x16x32xf32, #tpu.memory_space<vmem>>, %arg14: memref<5x32x32xf32, #tpu.memory_space<vmem>>, %arg15: memref<32x1xf32, #tpu.memory_space<vmem>>, %arg16: memref<1x5x32x32xf32, #tpu.memory_space<vmem>>, %arg17: memref<1x32x1xf32, #tpu.memory_space<vmem>>, %arg18: memref<64x32xf32, #tpu.memory_space<vmem>>, %arg19: memref<64x1xf32, #tpu.memory_space<vmem>>, %arg20: memref<64x32xf32, #tpu.memory_space<vmem>>, %arg21: memref<64x1xf32, #tpu.memory_space<vmem>>, %arg22: memref<1x32x32xf32, #tpu.memory_space<vmem>>, %arg23: memref<4x32xf32, #tpu.memory_space<vmem>>, %arg24: memref<4x1xf32, #tpu.memory_space<vmem>>, %arg25: memref<1x4x32xf32, #tpu.memory_space<vmem>>) attributes {dimension_semantics = [#tpu.dimension_semantics<parallel>], iteration_bounds = array<i64: 2>, scalar_prefetch = 0 : i64, scratch_operands = 0 : i64, tpu.core_type = #tpu.core_type<tc>, window_params = [{transform_indices = @transform_0, window_bounds = array<i64: 1, 16, 16>}, {transform_indices = @transform_1, window_bounds = array<i64: 1, 1, 32>}, {pipeline_mode = #tpu.pipeline_mode<synchronous>, transform_indices = @transform_2, window_bounds = array<i64: 32, 16>}, {pipeline_mode = #tpu.pipeline_mode<synchronous>, transform_indices = @transform_3, window_bounds = array<i64: 32, 1>}, {pipeline_mode = #tpu.pipeline_mode<synchronous>, transform_indices = @transform_4, window_bounds = array<i64: 5, 32, 32>}, {pipeline_mode = #tpu.pipeline_mode<synchronous>, transform_indices = @transform_5, window_bounds = array<i64: 32, 1>}, {pipeline_mode = #tpu.pipeline_mode<synchronous>, transform_indices = @transform_6, window_bounds = array<i64: 2, 5, 32, 32>}, {pipeline_mode = #tpu.pipeline_mode<synchronous>, transform_indices = @transform_7, window_bounds = array<i64: 2, 32, 1>}, {pipeline_mode = #tpu.pipeline_mode<synchronous>, transform_indices = @transform_8, window_bounds = array<i64: 64, 32>}, {pipeline_mode = #tpu.pipeline_mode<synchronous>, transform_indices = @transform_9, window_bounds = array<i64: 64, 1>}, {pipeline_mode = #tpu.pipeline_mode<synchronous>, transform_indices = @transform_10, window_bounds = array<i64: 64, 32>}, {pipeline_mode = #tpu.pipeline_mode<synchronous>, transform_indices = @transform_11, window_bounds = array<i64: 64, 1>}, {pipeline_mode = #tpu.pipeline_mode<synchronous>, transform_indices = @transform_12, window_bounds = array<i64: 2, 16, 32>}, {pipeline_mode = #tpu.pipeline_mode<synchronous>, transform_indices = @transform_13, window_bounds = array<i64: 5, 32, 32>}, {pipeline_mode = #tpu.pipeline_mode<synchronous>, transform_indices = @transform_14, window_bounds = array<i64: 32, 1>}, {pipeline_mode = #tpu.pipeline_mode<synchronous>, transform_indices = @transform_15, window_bounds = array<i64: 1, 5, 32, 32>}, {pipeline_mode = #tpu.pipeline_mode<synchronous>, transform_indices = @transform_16, window_bounds = array<i64: 1, 32, 1>}, {pipeline_mode = #tpu.pipeline_mode<synchronous>, transform_indices = @transform_17, window_bounds = array<i64: 64, 32>}, {pipeline_mode = #tpu.pipeline_mode<synchronous>, transform_indices = @transform_18, window_bounds = array<i64: 64, 1>}, {pipeline_mode = #tpu.pipeline_mode<synchronous>, transform_indices = @transform_19, window_bounds = array<i64: 64, 32>}, {pipeline_mode = #tpu.pipeline_mode<synchronous>, transform_indices = @transform_20, window_bounds = array<i64: 64, 1>}, {pipeline_mode = #tpu.pipeline_mode<synchronous>, transform_indices = @transform_21, window_bounds = array<i64: 1, 32, 32>}, {pipeline_mode = #tpu.pipeline_mode<synchronous>, transform_indices = @transform_22, window_bounds = array<i64: 4, 32>}, {pipeline_mode = #tpu.pipeline_mode<synchronous>, transform_indices = @transform_23, window_bounds = array<i64: 4, 1>}, {transform_indices = @transform_24, window_bounds = array<i64: 1, 4, 32>}]} {
    %c0 = arith.constant 0 : index
    %c0_0 = arith.constant 0 : index
    %c0_1 = arith.constant 0 : index
    %0 = vector.load %arg2[%c0, %c0_0, %c0_1] : memref<1x1x32xf32, #tpu.memory_space<vmem>>, vector<1x1x32xf32>
    %1 = vector.shape_cast %0 : vector<1x1x32xf32> to vector<1x32xf32>
    %c0_2 = arith.constant 0 : index
    %c0_3 = arith.constant 0 : index
    %c0_4 = arith.constant 0 : index
    %2 = vector.load %arg1[%c0_2, %c0_3, %c0_4] : memref<1x16x16xf32, #tpu.memory_space<vmem>>, vector<1x16x16xf32>
    %3 = vector.shape_cast %2 : vector<1x16x16xf32> to vector<16x16xf32>
    %c0_5 = arith.constant 0 : index
    %c0_6 = arith.constant 0 : index
    %4 = vector.load %arg3[%c0_5, %c0_6] : memref<32x16xf32, #tpu.memory_space<vmem>>, vector<32x16xf32>
    %cst = arith.constant dense<0.000000e+00> : vector<32x16xf32>
    %5 = tpu.matmul %4, %3, %cst {dimension_numbers = #tpu.dot_dimension_numbers<[1], [0], [0], [1], [0, 0, 1, 1], [], []>} : vector<32x16xf32>, vector<16x16xf32>, vector<32x16xf32> -> vector<32x16xf32>
    %c0_7 = arith.constant 0 : index
    %c0_8 = arith.constant 0 : index
    %6 = vector.load %arg4[%c0_7, %c0_8] : memref<32x1xf32, #tpu.memory_space<vmem>>, vector<32x1xf32>
    %7 = vector.broadcast %6 : vector<32x1xf32> to vector<32x16xf32>
    %8 = arith.addf %5, %7 : vector<32x16xf32>
    %cst_9 = arith.constant dense<0.000000e+00> : vector<32xf32>
    %9 = vector.multi_reduction <add>, %8, %cst_9 [1] : vector<32x16xf32> to vector<32xf32>
    %10 = vector.shape_cast %9 : vector<32xf32> to vector<32x1xf32>
    %cst_10 = arith.constant 1.600000e+01 : f32
    %11 = vector.broadcast %cst_10 : f32 to vector<32x1xf32>
    %12 = arith.divf %10, %11 : vector<32x1xf32>
    %13 = vector.broadcast %12 : vector<32x1xf32> to vector<32x16xf32>
    %14 = arith.subf %8, %13 : vector<32x16xf32>
    %15 = arith.mulf %14, %14 : vector<32x16xf32>
    %cst_11 = arith.constant dense<0.000000e+00> : vector<32xf32>
    %16 = vector.multi_reduction <add>, %15, %cst_11 [1] : vector<32x16xf32> to vector<32xf32>
    %17 = vector.shape_cast %16 : vector<32xf32> to vector<32x1xf32>
    %cst_12 = arith.constant 1.600000e+01 : f32
    %18 = vector.broadcast %cst_12 : f32 to vector<32x1xf32>
    %19 = arith.divf %17, %18 : vector<32x1xf32>
    %20 = vector.broadcast %12 : vector<32x1xf32> to vector<32x16xf32>
    %21 = arith.subf %8, %20 : vector<32x16xf32>
    %cst_13 = arith.constant 9.99999974E-6 : f32
    %22 = vector.broadcast %cst_13 : f32 to vector<32x1xf32>
    %23 = arith.addf %19, %22 : vector<32x1xf32>
    %24 = math.rsqrt %23 : vector<32x1xf32>
    %25 = vector.broadcast %24 : vector<32x1xf32> to vector<32x16xf32>
    %26 = arith.mulf %21, %25 : vector<32x16xf32>
    %cst_14 = arith.constant 0.000000e+00 : f32
    %27 = vector.broadcast %cst_14 : f32 to vector<32x16xf32>
    %28 = arith.maximumf %26, %27 : vector<32x16xf32>
    %c0_15 = arith.constant 0 : index
    %c0_16 = arith.constant 0 : index
    %c0_17 = arith.constant 0 : index
    %29 = vector.load %arg5[%c0_15, %c0_16, %c0_17] : memref<5x32x32xf32, #tpu.memory_space<vmem>>, vector<5x32x32xf32>
    %30 = vector.extract_strided_slice %28 {offsets = [0, 2], sizes = [32, 1], strides = [1, 1]} : vector<32x16xf32> to vector<32x1xf32>
    %31 = vector.extract_strided_slice %28 {offsets = [0, 1], sizes = [32, 1], strides = [1, 1]} : vector<32x16xf32> to vector<32x1xf32>
    %32 = vector.extract_strided_slice %28 {offsets = [0, 14], sizes = [32, 1], strides = [1, 1]} : vector<32x16xf32> to vector<32x1xf32>
    %33 = vector.extract_strided_slice %28 {offsets = [0, 13], sizes = [32, 1], strides = [1, 1]} : vector<32x16xf32> to vector<32x1xf32>
    %34 = tpu.concatenate %30, %31, %28, %32, %33 in 1 : vector<32x1xf32>, vector<32x1xf32>, vector<32x16xf32>, vector<32x1xf32>, vector<32x1xf32> -> vector<32x20xf32>
    %35 = vector.extract_strided_slice %29 {offsets = [0, 0, 0], sizes = [1, 32, 32], strides = [1, 1, 1]} : vector<5x32x32xf32> to vector<1x32x32xf32>
    %36 = vector.shape_cast %35 : vector<1x32x32xf32> to vector<32x32xf32>
    %37 = vector.extract_strided_slice %29 {offsets = [1, 0, 0], sizes = [1, 32, 32], strides = [1, 1, 1]} : vector<5x32x32xf32> to vector<1x32x32xf32>
    %38 = vector.shape_cast %37 : vector<1x32x32xf32> to vector<32x32xf32>
    %39 = vector.extract_strided_slice %29 {offsets = [2, 0, 0], sizes = [1, 32, 32], strides = [1, 1, 1]} : vector<5x32x32xf32> to vector<1x32x32xf32>
    %40 = vector.shape_cast %39 : vector<1x32x32xf32> to vector<32x32xf32>
    %41 = vector.extract_strided_slice %29 {offsets = [3, 0, 0], sizes = [1, 32, 32], strides = [1, 1, 1]} : vector<5x32x32xf32> to vector<1x32x32xf32>
    %42 = vector.shape_cast %41 : vector<1x32x32xf32> to vector<32x32xf32>
    %43 = vector.extract_strided_slice %29 {offsets = [4, 0, 0], sizes = [1, 32, 32], strides = [1, 1, 1]} : vector<5x32x32xf32> to vector<1x32x32xf32>
    %44 = vector.shape_cast %43 : vector<1x32x32xf32> to vector<32x32xf32>
    %c0_18 = arith.constant 0 : index
    %c0_19 = arith.constant 0 : index
    %45 = vector.load %arg6[%c0_18, %c0_19] : memref<32x1xf32, #tpu.memory_space<vmem>>, vector<32x1xf32>
    %46 = vector.extract_strided_slice %34 {offsets = [0, 0], sizes = [32, 16], strides = [1, 1]} : vector<32x20xf32> to vector<32x16xf32>
    %cst_20 = arith.constant dense<0.000000e+00> : vector<32x16xf32>
    %47 = tpu.matmul %36, %46, %cst_20 {dimension_numbers = #tpu.dot_dimension_numbers<[1], [0], [0], [1], [0, 0, 1, 1], [], []>} : vector<32x32xf32>, vector<32x16xf32>, vector<32x16xf32> -> vector<32x16xf32>
    %48 = vector.extract_strided_slice %34 {offsets = [0, 1], sizes = [32, 16], strides = [1, 1]} : vector<32x20xf32> to vector<32x16xf32>
    %cst_21 = arith.constant dense<0.000000e+00> : vector<32x16xf32>
    %49 = tpu.matmul %38, %48, %cst_21 {dimension_numbers = #tpu.dot_dimension_numbers<[1], [0], [0], [1], [0, 0, 1, 1], [], []>} : vector<32x32xf32>, vector<32x16xf32>, vector<32x16xf32> -> vector<32x16xf32>
    %50 = arith.addf %47, %49 : vector<32x16xf32>
    %51 = vector.extract_strided_slice %34 {offsets = [0, 2], sizes = [32, 16], strides = [1, 1]} : vector<32x20xf32> to vector<32x16xf32>
    %cst_22 = arith.constant dense<0.000000e+00> : vector<32x16xf32>
    %52 = tpu.matmul %40, %51, %cst_22 {dimension_numbers = #tpu.dot_dimension_numbers<[1], [0], [0], [1], [0, 0, 1, 1], [], []>} : vector<32x32xf32>, vector<32x16xf32>, vector<32x16xf32> -> vector<32x16xf32>
    %53 = arith.addf %50, %52 : vector<32x16xf32>
    %54 = vector.extract_strided_slice %34 {offsets = [0, 3], sizes = [32, 16], strides = [1, 1]} : vector<32x20xf32> to vector<32x16xf32>
    %cst_23 = arith.constant dense<0.000000e+00> : vector<32x16xf32>
    %55 = tpu.matmul %42, %54, %cst_23 {dimension_numbers = #tpu.dot_dimension_numbers<[1], [0], [0], [1], [0, 0, 1, 1], [], []>} : vector<32x32xf32>, vector<32x16xf32>, vector<32x16xf32> -> vector<32x16xf32>
    %56 = arith.addf %53, %55 : vector<32x16xf32>
    %57 = vector.extract_strided_slice %34 {offsets = [0, 4], sizes = [32, 16], strides = [1, 1]} : vector<32x20xf32> to vector<32x16xf32>
    %cst_24 = arith.constant dense<0.000000e+00> : vector<32x16xf32>
    %58 = tpu.matmul %44, %57, %cst_24 {dimension_numbers = #tpu.dot_dimension_numbers<[1], [0], [0], [1], [0, 0, 1, 1], [], []>} : vector<32x32xf32>, vector<32x16xf32>, vector<32x16xf32> -> vector<32x16xf32>
    %59 = arith.addf %56, %58 : vector<32x16xf32>
    %60 = vector.broadcast %45 : vector<32x1xf32> to vector<32x16xf32>
    %61 = arith.addf %59, %60 : vector<32x16xf32>
    %cst_25 = arith.constant dense<0.000000e+00> : vector<32xf32>
    %62 = vector.multi_reduction <add>, %61, %cst_25 [1] : vector<32x16xf32> to vector<32xf32>
    %63 = vector.shape_cast %62 : vector<32xf32> to vector<32x1xf32>
    %cst_26 = arith.constant 1.600000e+01 : f32
    %64 = vector.broadcast %cst_26 : f32 to vector<32x1xf32>
    %65 = arith.divf %63, %64 : vector<32x1xf32>
    %66 = vector.broadcast %65 : vector<32x1xf32> to vector<32x16xf32>
    %67 = arith.subf %61, %66 : vector<32x16xf32>
    %68 = arith.mulf %67, %67 : vector<32x16xf32>
    %cst_27 = arith.constant dense<0.000000e+00> : vector<32xf32>
    %69 = vector.multi_reduction <add>, %68, %cst_27 [1] : vector<32x16xf32> to vector<32xf32>
    %70 = vector.shape_cast %69 : vector<32xf32> to vector<32x1xf32>
    %cst_28 = arith.constant 1.600000e+01 : f32
    %71 = vector.broadcast %cst_28 : f32 to vector<32x1xf32>
    %72 = arith.divf %70, %71 : vector<32x1xf32>
    %73 = vector.broadcast %65 : vector<32x1xf32> to vector<32x16xf32>
    %74 = arith.subf %61, %73 : vector<32x16xf32>
    %cst_29 = arith.constant 9.99999974E-6 : f32
    %75 = vector.broadcast %cst_29 : f32 to vector<32x1xf32>
    %76 = arith.addf %72, %75 : vector<32x1xf32>
    %77 = math.rsqrt %76 : vector<32x1xf32>
    %78 = vector.broadcast %77 : vector<32x1xf32> to vector<32x16xf32>
    %79 = arith.mulf %74, %78 : vector<32x16xf32>
    %c0_30 = arith.constant 0 : index
    %c0_31 = arith.constant 0 : index
    %80 = vector.load %arg9[%c0_30, %c0_31] : memref<64x32xf32, #tpu.memory_space<vmem>>, vector<64x32xf32>
    %81 = vector.broadcast %1 : vector<1x32xf32> to vector<64x32xf32>
    %82 = arith.mulf %80, %81 : vector<64x32xf32>
    %cst_32 = arith.constant dense<0.000000e+00> : vector<64xf32>
    %83 = vector.multi_reduction <add>, %82, %cst_32 [1] : vector<64x32xf32> to vector<64xf32>
    %84 = vector.shape_cast %83 : vector<64xf32> to vector<64x1xf32>
    %c0_33 = arith.constant 0 : index
    %c0_34 = arith.constant 0 : index
    %85 = vector.load %arg10[%c0_33, %c0_34] : memref<64x1xf32, #tpu.memory_space<vmem>>, vector<64x1xf32>
    %86 = arith.addf %84, %85 : vector<64x1xf32>
    %87 = vector.extract_strided_slice %86 {offsets = [0, 0], sizes = [32, 1], strides = [1, 1]} : vector<64x1xf32> to vector<32x1xf32>
    %88 = vector.extract_strided_slice %86 {offsets = [32, 0], sizes = [32, 1], strides = [1, 1]} : vector<64x1xf32> to vector<32x1xf32>
    %cst_35 = arith.constant dense<0.000000e+00> : vector<32xf32>
    %89 = vector.multi_reduction <add>, %79, %cst_35 [1] : vector<32x16xf32> to vector<32xf32>
    %90 = vector.shape_cast %89 : vector<32xf32> to vector<32x1xf32>
    %cst_36 = arith.constant 1.600000e+01 : f32
    %91 = vector.broadcast %cst_36 : f32 to vector<32x1xf32>
    %92 = arith.divf %90, %91 : vector<32x1xf32>
    %93 = vector.broadcast %92 : vector<32x1xf32> to vector<32x16xf32>
    %94 = arith.subf %79, %93 : vector<32x16xf32>
    %95 = arith.mulf %94, %94 : vector<32x16xf32>
    %cst_37 = arith.constant dense<0.000000e+00> : vector<32xf32>
    %96 = vector.multi_reduction <add>, %95, %cst_37 [1] : vector<32x16xf32> to vector<32xf32>
    %97 = vector.shape_cast %96 : vector<32xf32> to vector<32x1xf32>
    %cst_38 = arith.constant 1.600000e+01 : f32
    %98 = vector.broadcast %cst_38 : f32 to vector<32x1xf32>
    %99 = arith.divf %97, %98 : vector<32x1xf32>
    %100 = vector.broadcast %92 : vector<32x1xf32> to vector<32x16xf32>
    %101 = arith.subf %79, %100 : vector<32x16xf32>
    %cst_39 = arith.constant 9.99999974E-6 : f32
    %102 = vector.broadcast %cst_39 : f32 to vector<32x1xf32>
    %103 = arith.addf %99, %102 : vector<32x1xf32>
    %104 = math.rsqrt %103 : vector<32x1xf32>
    %105 = vector.broadcast %104 : vector<32x1xf32> to vector<32x16xf32>
    %106 = arith.mulf %101, %105 : vector<32x16xf32>
    %107 = vector.broadcast %88 : vector<32x1xf32> to vector<32x16xf32>
    %108 = arith.mulf %106, %107 : vector<32x16xf32>
    %109 = vector.broadcast %87 : vector<32x1xf32> to vector<32x16xf32>
    %110 = arith.addf %108, %109 : vector<32x16xf32>
    %cst_40 = arith.constant 0.000000e+00 : f32
    %111 = vector.broadcast %cst_40 : f32 to vector<32x16xf32>
    %112 = arith.maximumf %110, %111 : vector<32x16xf32>
    %c0_41 = arith.constant 0 : index
    %c0_42 = arith.constant 0 : index
    %c0_43 = arith.constant 0 : index
    %c0_44 = arith.constant 0 : index
    %113 = vector.load %arg7[%c0_41, %c0_42, %c0_43, %c0_44] : memref<2x5x32x32xf32, #tpu.memory_space<vmem>>, vector<2x5x32x32xf32>
    %c0_45 = arith.constant 0 : index
    %c0_46 = arith.constant 0 : index
    %c0_47 = arith.constant 0 : index
    %114 = vector.load %arg8[%c0_45, %c0_46, %c0_47] : memref<2x32x1xf32, #tpu.memory_space<vmem>>, vector<2x32x1xf32>
    %115 = vector.extract_strided_slice %112 {offsets = [0, 2], sizes = [32, 1], strides = [1, 1]} : vector<32x16xf32> to vector<32x1xf32>
    %116 = vector.extract_strided_slice %112 {offsets = [0, 1], sizes = [32, 1], strides = [1, 1]} : vector<32x16xf32> to vector<32x1xf32>
    %117 = vector.extract_strided_slice %112 {offsets = [0, 14], sizes = [32, 1], strides = [1, 1]} : vector<32x16xf32> to vector<32x1xf32>
    %118 = vector.extract_strided_slice %112 {offsets = [0, 13], sizes = [32, 1], strides = [1, 1]} : vector<32x16xf32> to vector<32x1xf32>
    %119 = tpu.concatenate %115, %116, %112, %117, %118 in 1 : vector<32x1xf32>, vector<32x1xf32>, vector<32x16xf32>, vector<32x1xf32>, vector<32x1xf32> -> vector<32x20xf32>
    %c0_48 = arith.constant 0 : index
    %c0_49 = arith.constant 0 : index
    %c0_50 = arith.constant 0 : index
    %120 = vector.load %arg13[%c0_48, %c0_49, %c0_50] : memref<2x16x32xf32, #tpu.memory_space<vmem>>, vector<2x16x32xf32>
    %121 = vector.extract_strided_slice %113 {offsets = [0, 0, 0, 0], sizes = [1, 1, 32, 32], strides = [1, 1, 1, 1]} : vector<2x5x32x32xf32> to vector<1x1x32x32xf32>
    %122 = vector.shape_cast %121 : vector<1x1x32x32xf32> to vector<32x32xf32>
    %123 = vector.extract_strided_slice %113 {offsets = [0, 1, 0, 0], sizes = [1, 1, 32, 32], strides = [1, 1, 1, 1]} : vector<2x5x32x32xf32> to vector<1x1x32x32xf32>
    %124 = vector.shape_cast %123 : vector<1x1x32x32xf32> to vector<32x32xf32>
    %125 = vector.extract_strided_slice %113 {offsets = [0, 2, 0, 0], sizes = [1, 1, 32, 32], strides = [1, 1, 1, 1]} : vector<2x5x32x32xf32> to vector<1x1x32x32xf32>
    %126 = vector.shape_cast %125 : vector<1x1x32x32xf32> to vector<32x32xf32>
    %127 = vector.extract_strided_slice %113 {offsets = [0, 3, 0, 0], sizes = [1, 1, 32, 32], strides = [1, 1, 1, 1]} : vector<2x5x32x32xf32> to vector<1x1x32x32xf32>
    %128 = vector.shape_cast %127 : vector<1x1x32x32xf32> to vector<32x32xf32>
    %129 = vector.extract_strided_slice %113 {offsets = [0, 4, 0, 0], sizes = [1, 1, 32, 32], strides = [1, 1, 1, 1]} : vector<2x5x32x32xf32> to vector<1x1x32x32xf32>
    %130 = vector.shape_cast %129 : vector<1x1x32x32xf32> to vector<32x32xf32>
    %131 = vector.extract_strided_slice %114 {offsets = [0, 0, 0], sizes = [1, 32, 1], strides = [1, 1, 1]} : vector<2x32x1xf32> to vector<1x32x1xf32>
    %132 = vector.shape_cast %131 : vector<1x32x1xf32> to vector<32x1xf32>
    %133 = vector.extract_strided_slice %119 {offsets = [0, 0], sizes = [32, 16], strides = [1, 1]} : vector<32x20xf32> to vector<32x16xf32>
    %cst_51 = arith.constant dense<0.000000e+00> : vector<32x16xf32>
    %134 = tpu.matmul %122, %133, %cst_51 {dimension_numbers = #tpu.dot_dimension_numbers<[1], [0], [0], [1], [0, 0, 1, 1], [], []>} : vector<32x32xf32>, vector<32x16xf32>, vector<32x16xf32> -> vector<32x16xf32>
    %135 = vector.extract_strided_slice %119 {offsets = [0, 1], sizes = [32, 16], strides = [1, 1]} : vector<32x20xf32> to vector<32x16xf32>
    %cst_52 = arith.constant dense<0.000000e+00> : vector<32x16xf32>
    %136 = tpu.matmul %124, %135, %cst_52 {dimension_numbers = #tpu.dot_dimension_numbers<[1], [0], [0], [1], [0, 0, 1, 1], [], []>} : vector<32x32xf32>, vector<32x16xf32>, vector<32x16xf32> -> vector<32x16xf32>
    %137 = arith.addf %134, %136 : vector<32x16xf32>
    %138 = vector.extract_strided_slice %119 {offsets = [0, 2], sizes = [32, 16], strides = [1, 1]} : vector<32x20xf32> to vector<32x16xf32>
    %cst_53 = arith.constant dense<0.000000e+00> : vector<32x16xf32>
    %139 = tpu.matmul %126, %138, %cst_53 {dimension_numbers = #tpu.dot_dimension_numbers<[1], [0], [0], [1], [0, 0, 1, 1], [], []>} : vector<32x32xf32>, vector<32x16xf32>, vector<32x16xf32> -> vector<32x16xf32>
    %140 = arith.addf %137, %139 : vector<32x16xf32>
    %141 = vector.extract_strided_slice %119 {offsets = [0, 3], sizes = [32, 16], strides = [1, 1]} : vector<32x20xf32> to vector<32x16xf32>
    %cst_54 = arith.constant dense<0.000000e+00> : vector<32x16xf32>
    %142 = tpu.matmul %128, %141, %cst_54 {dimension_numbers = #tpu.dot_dimension_numbers<[1], [0], [0], [1], [0, 0, 1, 1], [], []>} : vector<32x32xf32>, vector<32x16xf32>, vector<32x16xf32> -> vector<32x16xf32>
    %143 = arith.addf %140, %142 : vector<32x16xf32>
    %144 = vector.extract_strided_slice %119 {offsets = [0, 4], sizes = [32, 16], strides = [1, 1]} : vector<32x20xf32> to vector<32x16xf32>
    %cst_55 = arith.constant dense<0.000000e+00> : vector<32x16xf32>
    %145 = tpu.matmul %130, %144, %cst_55 {dimension_numbers = #tpu.dot_dimension_numbers<[1], [0], [0], [1], [0, 0, 1, 1], [], []>} : vector<32x32xf32>, vector<32x16xf32>, vector<32x16xf32> -> vector<32x16xf32>
    %146 = arith.addf %143, %145 : vector<32x16xf32>
    %147 = vector.broadcast %132 : vector<32x1xf32> to vector<32x16xf32>
    %148 = arith.addf %146, %147 : vector<32x16xf32>
    %149 = vector.extract_strided_slice %120 {offsets = [0, 0, 0], sizes = [1, 16, 32], strides = [1, 1, 1]} : vector<2x16x32xf32> to vector<1x16x32xf32>
    %150 = vector.shape_cast %149 : vector<1x16x32xf32> to vector<16x32xf32>
    %cst_56 = arith.constant dense<0.000000e+00> : vector<32x32xf32>
    %151 = tpu.matmul %148, %150, %cst_56 {dimension_numbers = #tpu.dot_dimension_numbers<[1], [0], [0], [1], [0, 0, 1, 1], [], []>} : vector<32x16xf32>, vector<16x32xf32>, vector<32x32xf32> -> vector<32x32xf32>
    %152 = vector.extract_strided_slice %113 {offsets = [1, 0, 0, 0], sizes = [1, 1, 32, 32], strides = [1, 1, 1, 1]} : vector<2x5x32x32xf32> to vector<1x1x32x32xf32>
    %153 = vector.shape_cast %152 : vector<1x1x32x32xf32> to vector<32x32xf32>
    %154 = vector.extract_strided_slice %113 {offsets = [1, 1, 0, 0], sizes = [1, 1, 32, 32], strides = [1, 1, 1, 1]} : vector<2x5x32x32xf32> to vector<1x1x32x32xf32>
    %155 = vector.shape_cast %154 : vector<1x1x32x32xf32> to vector<32x32xf32>
    %156 = vector.extract_strided_slice %113 {offsets = [1, 2, 0, 0], sizes = [1, 1, 32, 32], strides = [1, 1, 1, 1]} : vector<2x5x32x32xf32> to vector<1x1x32x32xf32>
    %157 = vector.shape_cast %156 : vector<1x1x32x32xf32> to vector<32x32xf32>
    %158 = vector.extract_strided_slice %113 {offsets = [1, 3, 0, 0], sizes = [1, 1, 32, 32], strides = [1, 1, 1, 1]} : vector<2x5x32x32xf32> to vector<1x1x32x32xf32>
    %159 = vector.shape_cast %158 : vector<1x1x32x32xf32> to vector<32x32xf32>
    %160 = vector.extract_strided_slice %113 {offsets = [1, 4, 0, 0], sizes = [1, 1, 32, 32], strides = [1, 1, 1, 1]} : vector<2x5x32x32xf32> to vector<1x1x32x32xf32>
    %161 = vector.shape_cast %160 : vector<1x1x32x32xf32> to vector<32x32xf32>
    %162 = vector.extract_strided_slice %114 {offsets = [1, 0, 0], sizes = [1, 32, 1], strides = [1, 1, 1]} : vector<2x32x1xf32> to vector<1x32x1xf32>
    %163 = vector.shape_cast %162 : vector<1x32x1xf32> to vector<32x1xf32>
    %164 = vector.extract_strided_slice %119 {offsets = [0, 0], sizes = [32, 16], strides = [1, 1]} : vector<32x20xf32> to vector<32x16xf32>
    %cst_57 = arith.constant dense<0.000000e+00> : vector<32x16xf32>
    %165 = tpu.matmul %153, %164, %cst_57 {dimension_numbers = #tpu.dot_dimension_numbers<[1], [0], [0], [1], [0, 0, 1, 1], [], []>} : vector<32x32xf32>, vector<32x16xf32>, vector<32x16xf32> -> vector<32x16xf32>
    %166 = vector.extract_strided_slice %119 {offsets = [0, 1], sizes = [32, 16], strides = [1, 1]} : vector<32x20xf32> to vector<32x16xf32>
    %cst_58 = arith.constant dense<0.000000e+00> : vector<32x16xf32>
    %167 = tpu.matmul %155, %166, %cst_58 {dimension_numbers = #tpu.dot_dimension_numbers<[1], [0], [0], [1], [0, 0, 1, 1], [], []>} : vector<32x32xf32>, vector<32x16xf32>, vector<32x16xf32> -> vector<32x16xf32>
    %168 = arith.addf %165, %167 : vector<32x16xf32>
    %169 = vector.extract_strided_slice %119 {offsets = [0, 2], sizes = [32, 16], strides = [1, 1]} : vector<32x20xf32> to vector<32x16xf32>
    %cst_59 = arith.constant dense<0.000000e+00> : vector<32x16xf32>
    %170 = tpu.matmul %157, %169, %cst_59 {dimension_numbers = #tpu.dot_dimension_numbers<[1], [0], [0], [1], [0, 0, 1, 1], [], []>} : vector<32x32xf32>, vector<32x16xf32>, vector<32x16xf32> -> vector<32x16xf32>
    %171 = arith.addf %168, %170 : vector<32x16xf32>
    %172 = vector.extract_strided_slice %119 {offsets = [0, 3], sizes = [32, 16], strides = [1, 1]} : vector<32x20xf32> to vector<32x16xf32>
    %cst_60 = arith.constant dense<0.000000e+00> : vector<32x16xf32>
    %173 = tpu.matmul %159, %172, %cst_60 {dimension_numbers = #tpu.dot_dimension_numbers<[1], [0], [0], [1], [0, 0, 1, 1], [], []>} : vector<32x32xf32>, vector<32x16xf32>, vector<32x16xf32> -> vector<32x16xf32>
    %174 = arith.addf %171, %173 : vector<32x16xf32>
    %175 = vector.extract_strided_slice %119 {offsets = [0, 4], sizes = [32, 16], strides = [1, 1]} : vector<32x20xf32> to vector<32x16xf32>
    %cst_61 = arith.constant dense<0.000000e+00> : vector<32x16xf32>
    %176 = tpu.matmul %161, %175, %cst_61 {dimension_numbers = #tpu.dot_dimension_numbers<[1], [0], [0], [1], [0, 0, 1, 1], [], []>} : vector<32x32xf32>, vector<32x16xf32>, vector<32x16xf32> -> vector<32x16xf32>
    %177 = arith.addf %174, %176 : vector<32x16xf32>
    %178 = vector.broadcast %163 : vector<32x1xf32> to vector<32x16xf32>
    %179 = arith.addf %177, %178 : vector<32x16xf32>
    %180 = vector.extract_strided_slice %120 {offsets = [1, 0, 0], sizes = [1, 16, 32], strides = [1, 1, 1]} : vector<2x16x32xf32> to vector<1x16x32xf32>
    %181 = vector.shape_cast %180 : vector<1x16x32xf32> to vector<16x32xf32>
    %cst_62 = arith.constant dense<0.000000e+00> : vector<32x32xf32>
    %182 = tpu.matmul %179, %181, %cst_62 {dimension_numbers = #tpu.dot_dimension_numbers<[1], [0], [0], [1], [0, 0, 1, 1], [], []>} : vector<32x16xf32>, vector<16x32xf32>, vector<32x32xf32> -> vector<32x32xf32>
    %183 = arith.addf %151, %182 : vector<32x32xf32>
    %cst_63 = arith.constant dense<0.000000e+00> : vector<16x32xf32>
    %184 = vector.multi_reduction <add>, %120, %cst_63 [0] : vector<2x16x32xf32> to vector<16x32xf32>
    %cst_64 = arith.constant dense<0.000000e+00> : vector<32x32xf32>
    %185 = tpu.matmul %28, %184, %cst_64 {dimension_numbers = #tpu.dot_dimension_numbers<[1], [0], [0], [1], [0, 0, 1, 1], [], []>} : vector<32x16xf32>, vector<16x32xf32>, vector<32x32xf32> -> vector<32x32xf32>
    %cst_65 = arith.constant dense<0.000000e+00> : vector<32xf32>
    %186 = vector.multi_reduction <add>, %183, %cst_65 [1] : vector<32x32xf32> to vector<32xf32>
    %187 = vector.shape_cast %186 : vector<32xf32> to vector<32x1xf32>
    %cst_66 = arith.constant 3.200000e+01 : f32
    %188 = vector.broadcast %cst_66 : f32 to vector<32x1xf32>
    %189 = arith.divf %187, %188 : vector<32x1xf32>
    %190 = vector.broadcast %189 : vector<32x1xf32> to vector<32x32xf32>
    %191 = arith.subf %183, %190 : vector<32x32xf32>
    %192 = arith.mulf %191, %191 : vector<32x32xf32>
    %cst_67 = arith.constant dense<0.000000e+00> : vector<32xf32>
    %193 = vector.multi_reduction <add>, %192, %cst_67 [1] : vector<32x32xf32> to vector<32xf32>
    %194 = vector.shape_cast %193 : vector<32xf32> to vector<32x1xf32>
    %cst_68 = arith.constant 3.200000e+01 : f32
    %195 = vector.broadcast %cst_68 : f32 to vector<32x1xf32>
    %196 = arith.divf %194, %195 : vector<32x1xf32>
    %197 = vector.broadcast %189 : vector<32x1xf32> to vector<32x32xf32>
    %198 = arith.subf %183, %197 : vector<32x32xf32>
    %cst_69 = arith.constant 9.99999974E-6 : f32
    %199 = vector.broadcast %cst_69 : f32 to vector<32x1xf32>
    %200 = arith.addf %196, %199 : vector<32x1xf32>
    %201 = math.rsqrt %200 : vector<32x1xf32>
    %202 = vector.broadcast %201 : vector<32x1xf32> to vector<32x32xf32>
    %203 = arith.mulf %198, %202 : vector<32x32xf32>
    %c0_70 = arith.constant 0 : index
    %c0_71 = arith.constant 0 : index
    %204 = vector.load %arg11[%c0_70, %c0_71] : memref<64x32xf32, #tpu.memory_space<vmem>>, vector<64x32xf32>
    %205 = vector.broadcast %1 : vector<1x32xf32> to vector<64x32xf32>
    %206 = arith.mulf %204, %205 : vector<64x32xf32>
    %cst_72 = arith.constant dense<0.000000e+00> : vector<64xf32>
    %207 = vector.multi_reduction <add>, %206, %cst_72 [1] : vector<64x32xf32> to vector<64xf32>
    %208 = vector.shape_cast %207 : vector<64xf32> to vector<64x1xf32>
    %c0_73 = arith.constant 0 : index
    %c0_74 = arith.constant 0 : index
    %209 = vector.load %arg12[%c0_73, %c0_74] : memref<64x1xf32, #tpu.memory_space<vmem>>, vector<64x1xf32>
    %210 = arith.addf %208, %209 : vector<64x1xf32>
    %211 = vector.extract_strided_slice %210 {offsets = [0, 0], sizes = [32, 1], strides = [1, 1]} : vector<64x1xf32> to vector<32x1xf32>
    %212 = vector.extract_strided_slice %210 {offsets = [32, 0], sizes = [32, 1], strides = [1, 1]} : vector<64x1xf32> to vector<32x1xf32>
    %cst_75 = arith.constant dense<0.000000e+00> : vector<32xf32>
    %213 = vector.multi_reduction <add>, %203, %cst_75 [1] : vector<32x32xf32> to vector<32xf32>
    %214 = vector.shape_cast %213 : vector<32xf32> to vector<32x1xf32>
    %cst_76 = arith.constant 3.200000e+01 : f32
    %215 = vector.broadcast %cst_76 : f32 to vector<32x1xf32>
    %216 = arith.divf %214, %215 : vector<32x1xf32>
    %217 = vector.broadcast %216 : vector<32x1xf32> to vector<32x32xf32>
    %218 = arith.subf %203, %217 : vector<32x32xf32>
    %219 = arith.mulf %218, %218 : vector<32x32xf32>
    %cst_77 = arith.constant dense<0.000000e+00> : vector<32xf32>
    %220 = vector.multi_reduction <add>, %219, %cst_77 [1] : vector<32x32xf32> to vector<32xf32>
    %221 = vector.shape_cast %220 : vector<32xf32> to vector<32x1xf32>
    %cst_78 = arith.constant 3.200000e+01 : f32
    %222 = vector.broadcast %cst_78 : f32 to vector<32x1xf32>
    %223 = arith.divf %221, %222 : vector<32x1xf32>
    %224 = vector.broadcast %216 : vector<32x1xf32> to vector<32x32xf32>
    %225 = arith.subf %203, %224 : vector<32x32xf32>
    %cst_79 = arith.constant 9.99999974E-6 : f32
    %226 = vector.broadcast %cst_79 : f32 to vector<32x1xf32>
    %227 = arith.addf %223, %226 : vector<32x1xf32>
    %228 = math.rsqrt %227 : vector<32x1xf32>
    %229 = vector.broadcast %228 : vector<32x1xf32> to vector<32x32xf32>
    %230 = arith.mulf %225, %229 : vector<32x32xf32>
    %231 = vector.broadcast %212 : vector<32x1xf32> to vector<32x32xf32>
    %232 = arith.mulf %230, %231 : vector<32x32xf32>
    %233 = vector.broadcast %211 : vector<32x1xf32> to vector<32x32xf32>
    %234 = arith.addf %232, %233 : vector<32x32xf32>
    %cst_80 = arith.constant 0.000000e+00 : f32
    %235 = vector.broadcast %cst_80 : f32 to vector<32x32xf32>
    %236 = arith.maximumf %234, %235 : vector<32x32xf32>
    %237 = arith.addf %236, %185 : vector<32x32xf32>
    %c0_81 = arith.constant 0 : index
    %c0_82 = arith.constant 0 : index
    %c0_83 = arith.constant 0 : index
    %238 = vector.load %arg14[%c0_81, %c0_82, %c0_83] : memref<5x32x32xf32, #tpu.memory_space<vmem>>, vector<5x32x32xf32>
    %239 = vector.extract_strided_slice %237 {offsets = [0, 2], sizes = [32, 1], strides = [1, 1]} : vector<32x32xf32> to vector<32x1xf32>
    %240 = vector.extract_strided_slice %237 {offsets = [0, 1], sizes = [32, 1], strides = [1, 1]} : vector<32x32xf32> to vector<32x1xf32>
    %241 = vector.extract_strided_slice %237 {offsets = [0, 30], sizes = [32, 1], strides = [1, 1]} : vector<32x32xf32> to vector<32x1xf32>
    %242 = vector.extract_strided_slice %237 {offsets = [0, 29], sizes = [32, 1], strides = [1, 1]} : vector<32x32xf32> to vector<32x1xf32>
    %243 = tpu.concatenate %239, %240, %237, %241, %242 in 1 : vector<32x1xf32>, vector<32x1xf32>, vector<32x32xf32>, vector<32x1xf32>, vector<32x1xf32> -> vector<32x36xf32>
    %244 = vector.extract_strided_slice %238 {offsets = [0, 0, 0], sizes = [1, 32, 32], strides = [1, 1, 1]} : vector<5x32x32xf32> to vector<1x32x32xf32>
    %245 = vector.shape_cast %244 : vector<1x32x32xf32> to vector<32x32xf32>
    %246 = vector.extract_strided_slice %238 {offsets = [1, 0, 0], sizes = [1, 32, 32], strides = [1, 1, 1]} : vector<5x32x32xf32> to vector<1x32x32xf32>
    %247 = vector.shape_cast %246 : vector<1x32x32xf32> to vector<32x32xf32>
    %248 = vector.extract_strided_slice %238 {offsets = [2, 0, 0], sizes = [1, 32, 32], strides = [1, 1, 1]} : vector<5x32x32xf32> to vector<1x32x32xf32>
    %249 = vector.shape_cast %248 : vector<1x32x32xf32> to vector<32x32xf32>
    %250 = vector.extract_strided_slice %238 {offsets = [3, 0, 0], sizes = [1, 32, 32], strides = [1, 1, 1]} : vector<5x32x32xf32> to vector<1x32x32xf32>
    %251 = vector.shape_cast %250 : vector<1x32x32xf32> to vector<32x32xf32>
    %252 = vector.extract_strided_slice %238 {offsets = [4, 0, 0], sizes = [1, 32, 32], strides = [1, 1, 1]} : vector<5x32x32xf32> to vector<1x32x32xf32>
    %253 = vector.shape_cast %252 : vector<1x32x32xf32> to vector<32x32xf32>
    %c0_84 = arith.constant 0 : index
    %c0_85 = arith.constant 0 : index
    %254 = vector.load %arg15[%c0_84, %c0_85] : memref<32x1xf32, #tpu.memory_space<vmem>>, vector<32x1xf32>
    %255 = vector.extract_strided_slice %243 {offsets = [0, 0], sizes = [32, 32], strides = [1, 1]} : vector<32x36xf32> to vector<32x32xf32>
    %cst_86 = arith.constant dense<0.000000e+00> : vector<32x32xf32>
    %256 = tpu.matmul %245, %255, %cst_86 {dimension_numbers = #tpu.dot_dimension_numbers<[1], [0], [0], [1], [0, 0, 1, 1], [], []>} : vector<32x32xf32>, vector<32x32xf32>, vector<32x32xf32> -> vector<32x32xf32>
    %257 = vector.extract_strided_slice %243 {offsets = [0, 1], sizes = [32, 32], strides = [1, 1]} : vector<32x36xf32> to vector<32x32xf32>
    %cst_87 = arith.constant dense<0.000000e+00> : vector<32x32xf32>
    %258 = tpu.matmul %247, %257, %cst_87 {dimension_numbers = #tpu.dot_dimension_numbers<[1], [0], [0], [1], [0, 0, 1, 1], [], []>} : vector<32x32xf32>, vector<32x32xf32>, vector<32x32xf32> -> vector<32x32xf32>
    %259 = arith.addf %256, %258 : vector<32x32xf32>
    %260 = vector.extract_strided_slice %243 {offsets = [0, 2], sizes = [32, 32], strides = [1, 1]} : vector<32x36xf32> to vector<32x32xf32>
    %cst_88 = arith.constant dense<0.000000e+00> : vector<32x32xf32>
    %261 = tpu.matmul %249, %260, %cst_88 {dimension_numbers = #tpu.dot_dimension_numbers<[1], [0], [0], [1], [0, 0, 1, 1], [], []>} : vector<32x32xf32>, vector<32x32xf32>, vector<32x32xf32> -> vector<32x32xf32>
    %262 = arith.addf %259, %261 : vector<32x32xf32>
    %263 = vector.extract_strided_slice %243 {offsets = [0, 3], sizes = [32, 32], strides = [1, 1]} : vector<32x36xf32> to vector<32x32xf32>
    %cst_89 = arith.constant dense<0.000000e+00> : vector<32x32xf32>
    %264 = tpu.matmul %251, %263, %cst_89 {dimension_numbers = #tpu.dot_dimension_numbers<[1], [0], [0], [1], [0, 0, 1, 1], [], []>} : vector<32x32xf32>, vector<32x32xf32>, vector<32x32xf32> -> vector<32x32xf32>
    %265 = arith.addf %262, %264 : vector<32x32xf32>
    %266 = vector.extract_strided_slice %243 {offsets = [0, 4], sizes = [32, 32], strides = [1, 1]} : vector<32x36xf32> to vector<32x32xf32>
    %cst_90 = arith.constant dense<0.000000e+00> : vector<32x32xf32>
    %267 = tpu.matmul %253, %266, %cst_90 {dimension_numbers = #tpu.dot_dimension_numbers<[1], [0], [0], [1], [0, 0, 1, 1], [], []>} : vector<32x32xf32>, vector<32x32xf32>, vector<32x32xf32> -> vector<32x32xf32>
    %268 = arith.addf %265, %267 : vector<32x32xf32>
    %269 = vector.broadcast %254 : vector<32x1xf32> to vector<32x32xf32>
    %270 = arith.addf %268, %269 : vector<32x32xf32>
    %cst_91 = arith.constant dense<0.000000e+00> : vector<32xf32>
    %271 = vector.multi_reduction <add>, %270, %cst_91 [1] : vector<32x32xf32> to vector<32xf32>
    %272 = vector.shape_cast %271 : vector<32xf32> to vector<32x1xf32>
    %cst_92 = arith.constant 3.200000e+01 : f32
    %273 = vector.broadcast %cst_92 : f32 to vector<32x1xf32>
    %274 = arith.divf %272, %273 : vector<32x1xf32>
    %275 = vector.broadcast %274 : vector<32x1xf32> to vector<32x32xf32>
    %276 = arith.subf %270, %275 : vector<32x32xf32>
    %277 = arith.mulf %276, %276 : vector<32x32xf32>
    %cst_93 = arith.constant dense<0.000000e+00> : vector<32xf32>
    %278 = vector.multi_reduction <add>, %277, %cst_93 [1] : vector<32x32xf32> to vector<32xf32>
    %279 = vector.shape_cast %278 : vector<32xf32> to vector<32x1xf32>
    %cst_94 = arith.constant 3.200000e+01 : f32
    %280 = vector.broadcast %cst_94 : f32 to vector<32x1xf32>
    %281 = arith.divf %279, %280 : vector<32x1xf32>
    %282 = vector.broadcast %274 : vector<32x1xf32> to vector<32x32xf32>
    %283 = arith.subf %270, %282 : vector<32x32xf32>
    %cst_95 = arith.constant 9.99999974E-6 : f32
    %284 = vector.broadcast %cst_95 : f32 to vector<32x1xf32>
    %285 = arith.addf %281, %284 : vector<32x1xf32>
    %286 = math.rsqrt %285 : vector<32x1xf32>
    %287 = vector.broadcast %286 : vector<32x1xf32> to vector<32x32xf32>
    %288 = arith.mulf %283, %287 : vector<32x32xf32>
    %c0_96 = arith.constant 0 : index
    %c0_97 = arith.constant 0 : index
    %289 = vector.load %arg18[%c0_96, %c0_97] : memref<64x32xf32, #tpu.memory_space<vmem>>, vector<64x32xf32>
    %290 = vector.broadcast %1 : vector<1x32xf32> to vector<64x32xf32>
    %291 = arith.mulf %289, %290 : vector<64x32xf32>
    %cst_98 = arith.constant dense<0.000000e+00> : vector<64xf32>
    %292 = vector.multi_reduction <add>, %291, %cst_98 [1] : vector<64x32xf32> to vector<64xf32>
    %293 = vector.shape_cast %292 : vector<64xf32> to vector<64x1xf32>
    %c0_99 = arith.constant 0 : index
    %c0_100 = arith.constant 0 : index
    %294 = vector.load %arg19[%c0_99, %c0_100] : memref<64x1xf32, #tpu.memory_space<vmem>>, vector<64x1xf32>
    %295 = arith.addf %293, %294 : vector<64x1xf32>
    %296 = vector.extract_strided_slice %295 {offsets = [0, 0], sizes = [32, 1], strides = [1, 1]} : vector<64x1xf32> to vector<32x1xf32>
    %297 = vector.extract_strided_slice %295 {offsets = [32, 0], sizes = [32, 1], strides = [1, 1]} : vector<64x1xf32> to vector<32x1xf32>
    %cst_101 = arith.constant dense<0.000000e+00> : vector<32xf32>
    %298 = vector.multi_reduction <add>, %288, %cst_101 [1] : vector<32x32xf32> to vector<32xf32>
    %299 = vector.shape_cast %298 : vector<32xf32> to vector<32x1xf32>
    %cst_102 = arith.constant 3.200000e+01 : f32
    %300 = vector.broadcast %cst_102 : f32 to vector<32x1xf32>
    %301 = arith.divf %299, %300 : vector<32x1xf32>
    %302 = vector.broadcast %301 : vector<32x1xf32> to vector<32x32xf32>
    %303 = arith.subf %288, %302 : vector<32x32xf32>
    %304 = arith.mulf %303, %303 : vector<32x32xf32>
    %cst_103 = arith.constant dense<0.000000e+00> : vector<32xf32>
    %305 = vector.multi_reduction <add>, %304, %cst_103 [1] : vector<32x32xf32> to vector<32xf32>
    %306 = vector.shape_cast %305 : vector<32xf32> to vector<32x1xf32>
    %cst_104 = arith.constant 3.200000e+01 : f32
    %307 = vector.broadcast %cst_104 : f32 to vector<32x1xf32>
    %308 = arith.divf %306, %307 : vector<32x1xf32>
    %309 = vector.broadcast %301 : vector<32x1xf32> to vector<32x32xf32>
    %310 = arith.subf %288, %309 : vector<32x32xf32>
    %cst_105 = arith.constant 9.99999974E-6 : f32
    %311 = vector.broadcast %cst_105 : f32 to vector<32x1xf32>
    %312 = arith.addf %308, %311 : vector<32x1xf32>
    %313 = math.rsqrt %312 : vector<32x1xf32>
    %314 = vector.broadcast %313 : vector<32x1xf32> to vector<32x32xf32>
    %315 = arith.mulf %310, %314 : vector<32x32xf32>
    %316 = vector.broadcast %297 : vector<32x1xf32> to vector<32x32xf32>
    %317 = arith.mulf %315, %316 : vector<32x32xf32>
    %318 = vector.broadcast %296 : vector<32x1xf32> to vector<32x32xf32>
    %319 = arith.addf %317, %318 : vector<32x32xf32>
    %cst_106 = arith.constant 0.000000e+00 : f32
    %320 = vector.broadcast %cst_106 : f32 to vector<32x32xf32>
    %321 = arith.maximumf %319, %320 : vector<32x32xf32>
    %c0_107 = arith.constant 0 : index
    %c0_108 = arith.constant 0 : index
    %c0_109 = arith.constant 0 : index
    %c0_110 = arith.constant 0 : index
    %322 = vector.load %arg16[%c0_107, %c0_108, %c0_109, %c0_110] : memref<1x5x32x32xf32, #tpu.memory_space<vmem>>, vector<1x5x32x32xf32>
    %c0_111 = arith.constant 0 : index
    %c0_112 = arith.constant 0 : index
    %c0_113 = arith.constant 0 : index
    %323 = vector.load %arg17[%c0_111, %c0_112, %c0_113] : memref<1x32x1xf32, #tpu.memory_space<vmem>>, vector<1x32x1xf32>
    %324 = vector.extract_strided_slice %321 {offsets = [0, 2], sizes = [32, 1], strides = [1, 1]} : vector<32x32xf32> to vector<32x1xf32>
    %325 = vector.extract_strided_slice %321 {offsets = [0, 1], sizes = [32, 1], strides = [1, 1]} : vector<32x32xf32> to vector<32x1xf32>
    %326 = vector.extract_strided_slice %321 {offsets = [0, 30], sizes = [32, 1], strides = [1, 1]} : vector<32x32xf32> to vector<32x1xf32>
    %327 = vector.extract_strided_slice %321 {offsets = [0, 29], sizes = [32, 1], strides = [1, 1]} : vector<32x32xf32> to vector<32x1xf32>
    %328 = tpu.concatenate %324, %325, %321, %326, %327 in 1 : vector<32x1xf32>, vector<32x1xf32>, vector<32x32xf32>, vector<32x1xf32>, vector<32x1xf32> -> vector<32x36xf32>
    %329 = vector.extract_strided_slice %322 {offsets = [0, 0, 0, 0], sizes = [1, 1, 32, 32], strides = [1, 1, 1, 1]} : vector<1x5x32x32xf32> to vector<1x1x32x32xf32>
    %330 = vector.shape_cast %329 : vector<1x1x32x32xf32> to vector<32x32xf32>
    %331 = vector.extract_strided_slice %322 {offsets = [0, 1, 0, 0], sizes = [1, 1, 32, 32], strides = [1, 1, 1, 1]} : vector<1x5x32x32xf32> to vector<1x1x32x32xf32>
    %332 = vector.shape_cast %331 : vector<1x1x32x32xf32> to vector<32x32xf32>
    %333 = vector.extract_strided_slice %322 {offsets = [0, 2, 0, 0], sizes = [1, 1, 32, 32], strides = [1, 1, 1, 1]} : vector<1x5x32x32xf32> to vector<1x1x32x32xf32>
    %334 = vector.shape_cast %333 : vector<1x1x32x32xf32> to vector<32x32xf32>
    %335 = vector.extract_strided_slice %322 {offsets = [0, 3, 0, 0], sizes = [1, 1, 32, 32], strides = [1, 1, 1, 1]} : vector<1x5x32x32xf32> to vector<1x1x32x32xf32>
    %336 = vector.shape_cast %335 : vector<1x1x32x32xf32> to vector<32x32xf32>
    %337 = vector.extract_strided_slice %322 {offsets = [0, 4, 0, 0], sizes = [1, 1, 32, 32], strides = [1, 1, 1, 1]} : vector<1x5x32x32xf32> to vector<1x1x32x32xf32>
    %338 = vector.shape_cast %337 : vector<1x1x32x32xf32> to vector<32x32xf32>
    %339 = vector.shape_cast %323 : vector<1x32x1xf32> to vector<32x1xf32>
    %340 = vector.extract_strided_slice %328 {offsets = [0, 0], sizes = [32, 32], strides = [1, 1]} : vector<32x36xf32> to vector<32x32xf32>
    %cst_114 = arith.constant dense<0.000000e+00> : vector<32x32xf32>
    %341 = tpu.matmul %330, %340, %cst_114 {dimension_numbers = #tpu.dot_dimension_numbers<[1], [0], [0], [1], [0, 0, 1, 1], [], []>} : vector<32x32xf32>, vector<32x32xf32>, vector<32x32xf32> -> vector<32x32xf32>
    %342 = vector.extract_strided_slice %328 {offsets = [0, 1], sizes = [32, 32], strides = [1, 1]} : vector<32x36xf32> to vector<32x32xf32>
    %cst_115 = arith.constant dense<0.000000e+00> : vector<32x32xf32>
    %343 = tpu.matmul %332, %342, %cst_115 {dimension_numbers = #tpu.dot_dimension_numbers<[1], [0], [0], [1], [0, 0, 1, 1], [], []>} : vector<32x32xf32>, vector<32x32xf32>, vector<32x32xf32> -> vector<32x32xf32>
    %344 = arith.addf %341, %343 : vector<32x32xf32>
    %345 = vector.extract_strided_slice %328 {offsets = [0, 2], sizes = [32, 32], strides = [1, 1]} : vector<32x36xf32> to vector<32x32xf32>
    %cst_116 = arith.constant dense<0.000000e+00> : vector<32x32xf32>
    %346 = tpu.matmul %334, %345, %cst_116 {dimension_numbers = #tpu.dot_dimension_numbers<[1], [0], [0], [1], [0, 0, 1, 1], [], []>} : vector<32x32xf32>, vector<32x32xf32>, vector<32x32xf32> -> vector<32x32xf32>
    %347 = arith.addf %344, %346 : vector<32x32xf32>
    %348 = vector.extract_strided_slice %328 {offsets = [0, 3], sizes = [32, 32], strides = [1, 1]} : vector<32x36xf32> to vector<32x32xf32>
    %cst_117 = arith.constant dense<0.000000e+00> : vector<32x32xf32>
    %349 = tpu.matmul %336, %348, %cst_117 {dimension_numbers = #tpu.dot_dimension_numbers<[1], [0], [0], [1], [0, 0, 1, 1], [], []>} : vector<32x32xf32>, vector<32x32xf32>, vector<32x32xf32> -> vector<32x32xf32>
    %350 = arith.addf %347, %349 : vector<32x32xf32>
    %351 = vector.extract_strided_slice %328 {offsets = [0, 4], sizes = [32, 32], strides = [1, 1]} : vector<32x36xf32> to vector<32x32xf32>
    %cst_118 = arith.constant dense<0.000000e+00> : vector<32x32xf32>
    %352 = tpu.matmul %338, %351, %cst_118 {dimension_numbers = #tpu.dot_dimension_numbers<[1], [0], [0], [1], [0, 0, 1, 1], [], []>} : vector<32x32xf32>, vector<32x32xf32>, vector<32x32xf32> -> vector<32x32xf32>
    %353 = arith.addf %350, %352 : vector<32x32xf32>
    %354 = vector.broadcast %339 : vector<32x1xf32> to vector<32x32xf32>
    %355 = arith.addf %353, %354 : vector<32x32xf32>
    %cst_119 = arith.constant dense<0.000000e+00> : vector<32xf32>
    %356 = vector.multi_reduction <add>, %355, %cst_119 [1] : vector<32x32xf32> to vector<32xf32>
    %357 = vector.shape_cast %356 : vector<32xf32> to vector<32x1xf32>
    %cst_120 = arith.constant 3.200000e+01 : f32
    %358 = vector.broadcast %cst_120 : f32 to vector<32x1xf32>
    %359 = arith.divf %357, %358 : vector<32x1xf32>
    %360 = vector.broadcast %359 : vector<32x1xf32> to vector<32x32xf32>
    %361 = arith.subf %355, %360 : vector<32x32xf32>
    %362 = arith.mulf %361, %361 : vector<32x32xf32>
    %cst_121 = arith.constant dense<0.000000e+00> : vector<32xf32>
    %363 = vector.multi_reduction <add>, %362, %cst_121 [1] : vector<32x32xf32> to vector<32xf32>
    %364 = vector.shape_cast %363 : vector<32xf32> to vector<32x1xf32>
    %cst_122 = arith.constant 3.200000e+01 : f32
    %365 = vector.broadcast %cst_122 : f32 to vector<32x1xf32>
    %366 = arith.divf %364, %365 : vector<32x1xf32>
    %367 = vector.broadcast %359 : vector<32x1xf32> to vector<32x32xf32>
    %368 = arith.subf %355, %367 : vector<32x32xf32>
    %cst_123 = arith.constant 9.99999974E-6 : f32
    %369 = vector.broadcast %cst_123 : f32 to vector<32x1xf32>
    %370 = arith.addf %366, %369 : vector<32x1xf32>
    %371 = math.rsqrt %370 : vector<32x1xf32>
    %372 = vector.broadcast %371 : vector<32x1xf32> to vector<32x32xf32>
    %373 = arith.mulf %368, %372 : vector<32x32xf32>
    %c0_124 = arith.constant 0 : index
    %c0_125 = arith.constant 0 : index
    %374 = vector.load %arg20[%c0_124, %c0_125] : memref<64x32xf32, #tpu.memory_space<vmem>>, vector<64x32xf32>
    %375 = vector.broadcast %1 : vector<1x32xf32> to vector<64x32xf32>
    %376 = arith.mulf %374, %375 : vector<64x32xf32>
    %cst_126 = arith.constant dense<0.000000e+00> : vector<64xf32>
    %377 = vector.multi_reduction <add>, %376, %cst_126 [1] : vector<64x32xf32> to vector<64xf32>
    %378 = vector.shape_cast %377 : vector<64xf32> to vector<64x1xf32>
    %c0_127 = arith.constant 0 : index
    %c0_128 = arith.constant 0 : index
    %379 = vector.load %arg21[%c0_127, %c0_128] : memref<64x1xf32, #tpu.memory_space<vmem>>, vector<64x1xf32>
    %380 = arith.addf %378, %379 : vector<64x1xf32>
    %381 = vector.extract_strided_slice %380 {offsets = [0, 0], sizes = [32, 1], strides = [1, 1]} : vector<64x1xf32> to vector<32x1xf32>
    %382 = vector.extract_strided_slice %380 {offsets = [32, 0], sizes = [32, 1], strides = [1, 1]} : vector<64x1xf32> to vector<32x1xf32>
    %cst_129 = arith.constant dense<0.000000e+00> : vector<32xf32>
    %383 = vector.multi_reduction <add>, %373, %cst_129 [1] : vector<32x32xf32> to vector<32xf32>
    %384 = vector.shape_cast %383 : vector<32xf32> to vector<32x1xf32>
    %cst_130 = arith.constant 3.200000e+01 : f32
    %385 = vector.broadcast %cst_130 : f32 to vector<32x1xf32>
    %386 = arith.divf %384, %385 : vector<32x1xf32>
    %387 = vector.broadcast %386 : vector<32x1xf32> to vector<32x32xf32>
    %388 = arith.subf %373, %387 : vector<32x32xf32>
    %389 = arith.mulf %388, %388 : vector<32x32xf32>
    %cst_131 = arith.constant dense<0.000000e+00> : vector<32xf32>
    %390 = vector.multi_reduction <add>, %389, %cst_131 [1] : vector<32x32xf32> to vector<32xf32>
    %391 = vector.shape_cast %390 : vector<32xf32> to vector<32x1xf32>
    %cst_132 = arith.constant 3.200000e+01 : f32
    %392 = vector.broadcast %cst_132 : f32 to vector<32x1xf32>
    %393 = arith.divf %391, %392 : vector<32x1xf32>
    %394 = vector.broadcast %386 : vector<32x1xf32> to vector<32x32xf32>
    %395 = arith.subf %373, %394 : vector<32x32xf32>
    %cst_133 = arith.constant 9.99999974E-6 : f32
    %396 = vector.broadcast %cst_133 : f32 to vector<32x1xf32>
    %397 = arith.addf %393, %396 : vector<32x1xf32>
    %398 = math.rsqrt %397 : vector<32x1xf32>
    %399 = vector.broadcast %398 : vector<32x1xf32> to vector<32x32xf32>
    %400 = arith.mulf %395, %399 : vector<32x32xf32>
    %401 = vector.broadcast %382 : vector<32x1xf32> to vector<32x32xf32>
    %402 = arith.mulf %400, %401 : vector<32x32xf32>
    %403 = vector.broadcast %381 : vector<32x1xf32> to vector<32x32xf32>
    %404 = arith.addf %402, %403 : vector<32x32xf32>
    %cst_134 = arith.constant 0.000000e+00 : f32
    %405 = vector.broadcast %cst_134 : f32 to vector<32x32xf32>
    %406 = arith.maximumf %404, %405 : vector<32x32xf32>
    %407 = arith.addf %406, %237 : vector<32x32xf32>
    %c0_135 = arith.constant 0 : index
    %c0_136 = arith.constant 0 : index
    %408 = vector.load %arg23[%c0_135, %c0_136] : memref<4x32xf32, #tpu.memory_space<vmem>>, vector<4x32xf32>
    %cst_137 = arith.constant dense<0.000000e+00> : vector<4x32xf32>
    %409 = tpu.matmul %408, %407, %cst_137 {dimension_numbers = #tpu.dot_dimension_numbers<[1], [0], [0], [1], [0, 0, 1, 1], [], []>} : vector<4x32xf32>, vector<32x32xf32>, vector<4x32xf32> -> vector<4x32xf32>
    %c0_138 = arith.constant 0 : index
    %c0_139 = arith.constant 0 : index
    %410 = vector.load %arg24[%c0_138, %c0_139] : memref<4x1xf32, #tpu.memory_space<vmem>>, vector<4x1xf32>
    %411 = vector.broadcast %410 : vector<4x1xf32> to vector<4x32xf32>
    %412 = arith.addf %409, %411 : vector<4x32xf32>
    %c0_140 = arith.constant 0 : index
    %c0_141 = arith.constant 0 : index
    %c0_142 = arith.constant 0 : index
    %413 = vector.load %arg25[%c0_140, %c0_141, %c0_142] : memref<1x4x32xf32, #tpu.memory_space<vmem>>, vector<1x4x32xf32>
    %414 = vector.shape_cast %413 : vector<1x4x32xf32> to vector<4x32xf32>
    %415 = vector.shape_cast %412 : vector<4x32xf32> to vector<1x4x32xf32>
    tpu.vector_store %arg25[%c0_140, %c0_141, %c0_142], %415 {strides = array<i32>} : memref<1x4x32xf32, #tpu.memory_space<vmem>>, vector<1x4x32xf32>,
    return
  }
  func.func @transform_0(%arg0: i32) -> (i32, i32, i32) {
    %c0_i32 = arith.constant 0 : i32
    %c0_i32_0 = arith.constant 0 : i32
    %c0_i32_1 = arith.constant 0 : i32
    return %arg0, %c0_i32, %c0_i32_0 : i32, i32, i32
  }
  func.func @transform_1(%arg0: i32) -> (i32, i32, i32) {
    %c0_i32 = arith.constant 0 : i32
    %c0_i32_0 = arith.constant 0 : i32
    %c0_i32_1 = arith.constant 0 : i32
    return %arg0, %c0_i32, %c0_i32_0 : i32, i32, i32
  }
  func.func @transform_2(%arg0: i32) -> (i32, i32) {
    %c0_i32 = arith.constant 0 : i32
    %c0_i32_0 = arith.constant 0 : i32
    %c0_i32_1 = arith.constant 0 : i32
    return %c0_i32, %c0_i32_0 : i32, i32
  }
  func.func @transform_3(%arg0: i32) -> (i32, i32) {
    %c0_i32 = arith.constant 0 : i32
    %c0_i32_0 = arith.constant 0 : i32
    %c0_i32_1 = arith.constant 0 : i32
    return %c0_i32, %c0_i32_0 : i32, i32
  }
  func.func @transform_4(%arg0: i32) -> (i32, i32, i32) {
    %c0_i32 = arith.constant 0 : i32
    %c0_i32_0 = arith.constant 0 : i32
    %c0_i32_1 = arith.constant 0 : i32
    %c0_i32_2 = arith.constant 0 : i32
    return %c0_i32, %c0_i32_0, %c0_i32_1 : i32, i32, i32
  }
  func.func @transform_5(%arg0: i32) -> (i32, i32) {
    %c0_i32 = arith.constant 0 : i32
    %c0_i32_0 = arith.constant 0 : i32
    %c0_i32_1 = arith.constant 0 : i32
    return %c0_i32, %c0_i32_0 : i32, i32
  }
  func.func @transform_6(%arg0: i32) -> (i32, i32, i32, i32) {
    %c0_i32 = arith.constant 0 : i32
    %c0_i32_0 = arith.constant 0 : i32
    %c0_i32_1 = arith.constant 0 : i32
    %c0_i32_2 = arith.constant 0 : i32
    %c0_i32_3 = arith.constant 0 : i32
    return %c0_i32, %c0_i32_0, %c0_i32_1, %c0_i32_2 : i32, i32, i32, i32
  }
  func.func @transform_7(%arg0: i32) -> (i32, i32, i32) {
    %c0_i32 = arith.constant 0 : i32
    %c0_i32_0 = arith.constant 0 : i32
    %c0_i32_1 = arith.constant 0 : i32
    %c0_i32_2 = arith.constant 0 : i32
    return %c0_i32, %c0_i32_0, %c0_i32_1 : i32, i32, i32
  }
  func.func @transform_8(%arg0: i32) -> (i32, i32) {
    %c0_i32 = arith.constant 0 : i32
    %c0_i32_0 = arith.constant 0 : i32
    %c0_i32_1 = arith.constant 0 : i32
    return %c0_i32, %c0_i32_0 : i32, i32
  }
  func.func @transform_9(%arg0: i32) -> (i32, i32) {
    %c0_i32 = arith.constant 0 : i32
    %c0_i32_0 = arith.constant 0 : i32
    %c0_i32_1 = arith.constant 0 : i32
    return %c0_i32, %c0_i32_0 : i32, i32
  }
  func.func @transform_10(%arg0: i32) -> (i32, i32) {
    %c0_i32 = arith.constant 0 : i32
    %c0_i32_0 = arith.constant 0 : i32
    %c0_i32_1 = arith.constant 0 : i32
    return %c0_i32, %c0_i32_0 : i32, i32
  }
  func.func @transform_11(%arg0: i32) -> (i32, i32) {
    %c0_i32 = arith.constant 0 : i32
    %c0_i32_0 = arith.constant 0 : i32
    %c0_i32_1 = arith.constant 0 : i32
    return %c0_i32, %c0_i32_0 : i32, i32
  }
  func.func @transform_12(%arg0: i32) -> (i32, i32, i32) {
    %c0_i32 = arith.constant 0 : i32
    %c0_i32_0 = arith.constant 0 : i32
    %c0_i32_1 = arith.constant 0 : i32
    %c0_i32_2 = arith.constant 0 : i32
    return %c0_i32, %c0_i32_0, %c0_i32_1 : i32, i32, i32
  }
  func.func @transform_13(%arg0: i32) -> (i32, i32, i32) {
    %c0_i32 = arith.constant 0 : i32
    %c0_i32_0 = arith.constant 0 : i32
    %c0_i32_1 = arith.constant 0 : i32
    %c0_i32_2 = arith.constant 0 : i32
    return %c0_i32, %c0_i32_0, %c0_i32_1 : i32, i32, i32
  }
  func.func @transform_14(%arg0: i32) -> (i32, i32) {
    %c0_i32 = arith.constant 0 : i32
    %c0_i32_0 = arith.constant 0 : i32
    %c0_i32_1 = arith.constant 0 : i32
    return %c0_i32, %c0_i32_0 : i32, i32
  }
  func.func @transform_15(%arg0: i32) -> (i32, i32, i32, i32) {
    %c0_i32 = arith.constant 0 : i32
    %c0_i32_0 = arith.constant 0 : i32
    %c0_i32_1 = arith.constant 0 : i32
    %c0_i32_2 = arith.constant 0 : i32
    %c0_i32_3 = arith.constant 0 : i32
    return %c0_i32, %c0_i32_0, %c0_i32_1, %c0_i32_2 : i32, i32, i32, i32
  }
  func.func @transform_16(%arg0: i32) -> (i32, i32, i32) {
    %c0_i32 = arith.constant 0 : i32
    %c0_i32_0 = arith.constant 0 : i32
    %c0_i32_1 = arith.constant 0 : i32
    %c0_i32_2 = arith.constant 0 : i32
    return %c0_i32, %c0_i32_0, %c0_i32_1 : i32, i32, i32
  }
  func.func @transform_17(%arg0: i32) -> (i32, i32) {
    %c0_i32 = arith.constant 0 : i32
    %c0_i32_0 = arith.constant 0 : i32
    %c0_i32_1 = arith.constant 0 : i32
    return %c0_i32, %c0_i32_0 : i32, i32
  }
  func.func @transform_18(%arg0: i32) -> (i32, i32) {
    %c0_i32 = arith.constant 0 : i32
    %c0_i32_0 = arith.constant 0 : i32
    %c0_i32_1 = arith.constant 0 : i32
    return %c0_i32, %c0_i32_0 : i32, i32
  }
  func.func @transform_19(%arg0: i32) -> (i32, i32) {
    %c0_i32 = arith.constant 0 : i32
    %c0_i32_0 = arith.constant 0 : i32
    %c0_i32_1 = arith.constant 0 : i32
    return %c0_i32, %c0_i32_0 : i32, i32
  }
  func.func @transform_20(%arg0: i32) -> (i32, i32) {
    %c0_i32 = arith.constant 0 : i32
    %c0_i32_0 = arith.constant 0 : i32
    %c0_i32_1 = arith.constant 0 : i32
    return %c0_i32, %c0_i32_0 : i32, i32
  }
  func.func @transform_21(%arg0: i32) -> (i32, i32, i32) {
    %c0_i32 = arith.constant 0 : i32
    %c0_i32_0 = arith.constant 0 : i32
    %c0_i32_1 = arith.constant 0 : i32
    %c0_i32_2 = arith.constant 0 : i32
    return %c0_i32, %c0_i32_0, %c0_i32_1 : i32, i32, i32
  }
  func.func @transform_22(%arg0: i32) -> (i32, i32) {
    %c0_i32 = arith.constant 0 : i32
    %c0_i32_0 = arith.constant 0 : i32
    %c0_i32_1 = arith.constant 0 : i32
    return %c0_i32, %c0_i32_0 : i32, i32
  }
  func.func @transform_23(%arg0: i32) -> (i32, i32) {
    %c0_i32 = arith.constant 0 : i32
    %c0_i32_0 = arith.constant 0 : i32
    %c0_i32_1 = arith.constant 0 : i32
    return %c0_i32, %c0_i32_0 : i32, i32
  }
  func.func @transform_24(%arg0: i32) -> (i32, i32, i32) {
    %c0_i32 = arith.constant 0 : i32
    %c0_i32_0 = arith.constant 0 : i32
    %c0_i32_1 = arith.constant 0 : i32
    return %arg0, %c0_i32, %c0_i32_0 : i32, i32, i32
  }
}

</mosaic_0001>

<bundles_post_ra>
// kernel: decoder_forward.1
= control target key start
LH: loop header
LB: loop body
LE: loop exit
PB: predicated region body
PF: predicated region fallthrough
CT: control target
= control target key end

     0   :  { %s6384_s0 = inlined_call_operand.vmem [shape: f32[2,16,16], index: 0, kind: input, shape index: {}]   ;;  %s6385_s1 = inlined_call_operand.vmem [shape: f32[2,1,32], index: 1, kind: input, shape index: {}]   ;;  %s6386_s2 = inlined_call_operand.vmem [shape: f32[32,16], index: 2, kind: input, shape index: {}]   ;;  %s6387_s3 = inlined_call_operand.vmem [shape: f32[32,1], index: 3, kind: input, shape index: {}]   ;;  %s6388_s4 = inlined_call_operand.vmem [shape: f32[5,32,32], index: 4, kind: input, shape index: {}]   ;;  %s6389_s5 = inlined_call_operand.vmem [shape: f32[32,1], index: 5, kind: input, shape index: {}]   ;;  %s6390_s6 = inlined_call_operand.hbm [shape: f32[2,5,32,32], index: 6, kind: input, shape index: {}]   ;;  %s6391_s7 = inlined_call_operand.vmem [shape: f32[2,32,1], index: 7, kind: input, shape index: {}]   ;;  %s6392_s8 = inlined_call_operand.vmem [shape: f32[64,32], index: 8, kind: input, shape index: {}]   ;;  %s6393_s9 = inlined_call_operand.vmem [shape: f32[64,1], index: 9, kind: input, shape index: {}]   ;;  %s6394_s10 = inlined_call_operand.vmem [shape: f32[64,32], index: 10, kind: input, shape index: {}]   ;;  %s6395_s11 = inlined_call_operand.vmem [shape: f32[64,1], index: 11, kind: input, shape index: {}]   ;;  %s6396_s12 = inlined_call_operand.vmem [shape: f32[2,16,32], index: 12, kind: input, shape index: {}]   ;;  %s6397_s13 = inlined_call_operand.hbm [shape: f32[5,32,32], index: 13, kind: input, shape index: {}]   ;;  %s6398_s14 = inlined_call_operand.vmem [shape: f32[32,1], index: 14, kind: input, shape index: {}]   ;;  %s6399_s15 = inlined_call_operand.hbm [shape: f32[1,5,32,32], index: 15, kind: input, shape index: {}]   ;;  %s6400_s16 = inlined_call_operand.vmem [shape: f32[1,32,1], index: 16, kind: input, shape index: {}]   ;;  %s6401_s17 = inlined_call_operand.vmem [shape: f32[64,32], index: 17, kind: input, shape index: {}]   ;;  %s6402_s18 = inlined_call_operand.vmem [shape: f32[64,1], index: 18, kind: input, shape index: {}]   ;;  %s6403_s19 = inlined_call_operand.vmem [shape: f32[64,32], index: 19, kind: input, shape index: {}]   ;;  %s6404_s20 = inlined_call_operand.vmem [shape: f32[64,1], index: 20, kind: input, shape index: {}]   ;;  %s6405_s21 = inlined_call_operand.vmem [shape: f32[1,32,32], index: 21, kind: input, shape index: {}]   ;;  %s6406_s22 = inlined_call_operand.vmem [shape: f32[4,32], index: 22, kind: input, shape index: {}]   ;;  %s6407_s23 = inlined_call_operand.vmem [shape: f32[4,1], index: 23, kind: input, shape index: {}]   ;;  %s6408_s24 = inlined_call_operand.hbm [shape: f32[2,4,32], index: 24, kind: output, shape index: {}]  }
   0x1   :  { %6442 = sst [smem:[#allocation19_spill]] %s6384_s0 }
   0x2   :  { %6443 = sst [smem:[#allocation20_spill]] %s6385_s1 }
   0x3   :  { %6444 = sst [smem:[#allocation21_spill]] %s6386_s2 }
   0x4   :  { %6445 = sst [smem:[#allocation22_spill]] %s6387_s3 }
   0x5   :  { %6446 = sst [smem:[#allocation23_spill]] %s6388_s4 }
   0x6   :  { %6447 = sst [smem:[#allocation24_spill]] %s6389_s5 }
   0x7   :  { %6448 = sst [smem:[#allocation25_spill]] %s6390_s6 }
   0x8   :  { %6449 = sst [smem:[#allocation26_spill]] %s6391_s7 }
   0x9   :  { %6450 = sst [smem:[#allocation27_spill]] %s6392_s8 }
   0xa   :  { %6451 = sst [smem:[#allocation28_spill]] %s6393_s9 }
   0xb   :  { %6452 = sst [smem:[#allocation29_spill]] %s6397_s13 }
   0xc   :  { %6453 = sst [smem:[#allocation30_spill]] %s6399_s15 }
   0xd   :  { %29 = vsyncpa [#allocation3], 0 }
   0xe   :  { %30 = vsyncpa [#allocation6], 0 }
   0xf   :  { %31 = vsyncpa [#allocation4], 0 }
  0x10   :  { %33 = vsyncpa [#allocation4 + $0x1], 0  ;;  %s5139_s5 = smov 0   ;;  %s5141_s26 = smov 0  }
  0x11   :  { %s5143_s27 = smov 0   ;;  %s5145_s21 = smov 0  }
  0x12   :  { %6454 = sst [smem:[#allocation12_spill]] %s5143_s27 }
  0x13 LB: > { %s6456_s27 = sld [smem:[#allocation12_spill]]  ;;  %s5160_s28 = sadd.s32 4294967295, %s4997_s21   ;;  %s4997_s21 = sphi %s5145_s21, %s6493_s21   ;;  %s4989_s26 = sphi %s5141_s26, %s6497_s26   ;;  %s4985_s5 = sphi %s5139_s5, %s6496_s5  }
  0x14   : > { %6457 = sst [smem:[#allocation12_spill]] %s4985_s5  ;;  %s4214_s6 = sadd.s32 4294967294, %s4997_s21  }
  0x15   : > { %6459 = sst [smem:[#allocation14_spill]] %s4997_s21  ;;  %s5164_s2 = sadd.s32 1, %s4997_s21  }
  0x16   : > { %6460 = sst [smem:[#allocation15_spill]] %s5164_s2  ;;  %s557_s0 = ssub.s32 %s4997_s21, %s5164_s2 }
  0x17   : > { %p558_p1 = scmp.eq.s32.totalorder %s557_s0, 0  ;;  %p571_p2 = scmp.eq.s32.totalorder %s5160_s28, 1 }
  0x18   : > { %p576_p3 = scmp.ne.s32.totalorder %s4989_s26, %s4985_s5  ;;  %p577_p4 = scmp.eq.s32.totalorder %s4214_s6, 1 }
  0x19   : > { %6458 = sst [smem:[#allocation13_spill]] %s6456_s27  ;;  %s560_s29 = sadd.s32 1, %s6456_s27 }
  0x1a   : > { %p570_p0 = scmp.ne.s32.totalorder %s6456_s27, %s4989_s26  ;;  %p5181_p6 = por %p577_p4, %p576_p3 }
  0x1b   : > { %s5175_s7 = scalar_select %p558_p1, %s6456_s27, %s560_s29  }
  0x1c   : > { %p5177_p5 = por %p571_p2, %p570_p0  ;;  %p4215_p7 = scmp.ge.s32.totalorder %s4997_s21, 1 }
  0x1d   : > { %6461 = sst [smem:[#allocation16_spill]] %s5175_s7  ;;  %p584_p8 = scmp.lt.s32.totalorder %s4997_s21, 3 }
  0x1e   : > { %s6462_s30 = scalar_select %p5177_p5, 1, 0 }
  0x1f   : > { %s6464_s3 = scalar_select %p5181_p6, 1, 0 }
  0x20   : > { %6463 = sst [smem:[#allocation17_spill]] %s6462_s30  ;;  %p4381_p9 = scmp.eq.s32.totalorder %s5160_s28, 0 }
  0x21   : > { %6465 = sst [smem:[#allocation18_spill]] %s6464_s3  ;;  %p5188_p10 = pnand %p4215_p7, %p584_p8 }
  0x22   : > { %s6467_s13 = sld [smem:[#allocation29_spill]]  ;;  %s4999_s2 = smov [#allocation5]  }
  0x23   : > { %p4367_p11 = pneg %p5188_p10  ;;  %s6468_s0 = sld [smem:[#allocation25_spill]] }
  0x24   : > { %s641_s3 = sshll.u32 %s4999_s2, 4  ;;  %s5000_s8 = smov 128   ;;  %s642_s3 = int_to_ptr.vmem [resolvable:$true] %s641_s3 }
  0x25   : > { %p5202_p12 = pnand %p4381_p9, %p4367_p11  ;;  %s5001_s4 = smov 8  }
  0x26   : > { %s6470_s15 = sld [smem:[#allocation30_spill]]  ;;  %s5003_s21 = smov [#allocation7]  }
  0x27   : > { %s658_s30 = sshll.u32 %s5003_s21, 4  ;;  %s659_s30 = int_to_ptr.vmem [resolvable:$true] %s658_s30 }
  0x28   : > { %s639_s1 = sshll.u32 %s6467_s13, 4  ;;  %s5002_s13 = smov [#allocation2]   ;;  %s640_s1 = int_to_ptr.hbm [resolvable:$true] %s639_s1 }
  0x29   : > { %s607_s7 = sshll.u32 %s6468_s0, 4  ;;  %s609_s5 = sshll.u32 %s5002_s13, 4  ;;  %s608_s7 = int_to_ptr.hbm [resolvable:$true] %s607_s7  ;;  %s610_s5 = int_to_ptr.vmem [resolvable:$true] %s609_s5 }
  0x2a   : > { %4373 = dma.hbm_to_vmem [thread:$0]  (!%p5202_p12), %s640_s1, 2560, %s642_s3, [#allocation6], %s5000_s8, %s5000_s8, %s5001_s4  }
  0x2b   : > { %4370 = dma.hbm_to_vmem [thread:$0]  (!%p5202_p12), %s608_s7, 5120, %s610_s5, [#allocation3], %s5000_s8, %s5000_s8, %s5001_s4  }
  0x2c   : > { %s656_s0 = sshll.u32 %s6470_s15, 4  ;;  %712 = sbr.rel (%p5188_p10) target bundleno = 4872 (0x1308), region = 116  ;;  %s657_s0 = int_to_ptr.hbm [resolvable:$true] %s656_s0 }
  0x2d   : > { %4376 = dma.hbm_to_vmem [thread:$0]  (!%p5202_p12), %s657_s0, 2560, %s659_s30, [#allocation6], %s5000_s8, %s5000_s8, %s5001_s4  }
  0x31   : > { %4972 = dma.done.wait (%p4381_p9), [#allocation3], 5120  }
  0x32   : > { %4974 = vsyncadd (%p4381_p9), [#allocation3], 4294962176 }
  0x33   : > { %4976 = dma.done.wait (%p4381_p9), [#allocation6], 5120  }
  0x34   : > { %4978 = vsyncadd (%p4381_p9), [#allocation6], 4294962176  ;;  %p792_p13 = scmp.lt.s32.totalorder %s5160_s28, 1  ;;  %v5004_v0 = vmov 0   ;;  %s6471_s2 = sld [smem:[#allocation19_spill]]  ;;  %vm831_vm0 = vcmask 130048  }
  0x35   : > { %4436 = vset.pattern.permute.xlu1 %v5004_v0  ;;  %4435 = vset.pattern.permute.xlu0 %v5004_v0  ;;  %s6472_s25 = sld [smem:[#allocation20_spill]]  ;;  %v5005_v27 = vmov 16.0   ;;  %s6429_s27 = smov 126   ;;  %vm1044_vm14 = vcmask 7168   ;;  %vm1049_vm15 = vcmask 15360  }
  0x36   : > { %s793_s13 = scalar_select %p792_p13, %s5160_s28, 1  ;;  %4517 = vset.pattern.permute.xlu2 %v5004_v0  ;;  %4759 = vrcp.f32 %v5005_v27 }
  0x37   : > { %s6473_s6 = sld [smem:[#allocation21_spill]]  ;;  %s6427_s21 = smov 2  }
  0x38   : > { %s4348_s5 = sshll.u32 %s793_s13, 4  ;;  %s6439_s30 = smov 124  }
  0x39   : > { %s6475_s8 = sld [smem:[#allocation24_spill]]  ;;  %s6431_s4 = smov 125  }
  0x3a   : > { %s796_s7 = scalar_lea.vmem %s6471_s2, %s4348_s5  ;;  %s6474_s2 = sld [smem:[#allocation22_spill]] }
  0x3b   : > { %s5233_s1 = scalar_lea.vmem %s6472_s25, %s793_s13  ;;  %v802_v1 = vld [vmem:[%s796_s7 + $0x8] sm:$0xff]  ;;  %v801_v2 = vld [vmem:[%s796_s7] sm:$0xff]  ;;  %s6433_s5 = smov 4  }
  0x3c   : > { %858 = vmatpush.msra.mxu0 %v802_v1  ;;  %4349 = vmatpush.msra.mxu2 %v802_v1  ;;  %v4760_v28 = vpop.eup %4759  ;;  %s6425_s13 = smov 6   ;;  %s6423_s7 = smov 127  }
  0x3d   : > { %v803_v3 = vld [vmem:[%s6473_s6] sm:$0xff]  ;;  %4350 = vmatpush.msra.mxu3 %v802_v1  ;;  %v804_v4 = vld [vmem:[%s6473_s6 + $0x8] sm:$0xff]  ;;  %v806_v5 = vld [vmem:[%s6473_s6 + $0x18] sm:$0xff]  ;;  %v886_v29 = vmul.f32 16.0, %v4760_v28  ;;  %vm890_vm1 = vweird.f32 %v4760_v28  ;;  %s6480_s9 = sld [smem:[#allocation28_spill]]  ;;  %s6481_s0 = smov 126  }
  0x3e   : > { %859 = vmatpush.msra.mxu0 %v801_v2  ;;  %4351 = vmatpush.msra.mxu2 %v801_v2  ;;  %v805_v8 = vld [vmem:[%s6473_s6 + $0x10] sm:$0xff]  ;;  %s6485_s29 = sld [smem:[#allocation26_spill]]  ;;  %s6488_s15 = smov 124  }
  0x3f   : > { %4352 = vmatpush.msra.mxu3 %v801_v2  ;;  %4227 = vmatmul.msk.f32.vlgmr.msra.gmra.mxu0 %vm831_vm0, %v803_v3  ;;  %v887_v30 = vsub.f32 1.0, %v886_v29  ;;  %s4345_s6 = sshll.u32 %s5160_s28, 2 }
  0x40   : > { %v808_v6 = vld [vmem:[%s6474_s2 + $0x8] sm:$0xff]  ;;  %v810_v7 = vld [vmem:[%s6474_s2 + $0x18] sm:$0xff]  ;;  %4228 = vmatmul.msk.f32.vlgmr.msra.gmra.mxu2 %vm831_vm0, %v804_v4  ;;  %4230 = vmatmul.msk.f32.vlgmr.msra.gmra.mxu3 %vm831_vm0, %v806_v5  ;;  %v807_v9 = vld [vmem:[%s6474_s2] sm:$0xff] }
  0x41   : > { %818 = vperm.xlu1 %4436, %v808_v6   ;;  %828 = vperm.xlu0 %4435, %v810_v7   ;;  %v809_v10 = vld [vmem:[%s6474_s2 + $0x10] sm:$0xff]  ;;  %v888_v31 = vmul.f32 %v4760_v28, %v887_v30 }
  0x43   : > { %v889_v32 = vadd.f32 %v4760_v28, %v888_v31 }
  0x45   : > { %v5267_v33 = vsel %vm890_vm1, %v4760_v28, %v889_v32  ;;  %vm1054_vm1 = vcmask 146432  }
  0x48   : > { %4229 = vmatmul.msk.f32.gmra.mxu2 %vm831_vm0, %v805_v8 }
  0x49   : > { %813 = vperm.xlu1 %4436, %v807_v9   ;;  %823 = vperm.xlu0 %4435, %v809_v10  }
  0xb3   : > { %v819_v11 = vpop.permute.xlu1 %818  ;;  %v829_v16 = vpop.permute.xlu0 %828 }
  0xbb   : > { %v814_v12 = vpop.permute.xlu1 %813  ;;  %v824_v23 = vpop.permute.xlu0 %823 }
  0xbc   : > { %v861_v13 = vpop.f32.mrf.mxu0 }
  0xbd   : > { %v862_v14 = vadd.f32 %v861_v13, %v814_v12 }
  0xbf   : > { %v873_v15 = vsel %vm831_vm0, %v862_v14, 0.0 }
  0xc0   : > { %874 = vadd.xlane.f32.xlu1 %v873_v15 }
  0xc3   : > { %v864_v17 = vpop.f32.mrf.mxu2  ;;  %v870_v18 = vpop.f32.mrf.mxu3 }
  0xc4   : > { %v865_v19 = vadd.f32 %v864_v17, %v819_v11  ;;  %v871_v20 = vadd.f32 %v870_v18, %v829_v16 }
  0xc6   : > { %v882_v21 = vsel %vm831_vm0, %v871_v20, 0.0  ;;  %v876_v22 = vsel %vm831_vm0, %v865_v19, 0.0 }
  0xc7   : > { %883 = vadd.xlane.f32.xlu2 %v882_v21  ;;  %877 = vadd.xlane.f32.xlu0 %v876_v22 }
  0xcb   : > { %v867_v24 = vpop.f32.mrf.mxu2 }
  0xcc   : > { %v868_v25 = vadd.f32 %v867_v24, %v824_v23 }
  0xce   : > { %v879_v26 = vsel %vm831_vm0, %v868_v25, 0.0 }
  0xcf   : > { %880 = vadd.xlane.f32.xlu2 %v879_v26 }
 0x133   : > { %v875_v47 = vpop.xlane.xlu1 %874 }
 0x134   : > { %v892_v48 = vmul.f32 %v5267_v33, %v875_v47 }
 0x136   : > { %v5279_v50 = vsub.f32 %v862_v14, %v892_v48 }
 0x138   : > { %v900_v52 = vmul.f32 %v5279_v50, %v5279_v50 }
 0x13a   : > { %v884_v34 = vpop.xlane.xlu2 %883  ;;  %v878_v35 = vpop.xlane.xlu0 %877  ;;  %v904_v53 = vsel %vm831_vm0, %v900_v52, 0.0 }
 0x13b   : > { %v895_v36 = vmul.f32 %v5267_v33, %v884_v34  ;;  %v893_v38 = vmul.f32 %v5267_v33, %v878_v35 }
 0x13d   : > { %v899_v37 = vsub.f32 %v871_v20, %v895_v36  ;;  %v5271_v40 = vsub.f32 %v865_v19, %v893_v38 }
 0x13f   : > { %v903_v39 = vmul.f32 %v899_v37, %v899_v37  ;;  %v901_v44 = vmul.f32 %v5271_v40, %v5271_v40 }
 0x141   : > { %v913_v41 = vsel %vm831_vm0, %v903_v39, 0.0  ;;  %v907_v46 = vsel %vm831_vm0, %v901_v44, 0.0 }
 0x142   : > { %914 = vadd.xlane.f32.xlu2 %v913_v41  ;;  %v881_v42 = vpop.xlane.xlu2 %880 }
 0x143   : > { %v894_v43 = vmul.f32 %v5267_v33, %v881_v42 }
 0x145   : > { %v898_v45 = vsub.f32 %v868_v25, %v894_v43 }
 0x147   : > { %v902_v49 = vmul.f32 %v898_v45, %v898_v45 }
 0x149   : > { %v910_v51 = vsel %vm831_vm0, %v902_v49, 0.0 }
 0x14a   : > { %908 = vadd.xlane.f32.xlu2 %v907_v46 }
 0x152   : > { %911 = vadd.xlane.f32.xlu2 %v910_v51 }
 0x15a   : > { %905 = vadd.xlane.f32.xlu2 %v904_v53 }
 0x1b5   : > { %v915_v54 = vpop.xlane.xlu2 %914 }
 0x1b6   : > { %v919_v55 = vmul.f32 %v915_v54, %v5267_v33 }
 0x1b8   : > { %v923_v56 = vadd.f32 1e-05, %v919_v55 }
 0x1ba   : > { %4761 = vrsqrt.f32 %v923_v56  ;;  %vm960_vm3 = vweird.f32 %v923_v56 }
 0x1bd   : > { %v909_v57 = vpop.xlane.xlu2 %908 }
 0x1be   : > { %v917_v58 = vmul.f32 %v909_v57, %v5267_v33 }
 0x1c0   : > { %v4762_v59 = vpop.eup %4761  ;;  %v921_v60 = vadd.f32 1e-05, %v917_v58 }
 0x1c1   : > { %v955_v61 = vmul.f32 %v4762_v59, %v923_v56  ;;  %vm961_vm2 = vweird.f32 %v4762_v59 }
 0x1c2   : > { %4763 = vrsqrt.f32 %v921_v60  ;;  %vm962_vm4 = vmor %vm960_vm3, %vm961_vm2  ;;  %vm940_vm9 = vweird.f32 %v921_v60  ;;  %vm1059_vm2 = vcmask 154624   ;;  %vm1084_vm3 = vcmask 261120  }
 0x1c3   : > { %v956_v0 = vmul.f32 %v4762_v59, %v955_v61 }
 0x1c5   : > { %v912_v62 = vpop.xlane.xlu2 %911  ;;  %v957_v3 = vmul.f32 0.5, %v956_v0 }
 0x1c6   : > { %v918_v63 = vmul.f32 %v912_v62, %v5267_v33 }
 0x1c7   : > { %v958_v7 = vsub.f32 1.5, %v957_v3 }
 0x1c8   : > { %v4764_v1 = vpop.eup %4763  ;;  %v922_v2 = vadd.f32 1e-05, %v918_v63 }
 0x1c9   : > { %v935_v4 = vmul.f32 %v4764_v1, %v921_v60  ;;  %v959_v12 = vmul.f32 %v4762_v59, %v958_v7  ;;  %vm941_vm8 = vweird.f32 %v4764_v1 }
 0x1ca   : > { %4765 = vrsqrt.f32 %v922_v2  ;;  %vm950_vm6 = vweird.f32 %v922_v2  ;;  %vm942_vm10 = vmor %vm940_vm9, %vm941_vm8 }
 0x1cb   : > { %v936_v8 = vmul.f32 %v4764_v1, %v935_v4  ;;  %v963_v16 = vsel %vm962_vm4, %v4762_v59, %v959_v12 }
 0x1cc   : > { %v967_v22 = vmul.f32 %v963_v16, %v899_v37 }
 0x1cd   : > { %v906_v5 = vpop.xlane.xlu2 %905  ;;  %v937_v13 = vmul.f32 0.5, %v936_v8 }
 0x1ce   : > { %v916_v6 = vmul.f32 %v906_v5, %v5267_v33  ;;  %v5289_v28 = vmax.f32 %v967_v22, 0.0 }
 0x1cf   : > { %v938_v17 = vsub.f32 1.5, %v937_v13 }
 0x1d0   : > { %v4766_v9 = vpop.eup %4765  ;;  %v920_v10 = vadd.f32 1e-05, %v916_v6 }
 0x1d1   : > { %v945_v11 = vmul.f32 %v4766_v9, %v922_v2  ;;  %vm951_vm5 = vweird.f32 %v4766_v9  ;;  %v939_v23 = vmul.f32 %v4764_v1, %v938_v17 }
 0x1d2   : > { %4767 = vrsqrt.f32 %v920_v10  ;;  %vm952_vm7 = vmor %vm950_vm6, %vm951_vm5  ;;  %vm930_vm12 = vweird.f32 %v920_v10 }
 0x1d3   : > { %v946_v14 = vmul.f32 %v4766_v9, %v945_v11  ;;  %v943_v30 = vsel %vm942_vm10, %v4764_v1, %v939_v23 }
 0x1d4   : > { %v965_v35 = vmul.f32 %v943_v30, %v5271_v40 }
 0x1d5   : > { %v947_v15 = vmul.f32 0.5, %v946_v14 }
 0x1d6   : > { %v5299_v38 = vmax.f32 %v965_v35, 0.0 }
 0x1d7   : > { %v948_v18 = vsub.f32 1.5, %v947_v15 }
 0x1d8   : > { %v4768_v19 = vpop.eup %4767 }
 0x1d9   : > { %v949_v20 = vmul.f32 %v4766_v9, %v948_v18  ;;  %v925_v21 = vmul.f32 %v4768_v19, %v920_v10  ;;  %vm931_vm11 = vweird.f32 %v4768_v19 }
 0x1da   : > { %vm932_vm13 = vmor %vm930_vm12, %vm931_vm11 }
 0x1db   : > { %v953_v24 = vsel %vm952_vm7, %v4766_v9, %v949_v20  ;;  %v926_v25 = vmul.f32 %v4768_v19, %v925_v21  ;;  %v1064_v20 = vld [vmem:[%s6475_s8] sm:$0xff]  ;;  %v1065_v21 = vld [vmem:[%s6475_s8 + $0x8] sm:$0xff] }
 0x1dc   : > { %v966_v26 = vmul.f32 %v953_v24, %v898_v45 }
 0x1dd   : > { %v927_v27 = vmul.f32 0.5, %v926_v25 }
 0x1de   : > { %v5291_v29 = vmax.f32 %v966_v26, 0.0 }
 0x1df   : > { %v928_v31 = vsub.f32 1.5, %v927_v27 }
 0x1e0   : > { %v4452_v32 = vpack.i.bf16 %v5291_v29, %v5289_v28 }
 0x1e1   : > { %v929_v34 = vmul.f32 %v4768_v19, %v928_v31 }
 0x1e2   : > { %4453 = vrot.lane.b32.xlu1 %v4452_v32, %s6433_s5  ;;  %4443 = vrot.lane.b32.xlu2 %v4452_v32, %s6429_s27 }
 0x1e3   : > { %v933_v36 = vsel %vm932_vm13, %v4768_v19, %v929_v34  ;;  %v1067_v19 = vld [vmem:[%s6475_s8 + $0x18] sm:$0xff] }
 0x1e4   : > { %v964_v37 = vmul.f32 %v933_v36, %v5279_v50 }
 0x1e6   : > { %v5301_v39 = vmax.f32 %v964_v37, 0.0 }
 0x1e8   : > { %v4467_v41 = vpack.i.bf16 %v5301_v39, %v5299_v38 }
 0x1ea   : > { %4458 = vrot.lane.b32.xlu2 %v4452_v32, %s6425_s13  ;;  %4468 = vrot.lane.b32.xlu1 %v4467_v41, %s6433_s5 }
 0x1eb   : > { %4438 = vrot.lane.b32.xlu0 %v4467_v41, %s6429_s27 }
 0x1f2   : > { %4463 = vrot.lane.b32.xlu2 %v4467_v41, %s6427_s21 }
 0x1f3   : > { %4448 = vrot.lane.b32.xlu0 %v4452_v32, %s6427_s21  ;;  %s6476_s21 = sld [smem:[#allocation23_spill]] }
 0x1f9   : > { %v972_v22 = vld [vmem:[%s6476_s21] sm:$0xff] }
 0x1fb   : > { %4473 = vrot.lane.b32.xlu0 %v4467_v41, %s6425_s13  ;;  %s6482_s13 = smov 2  }
 0x23c   : > { %v4444_v40 = vpop.permute.xlu2 %4443 }
 0x23d   : > { %v4446_v45 = vunpack.i.h.bf16 %v4444_v40  ;;  %v4445_v46 = vunpack.i.l.bf16 %v4444_v40 }
 0x23f   : > { %v1047_v47 = vsel %vm1044_vm14, %v4446_v45, %v5291_v29  ;;  %v1048_v51 = vsel %vm1044_vm14, %v4445_v46, %v5289_v28 }
 0x244   : > { %v4459_v42 = vpop.permute.xlu2 %4458 }
 0x245   : > { %v4461_v57 = vunpack.i.h.bf16 %v4459_v42  ;;  %v4460_v58 = vunpack.i.l.bf16 %v4459_v42 }
 0x24c   : > { %v4464_v54 = vpop.permute.xlu2 %4463 }
 0x24d   : > { %v4466_v1 = vunpack.i.h.bf16 %v4464_v54  ;;  %v4465_v2 = vunpack.i.l.bf16 %v4464_v54 }
 0x254   : > { %v4454_v44 = vpop.permute.xlu1 %4453 }
 0x255   : > { %v4456_v55 = vunpack.i.h.bf16 %v4454_v44  ;;  %v4455_v56 = vunpack.i.l.bf16 %v4454_v44 }
 0x25c   : > { %v4469_v3 = vpop.permute.xlu1 %4468 }
 0x25d   : > { %v4439_v43 = vpop.permute.xlu0 %4438  ;;  %v4471_v9 = vunpack.i.h.bf16 %v4469_v3  ;;  %v4470_v10 = vunpack.i.l.bf16 %v4469_v3 }
 0x25e   : > { %v4441_v48 = vunpack.i.h.bf16 %v4439_v43  ;;  %v4440_v49 = vunpack.i.l.bf16 %v4439_v43 }
 0x260   : > { %v1045_v61 = vsel %vm1044_vm14, %v4441_v48, %v5301_v39  ;;  %v1046_v62 = vsel %vm1044_vm14, %v4440_v49, %v5299_v38 }
 0x261   : > { %v1050_v7 = vsel %vm1049_vm15, %v1045_v61, %v4466_v1  ;;  %v1051_v8 = vsel %vm1049_vm15, %v1046_v62, %v4465_v2  ;;  %v1066_v1 = vld [vmem:[%s6475_s8 + $0x10] sm:$0xff] }
 0x262   : > { %v1055_v14 = vsel %vm1054_vm1, %v1050_v7, %v4471_v9  ;;  %v1056_v15 = vsel %vm1054_vm1, %v1051_v8, %v4470_v10 }
 0x265   : > { %v4449_v50 = vpop.permute.xlu0 %4448 }
 0x266   : > { %v4451_v52 = vunpack.i.h.bf16 %v4449_v50  ;;  %v4450_v53 = vunpack.i.l.bf16 %v4449_v50 }
 0x268   : > { %v1052_v59 = vsel %vm1049_vm15, %v1047_v47, %v4451_v52  ;;  %v1053_v60 = vsel %vm1049_vm15, %v1048_v51, %v4450_v53 }
 0x269   : > { %v1057_v63 = vsel %vm1054_vm1, %v1052_v59, %v4456_v55  ;;  %v1058_v0 = vsel %vm1054_vm1, %v1053_v60, %v4455_v56 }
 0x26a   : > { %v1063_v4 = vsel %vm1059_vm2, %v1058_v0, %v4460_v58  ;;  %v1062_v5 = vsel %vm1059_vm2, %v1057_v63, %v4461_v57 }
 0x26b   : > { %1150 = vmatpush.msrb.mxu2 %v1063_v4  ;;  %v4487_v6 = vpack.i.bf16 %v1062_v5, %v1063_v4 }
 0x26d   : > { %v4474_v11 = vpop.permute.xlu0 %4473  ;;  %4488 = vrot.lane.b32.xlu0 %v4487_v6, %s6429_s27  ;;  %4478 = vrot.lane.b32.xlu2 %v4487_v6, %s6423_s7 }
 0x26e   : > { %v4476_v12 = vunpack.i.h.bf16 %v4474_v11  ;;  %v4475_v13 = vunpack.i.l.bf16 %v4474_v11  ;;  %1151 = vmatpush.msrb.mxu2 %v1062_v5 }
 0x270   : > { %v1060_v16 = vsel %vm1059_vm2, %v1055_v14, %v4476_v12  ;;  %v1061_v17 = vsel %vm1059_vm2, %v1056_v15, %v4475_v13 }
 0x271   : > { %1152 = vmatpush.msrb.mxu2 %v1061_v17  ;;  %v4482_v18 = vpack.i.bf16 %v1060_v16, %v1061_v17 }
 0x273   : > { %4483 = vrot.lane.b32.xlu1 %v4482_v18, %s6423_s7  ;;  %1153 = vmatpush.msrb.mxu2 %v1060_v16  ;;  %s6484_s7 = smov 127  }
 0x274   : > { %4235 = vmatmul.msk.f32.vlgmr.msrb.gmra.mxu2 %vm1084_vm3, %v972_v22 }
 0x275   : > { %4503 = vrot.lane.b32.xlu0 %v4487_v6, %s6439_s30  ;;  %4493 = vrot.lane.b32.xlu2 %v4482_v18, %s6429_s27  ;;  %s6477_s27 = smov %s6476_s21  ;;  %s6478_s21 = sld [smem:[#allocation27_spill]] }
 0x276   : > { %v973_v26 = vld [vmem:[%s6477_s27 + $0x8] sm:$0xff]  ;;  %v974_v27 = vld [vmem:[%s6477_s27 + $0x10] sm:$0xff]  ;;  %v975_v30 = vld [vmem:[%s6477_s27 + $0x18] sm:$0xff] }
 0x277   : > { %v980_v42 = vld [vmem:[%s6477_s27 + $0x40] sm:$0xff]  ;;  %v981_v50 = vld [vmem:[%s6477_s27 + $0x48] sm:$0xff]  ;;  %v982_v59 = vld [vmem:[%s6477_s27 + $0x50] sm:$0xff] }
 0x278   : > { %v976_v45 = vld [vmem:[%s6477_s27 + $0x20] sm:$0xff]  ;;  %v977_v53 = vld [vmem:[%s6477_s27 + $0x28] sm:$0xff]  ;;  %v978_v61 = vld [vmem:[%s6477_s27 + $0x30] sm:$0xff] }
 0x279   : > { %v984_v56 = vld [vmem:[%s6477_s27 + $0x60] sm:$0xff]  ;;  %v985_v62 = vld [vmem:[%s6477_s27 + $0x68] sm:$0xff]  ;;  %v983_v63 = vld [vmem:[%s6477_s27 + $0x58] sm:$0xff] }
 0x27a   : > { %v979_v0 = vld [vmem:[%s6477_s27 + $0x38] sm:$0xff]  ;;  %v986_v2 = vld [vmem:[%s6477_s27 + $0x70] sm:$0xff]  ;;  %v988_v3 = vld [vmem:[%s6477_s27 + $0x80] sm:$0xff] }
 0x27b   : > { %4498 = vrot.lane.b32.xlu1 %v4487_v6, %s6431_s4  ;;  %v987_v4 = vld [vmem:[%s6477_s27 + $0x78] sm:$0xff]  ;;  %v989_v5 = vld [vmem:[%s6477_s27 + $0x88] sm:$0xff]  ;;  %v990_v6 = vld [vmem:[%s6477_s27 + $0x90] sm:$0xff]  ;;  %s6479_s3 = smov %s6478_s21 }
 0x27c   : > { %4236 = vmatmul.msk.f32.gmra.mxu2 %vm1084_vm3, %v973_v26  ;;  %v991_v7 = vld [vmem:[%s6477_s27 + $0x98] sm:$0xff]  ;;  %s4947_s27 = scalar_lea.hbm %s6408_s24, 8 }
 0x27d   : > { %1355 = vperm.xlu0 %4435, %v1067_v19   ;;  %4508 = vrot.lane.b32.xlu2 %v4482_v18, %s6431_s4  ;;  %s6483_s4 = smov 6  }
 0x283   : > { %4513 = vrot.lane.b32.xlu1 %v4482_v18, %s6439_s30 }
 0x284   : > { %4237 = vmatmul.msk.f32.gmra.mxu2 %vm1084_vm3, %v974_v27 }
 0x285   : > { %1340 = vperm.xlu0 %4435, %v1064_v20   ;;  %1350 = vperm.xlu2 %4517, %v1066_v1  }
 0x28b   : > { %1345 = vperm.xlu1 %4436, %v1065_v21  }
 0x28c   : > { %4238 = vmatmul.msk.f32.gmra.mxu2 %vm1084_vm3, %v975_v30 }
 0x2c7   : > { %v4479_v23 = vpop.permute.xlu2 %4478 }
 0x2c8   : > { %v4480_v24 = vunpack.i.l.bf16 %v4479_v23  ;;  %v4481_v25 = vunpack.i.h.bf16 %v4479_v23 }
 0x2ca   : > { %1109 = vmatpush.msra.mxu1 %v4480_v24 }
 0x2cc   : > { %1110 = vmatpush.msra.mxu1 %v4481_v25 }
 0x2cf   : > { %v4494_v34 = vpop.permute.xlu2 %4493 }
 0x2d0   : > { %v4495_v36 = vunpack.i.l.bf16 %v4494_v34  ;;  %v4496_v40 = vunpack.i.h.bf16 %v4494_v34 }
 0x2d7   : > { %v4509_v51 = vpop.permute.xlu2 %4508 }
 0x2d8   : > { %v4510_v54 = vunpack.i.l.bf16 %v4509_v51  ;;  %v4511_v55 = vunpack.i.h.bf16 %v4509_v51 }
 0x2df   : > { %v4489_v31 = vpop.permute.xlu0 %4488 }
 0x2e0   : > { %v4490_v32 = vunpack.i.l.bf16 %v4489_v31  ;;  %v4491_v35 = vunpack.i.h.bf16 %v4489_v31 }
 0x2e2   : > { %1203 = vmatpush.msrb.mxu3 %v4490_v32 }
 0x2e4   : > { %1204 = vmatpush.msrb.mxu3 %v4491_v35 }
 0x2e5   : > { %v4484_v37 = vpop.permute.xlu1 %4483 }
 0x2e6   : > { %1205 = vmatpush.msrb.mxu3 %v4495_v36  ;;  %v4485_v41 = vunpack.i.l.bf16 %v4484_v37  ;;  %v4486_v44 = vunpack.i.h.bf16 %v4484_v37 }
 0x2e7   : > { %v4504_v43 = vpop.permute.xlu0 %4503 }
 0x2e8   : > { %1111 = vmatpush.msra.mxu1 %v4485_v41  ;;  %1206 = vmatpush.msrb.mxu3 %v4496_v40  ;;  %v4505_v46 = vunpack.i.l.bf16 %v4504_v43  ;;  %v4506_v47 = vunpack.i.h.bf16 %v4504_v43 }
 0x2e9   : > { %4239 = vmatmul.msk.f32.vlgmr.msrb.gmra.mxu3 %vm1084_vm3, %v980_v42 }
 0x2ea   : > { %1112 = vmatpush.msra.mxu1 %v4486_v44 }
 0x2eb   : > { %4231 = vmatmul.msk.f32.vlgmr.msra.gmra.mxu1 %vm1084_vm3, %v976_v45 }
 0x2ec   : > { %1317 = vmatpush.msrb.mxu1 %v4505_v46 }
 0x2ed   : > { %v4499_v48 = vpop.permute.xlu1 %4498 }
 0x2ee   : > { %1318 = vmatpush.msrb.mxu1 %v4506_v47  ;;  %v4500_v49 = vunpack.i.l.bf16 %v4499_v48  ;;  %v4501_v52 = vunpack.i.h.bf16 %v4499_v48  ;;  %v1351_v48 = vpop.permute.xlu2 %1350 }
 0x2ef   : > { %v1356_v14 = vpop.permute.xlu0 %1355 }
 0x2f0   : > { %1260 = vmatpush.msrb.mxu0 %v4500_v49 }
 0x2f1   : > { %4240 = vmatmul.msk.f32.gmra.mxu3 %vm1084_vm3, %v981_v50 }
 0x2f2   : > { %1261 = vmatpush.msrb.mxu0 %v4501_v52 }
 0x2f3   : > { %4232 = vmatmul.msk.f32.gmra.mxu1 %vm1084_vm3, %v977_v53 }
 0x2f4   : > { %1262 = vmatpush.msrb.mxu0 %v4510_v54 }
 0x2f5   : > { %v4514_v57 = vpop.permute.xlu1 %4513 }
 0x2f6   : > { %1263 = vmatpush.msrb.mxu0 %v4511_v55  ;;  %v4515_v58 = vunpack.i.l.bf16 %v4514_v57  ;;  %v4516_v60 = vunpack.i.h.bf16 %v4514_v57 }
 0x2f7   : > { %4243 = vmatmul.msk.f32.vlgmr.msrb.gmra.mxu0 %vm1084_vm3, %v984_v56  ;;  %v1155_v11 = vpop.f32.mrf.mxu2  ;;  %v1341_v24 = vpop.permute.xlu0 %1340 }
 0x2f8   : > { %1319 = vmatpush.msrb.mxu1 %v4515_v58 }
 0x2f9   : > { %4241 = vmatmul.msk.f32.gmra.mxu3 %vm1084_vm3, %v982_v59 }
 0x2fa   : > { %1320 = vmatpush.msrb.mxu1 %v4516_v60 }
 0x2fb   : > { %4233 = vmatmul.msk.f32.gmra.mxu1 %vm1084_vm3, %v978_v61 }
 0x2fd   : > { %v1346_v37 = vpop.permute.xlu1 %1345 }
 0x2ff   : > { %4244 = vmatmul.msk.f32.gmra.mxu0 %vm1084_vm3, %v985_v62  ;;  %v1158_v17 = vpop.f32.mrf.mxu2 }
 0x301   : > { %4242 = vmatmul.msk.f32.gmra.mxu3 %vm1084_vm3, %v983_v63 }
 0x303   : > { %4234 = vmatmul.msk.f32.gmra.mxu1 %vm1084_vm3, %v979_v0  ;;  %v4758_v0 = vld [vmem:[%s5233_s1] ss:$0 sm:$0xff] }
 0x307   : > { %4245 = vmatmul.msk.f32.gmra.mxu0 %vm1084_vm3, %v986_v2  ;;  %v1161_v30 = vpop.f32.mrf.mxu2  ;;  %v1457_v2 = vld [vmem:[%s6478_s21 + $0x38] sm:$0xff]  ;;  %s789_s21 = sand.u32 1, %s4989_s26  }
 0x308   : > { %s4224_s25 = sshll.u32 %s789_s21, 2 }
 0x30b   : > { %4247 = vmatmul.msk.f32.vlgmr.msrb.gmra.mxu1 %vm1084_vm3, %v988_v3 }
 0x30f   : > { %4246 = vmatmul.msk.f32.gmra.mxu0 %vm1084_vm3, %v987_v4  ;;  %v1164_v45 = vpop.f32.mrf.mxu2 }
 0x313   : > { %4248 = vmatmul.msk.f32.gmra.mxu1 %vm1084_vm3, %v989_v5 }
 0x31b   : > { %4249 = vmatmul.msk.f32.gmra.mxu1 %vm1084_vm3, %v990_v6 }
 0x323   : > { %4250 = vmatmul.msk.f32.gmra.mxu1 %vm1084_vm3, %v991_v7  ;;  %v1468_v7 = vmul.f32 %v4758_v0, %v1457_v2 }
 0x368   : > { %v1114_v8 = vpop.f32.mrf.mxu1 }
 0x369   : > { %v1156_v16 = vadd.f32 %v1155_v11, %v1114_v8  ;;  %v1456_v11 = vld [vmem:[%s6479_s3 + $0x30] sm:$0xff] }
 0x36c   : > { %v1208_v12 = vpop.f32.mrf.mxu3 }
 0x36d   : > { %v1220_v18 = vadd.f32 %v1208_v12, %v1156_v16  ;;  %v1467_v16 = vmul.f32 %v4758_v0, %v1456_v11 }
 0x370   : > { %v1117_v9 = vpop.f32.mrf.mxu1 }
 0x371   : > { %v1159_v25 = vadd.f32 %v1158_v17, %v1117_v9 }
 0x374   : > { %v1265_v13 = vpop.f32.mrf.mxu0  ;;  %v1211_v19 = vpop.f32.mrf.mxu3 }
 0x375   : > { %v1277_v20 = vadd.f32 %v1265_v13, %v1220_v18  ;;  %v1221_v27 = vadd.f32 %v1211_v19, %v1159_v25  ;;  %v1454_v25 = vld [vmem:[%s6479_s3 + $0x20] sm:$0xff] }
 0x378   : > { %v1120_v10 = vpop.f32.mrf.mxu1 }
 0x379   : > { %v1162_v40 = vadd.f32 %v1161_v30, %v1120_v10  ;;  %v1490_v10 = vsel %vm1084_vm3, %v1468_v7, 0.0 }
 0x37c   : > { %v1268_v21 = vpop.f32.mrf.mxu0  ;;  %v1214_v34 = vpop.f32.mrf.mxu3 }
 0x37d   : > { %v1278_v32 = vadd.f32 %v1268_v21, %v1221_v27  ;;  %v1222_v43 = vadd.f32 %v1214_v34, %v1162_v40  ;;  %v1487_v21 = vsel %vm1084_vm3, %v1467_v16, 0.0  ;;  %v1465_v27 = vmul.f32 %v4758_v0, %v1454_v25  ;;  %v1450_v40 = vld [vmem:[%s6479_s3] sm:$0xff] }
 0x380   : > { %v1123_v15 = vpop.f32.mrf.mxu1 }
 0x381   : > { %v1165_v51 = vadd.f32 %v1164_v45, %v1123_v15 }
 0x384   : > { %v1271_v41 = vpop.f32.mrf.mxu0  ;;  %v1217_v50 = vpop.f32.mrf.mxu3 }
 0x385   : > { %v1279_v46 = vadd.f32 %v1271_v41, %v1222_v43  ;;  %v1223_v54 = vadd.f32 %v1217_v50, %v1165_v51 }
 0x388   : > { %v1322_v22 = vpop.f32.mrf.mxu1 }
 0x389   : > { %v1334_v23 = vadd.f32 %v1322_v22, %v1277_v20 }
 0x38b   : > { %v5431_v26 = vadd.f32 %v1341_v24, %v1334_v23 }
 0x38c   : > { %v1274_v53 = vpop.f32.mrf.mxu0 }
 0x38d   : > { %v1362_v31 = vsel %vm831_vm0, %v5431_v26, 0.0  ;;  %v1280_v56 = vadd.f32 %v1274_v53, %v1223_v54 }
 0x38e   : > { %1363 = vadd.xlane.f32.xlu2 %v1362_v31  ;;  %v1453_v31 = vld [vmem:[%s6479_s3 + $0x18] sm:$0xff] }
 0x38f   : > { %v1464_v34 = vmul.f32 %v4758_v0, %v1453_v31 }
 0x390   : > { %v1325_v35 = vpop.f32.mrf.mxu1 }
 0x391   : > { %v1335_v36 = vadd.f32 %v1325_v35, %v1278_v32  ;;  %v1478_v35 = vsel %vm1084_vm3, %v1464_v34, 0.0 }
 0x393   : > { %v1359_v42 = vadd.f32 %v1346_v37, %v1335_v36  ;;  %v1455_v36 = vld [vmem:[%s6479_s3 + $0x28] sm:$0xff] }
 0x394   : > { %v1466_v37 = vmul.f32 %v4758_v0, %v1455_v36 }
 0x395   : > { %v1365_v44 = vsel %vm831_vm0, %v1359_v42, 0.0 }
 0x396   : > { %1366 = vadd.xlane.f32.xlu0 %v1365_v44  ;;  %v1484_v41 = vsel %vm1084_vm3, %v1466_v37, 0.0 }
 0x398   : > { %v1328_v47 = vpop.f32.mrf.mxu1 }
 0x399   : > { %v1336_v49 = vadd.f32 %v1328_v47, %v1279_v46  ;;  %v1500_v47 = vld [vmem:[%s6480_s9 + $0x38] sm:$0xff] }
 0x39b   : > { %v1360_v52 = vadd.f32 %v1351_v48, %v1336_v49  ;;  %v1451_v48 = vld [vmem:[%s6479_s3 + $0x8] sm:$0xff] }
 0x39c   : > { %v1462_v51 = vmul.f32 %v4758_v0, %v1451_v48 }
 0x39d   : > { %v1368_v55 = vsel %vm831_vm0, %v1360_v52, 0.0 }
 0x39e   : > { %1369 = vadd.xlane.f32.xlu1 %v1368_v55  ;;  %v1472_v54 = vsel %vm1084_vm3, %v1462_v51, 0.0 }
 0x3a0   : > { %v1331_v57 = vpop.f32.mrf.mxu1 }
 0x3a1   : > { %v1337_v58 = vadd.f32 %v1331_v57, %v1280_v56 }
 0x3a3   : > { %v1361_v59 = vadd.f32 %v1356_v14, %v1337_v58  ;;  %v1452_v14 = vld [vmem:[%s6479_s3 + $0x10] sm:$0xff] }
 0x3a4   : > { %v1463_v17 = vmul.f32 %v4758_v0, %v1452_v14 }
 0x3a5   : > { %v1371_v60 = vsel %vm831_vm0, %v1361_v59, 0.0 }
 0x3a6   : > { %1372 = vadd.xlane.f32.xlu2 %v1371_v60  ;;  %v1475_v22 = vsel %vm1084_vm3, %v1463_v17, 0.0  ;;  %v1499_v17 = vld [vmem:[%s6480_s9 + $0x30] sm:$0xff] }
 0x401   : > { %v1364_v4 = vpop.xlane.xlu2 %1363 }
 0x402   : > { %v1374_v18 = vmul.f32 %v1364_v4, %v5267_v33 }
 0x404   : > { %v5470_v23 = vsub.f32 %v5431_v26, %v1374_v18  ;;  %v1481_v26 = vsel %vm1084_vm3, %v1465_v27, 0.0 }
 0x406   : > { %v1382_v30 = vmul.f32 %v5470_v23, %v5470_v23 }
 0x408   : > { %v1386_v32 = vsel %vm831_vm0, %v1382_v30, 0.0 }
 0x409   : > { %v1367_v61 = vpop.xlane.xlu0 %1366 }
 0x40a   : > { %v1375_v62 = vmul.f32 %v1367_v61, %v5267_v33 }
 0x40c   : > { %v5439_v63 = vsub.f32 %v1359_v42, %v1375_v62  ;;  %v1461_v42 = vmul.f32 %v4758_v0, %v1450_v40 }
 0x40e   : > { %v1383_v1 = vmul.f32 %v5439_v63, %v5439_v63  ;;  %v1469_v43 = vsel %vm1084_vm3, %v1461_v42, 0.0 }
 0x410   : > { %v1389_v3 = vsel %vm831_vm0, %v1383_v1, 0.0 }
 0x411   : > { %v1370_v5 = vpop.xlane.xlu1 %1369  ;;  %1390 = vadd.xlane.f32.xlu2 %v1389_v3 }
 0x412   : > { %v1376_v6 = vmul.f32 %v1370_v5, %v5267_v33 }
 0x414   : > { %v5449_v8 = vsub.f32 %v1360_v52, %v1376_v6 }
 0x416   : > { %v1384_v9 = vmul.f32 %v5449_v8, %v5449_v8 }
 0x418   : > { %v1392_v12 = vsel %vm831_vm0, %v1384_v9, 0.0 }
 0x419   : > { %1393 = vadd.xlane.f32.xlu0 %v1392_v12  ;;  %v1373_v13 = vpop.xlane.xlu2 %1372  ;;  %1491 = vadd.xlane.f32.xlu2 %v1490_v10 }
 0x41a   : > { %v1377_v15 = vmul.f32 %v1373_v13, %v5267_v33 }
 0x41c   : > { %v5463_v19 = vsub.f32 %v1361_v59, %v1377_v15 }
 0x41e   : > { %v1385_v20 = vmul.f32 %v5463_v19, %v5463_v19 }
 0x420   : > { %v1395_v24 = vsel %vm831_vm0, %v1385_v20, 0.0 }
 0x421   : > { %1396 = vadd.xlane.f32.xlu1 %v1395_v24  ;;  %1488 = vadd.xlane.f32.xlu0 %v1487_v21 }
 0x422   : > { %1476 = vadd.xlane.f32.xlu2 %v1475_v22 }
 0x429   : > { %1387 = vadd.xlane.f32.xlu1 %v1386_v32  ;;  %1473 = vadd.xlane.f32.xlu0 %v1472_v54  ;;  %v1496_v32 = vld [vmem:[%s6480_s9 + $0x18] sm:$0xff] }
 0x42a   : > { %1482 = vadd.xlane.f32.xlu2 %v1481_v26 }
 0x431   : > { %1479 = vadd.xlane.f32.xlu1 %v1478_v35 }
 0x439   : > { %1485 = vadd.xlane.f32.xlu1 %v1484_v41 }
 0x441   : > { %1470 = vadd.xlane.f32.xlu1 %v1469_v43 }
 0x484   : > { %v1391_v44 = vpop.xlane.xlu2 %1390 }
 0x485   : > { %v1399_v45 = vmul.f32 %v1391_v44, %v5267_v33 }
 0x487   : > { %v1403_v46 = vadd.f32 1e-05, %v1399_v45 }
 0x489   : > { %4769 = vrsqrt.f32 %v1403_v46  ;;  %vm1422_vm5 = vweird.f32 %v1403_v46 }
 0x48c   : > { %v1394_v49 = vpop.xlane.xlu0 %1393  ;;  %v1492_v50 = vpop.xlane.xlu2 %1491 }
 0x48d   : > { %v1400_v52 = vmul.f32 %v1394_v49, %v5267_v33  ;;  %v1508_v53 = vadd.f32 %v1500_v47, %v1492_v50  ;;  %v1495_v49 = vld [vmem:[%s6480_s9 + $0x10] sm:$0xff] }
 0x48f   : > { %v4770_v55 = vpop.eup %4769  ;;  %v1404_v56 = vadd.f32 1e-05, %v1400_v52  ;;  %1614 = vperm.xlu2 %4517, %v1508_v53  }
 0x490   : > { %v1417_v57 = vmul.f32 %v4770_v55, %v1403_v46  ;;  %vm1423_vm4 = vweird.f32 %v4770_v55 }
 0x491   : > { %4771 = vrsqrt.f32 %v1404_v56  ;;  %vm1424_vm6 = vmor %vm1422_vm5, %vm1423_vm4  ;;  %vm1432_vm9 = vweird.f32 %v1404_v56 }
 0x492   : > { %v1418_v58 = vmul.f32 %v4770_v55, %v1417_v57 }
 0x494   : > { %v1419_v59 = vmul.f32 0.5, %v1418_v58  ;;  %v1397_v60 = vpop.xlane.xlu1 %1396  ;;  %v1489_v18 = vpop.xlane.xlu0 %1488 }
 0x495   : > { %v1507_v24 = vadd.f32 %v1499_v17, %v1489_v18  ;;  %v1401_v35 = vmul.f32 %v1397_v60, %v5267_v33  ;;  %v1477_v50 = vpop.xlane.xlu2 %1476  ;;  %v1493_v17 = vld [vmem:[%s6480_s9] sm:$0xff] }
 0x496   : > { %v1420_v61 = vsub.f32 1.5, %v1419_v59  ;;  %v1503_v51 = vadd.f32 %v1495_v49, %v1477_v50 }
 0x497   : > { %v4772_v1 = vpop.eup %4771  ;;  %v1405_v36 = vadd.f32 1e-05, %v1401_v35 }
 0x498   : > { %v1421_v62 = vmul.f32 %v4770_v55, %v1420_v61  ;;  %v1427_v3 = vmul.f32 %v4772_v1, %v1404_v56  ;;  %vm1433_vm7 = vweird.f32 %v4772_v1 }
 0x499   : > { %vm1434_vm10 = vmor %vm1432_vm9, %vm1433_vm7  ;;  %vm1442_vm4 = vweird.f32 %v1405_v36 }
 0x49a   : > { %v1425_v0 = vsel %vm1424_vm6, %v4770_v55, %v1421_v62  ;;  %v1428_v9 = vmul.f32 %v4772_v1, %v1427_v3 }
 0x49b   : > { %v5502_v2 = vmul.f32 %v1425_v0, %v5439_v63 }
 0x49c   : > { %v1388_v4 = vpop.xlane.xlu1 %1387  ;;  %v1429_v10 = vmul.f32 0.5, %v1428_v9  ;;  %v1474_v58 = vpop.xlane.xlu0 %1473 }
 0x49d   : > { %v1398_v5 = vmul.f32 %v1388_v4, %v5267_v33  ;;  %v1512_v6 = vsel %vm831_vm0, %v5502_v2, 0.0  ;;  %v1483_v57 = vpop.xlane.xlu2 %1482 }
 0x49e   : > { %1513 = vadd.xlane.f32.xlu1 %v1512_v6  ;;  %v1430_v12 = vsub.f32 1.5, %v1429_v10  ;;  %v1494_v10 = vld [vmem:[%s6480_s9 + $0x8] sm:$0xff] }
 0x49f   : > { %v1402_v7 = vadd.f32 1e-05, %v1398_v5 }
 0x4a0   : > { %v1431_v16 = vmul.f32 %v4772_v1, %v1430_v12 }
 0x4a1   : > { %4773 = vrsqrt.f32 %v1402_v7  ;;  %vm1412_vm11 = vweird.f32 %v1402_v7 }
 0x4a2   : > { %v1435_v21 = vsel %vm1434_vm10, %v4772_v1, %v1431_v16  ;;  %4775 = vrsqrt.f32 %v1405_v36 }
 0x4a3   : > { %v1448_v27 = vmul.f32 %v1435_v21, %v5449_v8 }
 0x4a4   : > { %v1480_v26 = vpop.xlane.xlu1 %1479 }
 0x4a5   : > { %v1515_v31 = vsel %vm831_vm0, %v1448_v27, 0.0  ;;  %v1504_v34 = vadd.f32 %v1496_v32, %v1480_v26 }
 0x4a7   : > { %v4774_v11 = vpop.eup %4773 }
 0x4a8   : > { %v1407_v13 = vmul.f32 %v4774_v11, %v1402_v7  ;;  %vm1413_vm8 = vweird.f32 %v4774_v11  ;;  %v4776_v41 = vpop.eup %4775 }
 0x4a9   : > { %vm1414_vm12 = vmor %vm1412_vm11, %vm1413_vm8  ;;  %v1437_v40 = vmul.f32 %v4776_v41, %v1405_v36  ;;  %vm1443_vm13 = vweird.f32 %v4776_v41 }
 0x4aa   : > { %v1408_v14 = vmul.f32 %v4774_v11, %v1407_v13  ;;  %vm1444_vm5 = vmor %vm1442_vm4, %vm1443_vm13 }
 0x4ab   : > { %v1438_v42 = vmul.f32 %v4776_v41, %v1437_v40 }
 0x4ac   : > { %v1409_v15 = vmul.f32 0.5, %v1408_v14  ;;  %v1486_v8 = vpop.xlane.xlu1 %1485 }
 0x4ad   : > { %v1439_v43 = vmul.f32 0.5, %v1438_v42 }
 0x4ae   : > { %v1410_v63 = vsub.f32 1.5, %v1409_v15 }
 0x4af   : > { %v1440_v44 = vsub.f32 1.5, %v1439_v43 }
 0x4b0   : > { %v1411_v20 = vmul.f32 %v4774_v11, %v1410_v63 }
 0x4b1   : > { %v1441_v45 = vmul.f32 %v4776_v41, %v1440_v44 }
 0x4b2   : > { %v1415_v22 = vsel %vm1414_vm12, %v4774_v11, %v1411_v20  ;;  %v1502_v11 = vadd.f32 %v1494_v10, %v1474_v58 }
 0x4b3   : > { %v1446_v25 = vmul.f32 %v1415_v22, %v5470_v23  ;;  %v1498_v23 = vld [vmem:[%s6480_s9 + $0x28] sm:$0xff]  ;;  %v1445_v46 = vsel %vm1444_vm5, %v4776_v41, %v1441_v45 }
 0x4b4   : > { %v1506_v37 = vadd.f32 %v1498_v23, %v1486_v8  ;;  %v1449_v47 = vmul.f32 %v1445_v46, %v5463_v19  ;;  %v1471_v52 = vpop.xlane.xlu1 %1470 }
 0x4b5   : > { %v1509_v30 = vsel %vm831_vm0, %v1446_v25, 0.0  ;;  %v1501_v18 = vadd.f32 %v1493_v17, %v1471_v52 }
 0x4b6   : > { %1510 = vadd.xlane.f32.xlu0 %v1509_v30  ;;  %v1518_v48 = vsel %vm831_vm0, %v1449_v47, 0.0 }
 0x4b7   : > { %1609 = vperm.xlu1 %4436, %v1507_v24  }
 0x4b8   : > { %1516 = vadd.xlane.f32.xlu2 %v1515_v31 }
 0x4ca   : > { %1638 = vperm.xlu0 %4435, %v1504_v34  }
 0x4d0   : > { %1604 = vperm.xlu2 %4517, %v1506_v37  }
 0x4e9   : > { %v5533_v59 = vpop.permute.xlu2 %1614 }
 0x4f4   : > { %1519 = vadd.xlane.f32.xlu0 %v1518_v48 }
 0x508   : > { %1633 = vperm.xlu0 %4435, %v1503_v51  }
 0x511   : > { %v1514_v53 = vpop.xlane.xlu1 %1513 }
 0x512   : > { %v1522_v54 = vmul.f32 %v1514_v53, %v5267_v33 }
 0x514   : > { %v5528_v55 = vsub.f32 %v5502_v2, %v1522_v54  ;;  %v1497_v2 = vld [vmem:[%s6480_s9 + $0x20] sm:$0xff]  ;;  %s6487_s9 = smov 4  }
 0x515   : > { %v1505_v5 = vadd.f32 %v1497_v2, %v1483_v57 }
 0x516   : > { %v1530_v19 = vmul.f32 %v5528_v55, %v5528_v55 }
 0x518   : > { %v1536_v56 = vsel %vm831_vm0, %v1530_v19, 0.0 }
 0x519   : > { %1537 = vadd.xlane.f32.xlu1 %v1536_v56 }
 0x529   : > { %v1511_v60 = vpop.xlane.xlu0 %1510  ;;  %v5564_v20 = vpop.permute.xlu1 %1609 }
 0x52a   : > { %v1521_v61 = vmul.f32 %v1511_v60, %v5267_v33 }
 0x52b   : > { %v1517_v62 = vpop.xlane.xlu2 %1516 }
 0x52c   : > { %v5536_v1 = vsub.f32 %v1446_v25, %v1521_v61  ;;  %v1523_v0 = vmul.f32 %v1517_v62, %v5267_v33 }
 0x52e   : > { %v5542_v3 = vsub.f32 %v1448_v27, %v1523_v0  ;;  %v1529_v4 = vmul.f32 %v5536_v1, %v5536_v1 }
 0x530   : > { %v1533_v6 = vsel %vm831_vm0, %v1529_v4, 0.0  ;;  %v1531_v7 = vmul.f32 %v5542_v3, %v5542_v3 }
 0x532   : > { %1534 = vadd.xlane.f32.xlu0 %v1533_v6  ;;  %1599 = vperm.xlu1 %4436, %v1505_v5   ;;  %v1539_v9 = vsel %vm831_vm0, %v1531_v7, 0.0 }
 0x533   : > { %1540 = vadd.xlane.f32.xlu2 %v1539_v9  ;;  %v1605_v22 = vpop.permute.xlu2 %1604 }
 0x53c   : > { %v5553_v12 = vpop.permute.xlu0 %1638 }
 0x54b   : > { %1628 = vperm.xlu2 %4517, %v1502_v11  }
 0x567   : > { %v1520_v13 = vpop.xlane.xlu0 %1519 }
 0x568   : > { %v1524_v14 = vmul.f32 %v1520_v13, %v5267_v33 }
 0x56a   : > { %v5556_v15 = vsub.f32 %v1449_v47, %v1524_v14 }
 0x56c   : > { %v1532_v16 = vmul.f32 %v5556_v15, %v5556_v15 }
 0x56e   : > { %v1542_v63 = vsel %vm831_vm0, %v1532_v16, 0.0 }
 0x56f   : > { %1543 = vadd.xlane.f32.xlu0 %v1542_v63 }
 0x57a   : > { %v5566_v21 = vpop.permute.xlu0 %1633 }
 0x583   : > { %1623 = vperm.xlu0 %4435, %v1501_v18  }
 0x58c   : > { %v1538_v24 = vpop.xlane.xlu1 %1537 }
 0x58d   : > { %v1546_v27 = vmul.f32 %v1538_v24, %v5267_v33 }
 0x58f   : > { %v1550_v26 = vadd.f32 1e-05, %v1546_v27 }
 0x591   : > { %4777 = vrsqrt.f32 %v1550_v26  ;;  %vm1569_vm7 = vweird.f32 %v1550_v26 }
 0x597   : > { %v4778_v23 = vpop.eup %4777 }
 0x598   : > { %v1564_v36 = vmul.f32 %v4778_v23, %v1550_v26  ;;  %vm1570_vm6 = vweird.f32 %v4778_v23 }
 0x599   : > { %vm1571_vm9 = vmor %vm1569_vm7, %vm1570_vm6 }
 0x59a   : > { %v1565_v40 = vmul.f32 %v4778_v23, %v1564_v36 }
 0x59c   : > { %v1566_v44 = vmul.f32 0.5, %v1565_v40 }
 0x59e   : > { %v1567_v48 = vsub.f32 1.5, %v1566_v44 }
 0x5a0   : > { %v1568_v53 = vmul.f32 %v4778_v23, %v1567_v48 }
 0x5a2   : > { %v1572_v56 = vsel %vm1571_vm9, %v4778_v23, %v1568_v53 }
 0x5a4   : > { %v1600_v7 = vpop.permute.xlu1 %1599 }
 0x5a5   : > { %v1535_v25 = vpop.xlane.xlu0 %1534 }
 0x5a6   : > { %v1545_v30 = vmul.f32 %v1535_v25, %v5267_v33  ;;  %v1541_v31 = vpop.xlane.xlu2 %1540 }
 0x5a7   : > { %v1547_v32 = vmul.f32 %v1541_v31, %v5267_v33 }
 0x5a8   : > { %v1549_v34 = vadd.f32 1e-05, %v1545_v30 }
 0x5a9   : > { %v1551_v35 = vadd.f32 1e-05, %v1547_v32 }
 0x5aa   : > { %4779 = vrsqrt.f32 %v1549_v34  ;;  %vm1559_vm10 = vweird.f32 %v1549_v34 }
 0x5ab   : > { %4781 = vrsqrt.f32 %v1551_v35  ;;  %vm1579_vm13 = vweird.f32 %v1551_v35 }
 0x5ae   : > { %v1629_v4 = vpop.permute.xlu2 %1628 }
 0x5b0   : > { %v4780_v8 = vpop.eup %4779 }
 0x5b1   : > { %v4782_v37 = vpop.eup %4781  ;;  %v1554_v41 = vmul.f32 %v4780_v8, %v1549_v34  ;;  %vm1560_vm8 = vweird.f32 %v4780_v8 }
 0x5b2   : > { %v1574_v42 = vmul.f32 %v4782_v37, %v1551_v35  ;;  %vm1561_vm11 = vmor %vm1559_vm10, %vm1560_vm8  ;;  %vm1580_vm12 = vweird.f32 %v4782_v37 }
 0x5b3   : > { %v1555_v43 = vmul.f32 %v4780_v8, %v1554_v41  ;;  %vm1581_vm4 = vmor %vm1579_vm13, %vm1580_vm12 }
 0x5b4   : > { %v1575_v45 = vmul.f32 %v4782_v37, %v1574_v42 }
 0x5b5   : > { %v1556_v46 = vmul.f32 0.5, %v1555_v43 }
 0x5b6   : > { %v1576_v50 = vmul.f32 0.5, %v1575_v45 }
 0x5b7   : > { %v1557_v51 = vsub.f32 1.5, %v1556_v46 }
 0x5b8   : > { %v1577_v54 = vsub.f32 1.5, %v1576_v50 }
 0x5b9   : > { %v1558_v19 = vmul.f32 %v4780_v8, %v1557_v51 }
 0x5ba   : > { %v1578_v57 = vmul.f32 %v4782_v37, %v1577_v54 }
 0x5bb   : > { %v1562_v60 = vsel %vm1561_vm11, %v4780_v8, %v1558_v19 }
 0x5bc   : > { %v1582_v62 = vsel %vm1581_vm4, %v4782_v37, %v1578_v57  ;;  %v1593_v2 = vmul.f32 %v1562_v60, %v5536_v1 }
 0x5bd   : > { %v1595_v9 = vmul.f32 %v1582_v62, %v5542_v3 }
 0x5be   : > { %v1617_v13 = vmul.f32 %v1600_v7, %v1593_v2 }
 0x5bf   : > { %v1619_v63 = vmul.f32 %v5564_v20, %v1595_v9 }
 0x5c1   : > { %v1643_v3 = vadd.f32 %v5566_v21, %v1619_v63  ;;  %v1696_v63 = vld [vmem:[%s6485_s29 + $0x38] sm:$0xff] }
 0x5c3   : > { %v1647_v30 = vmax.f32 %v1643_v3, 0.0 }
 0x5e2   : > { %v1544_v47 = vpop.xlane.xlu0 %1543 }
 0x5e3   : > { %v1548_v49 = vmul.f32 %v1544_v47, %v5267_v33  ;;  %v1594_v33 = vmul.f32 %v1572_v56, %v5528_v55 }
 0x5e5   : > { %v1552_v52 = vadd.f32 1e-05, %v1548_v49  ;;  %v1618_v5 = vmul.f32 %v1605_v22, %v1594_v33 }
 0x5e7   : > { %4783 = vrsqrt.f32 %v1552_v52  ;;  %v5575_v10 = vadd.f32 %v1629_v4, %v1618_v5  ;;  %vm1589_vm6 = vweird.f32 %v1552_v52 }
 0x5e9   : > { %v1646_v1 = vmax.f32 %v5575_v10, 0.0  ;;  %v1689_v10 = vld [vmem:[%s6485_s29] sm:$0xff] }
 0x5ed   : > { %v4784_v58 = vpop.eup %4783 }
 0x5ee   : > { %v1584_v61 = vmul.f32 %v4784_v58, %v1552_v52  ;;  %vm1590_vm5 = vweird.f32 %v4784_v58 }
 0x5ef   : > { %vm1591_vm7 = vmor %vm1589_vm6, %vm1590_vm5 }
 0x5f0   : > { %v1585_v0 = vmul.f32 %v4784_v58, %v1584_v61 }
 0x5f2   : > { %v1586_v6 = vmul.f32 0.5, %v1585_v0 }
 0x5f4   : > { %v1587_v11 = vsub.f32 1.5, %v1586_v6 }
 0x5f5   : > { %v1624_v14 = vpop.permute.xlu0 %1623 }
 0x5f6   : > { %v1588_v16 = vmul.f32 %v4784_v58, %v1587_v11  ;;  %v1641_v55 = vadd.f32 %v1624_v14, %v1617_v13  ;;  %v1693_v11 = vld [vmem:[%s6485_s29 + $0x20] sm:$0xff]  ;;  %v1694_v13 = vld [vmem:[%s6485_s29 + $0x28] sm:$0xff]  ;;  %v1691_v14 = vld [vmem:[%s6485_s29 + $0x10] sm:$0xff] }
 0x5f8   : > { %v1592_v17 = vsel %vm1591_vm7, %v4784_v58, %v1588_v16  ;;  %v1645_v18 = vmax.f32 %v1641_v55, 0.0  ;;  %v1690_v16 = vld [vmem:[%s6485_s29 + $0x8] sm:$0xff]  ;;  %v1692_v55 = vld [vmem:[%s6485_s29 + $0x18] sm:$0xff] }
 0x5f9   : > { %v1596_v22 = vmul.f32 %v1592_v17, %v5556_v15  ;;  %v1649_v17 = vld [vmem:[#allocation2] sm:$0xff] }
 0x5fa   : > { %v4518_v24 = vpack.i.bf16 %v1645_v18, %v1646_v1 }
 0x5fb   : > { %v1620_v25 = vmul.f32 %v5533_v59, %v1596_v22  ;;  %v1651_v22 = vld [vmem:[#allocation2 + $0x10] sm:$0xff] }
 0x5fc   : > { %4519 = vrot.lane.b32.xlu2 %v4518_v24, %s6481_s0 }
 0x5fd   : > { %v1644_v27 = vadd.f32 %v5553_v12, %v1620_v25 }
 0x5ff   : > { %v1648_v31 = vmax.f32 %v1644_v27, 0.0 }
 0x601   : > { %v4533_v26 = vpack.i.bf16 %v1647_v30, %v1648_v31 }
 0x603   : > { %4534 = vrot.lane.b32.xlu0 %v4533_v26, %s6433_s5  ;;  %4524 = vrot.lane.b32.xlu1 %v4533_v26, %s6481_s0 }
 0x604   : > { %4529 = vrot.lane.b32.xlu2 %v4533_v26, %s6482_s13 }
 0x60b   : > { %4544 = vrot.lane.b32.xlu1 %v4533_v26, %s6483_s4  ;;  %4539 = vrot.lane.b32.xlu0 %v4518_v24, %s6482_s13 }
 0x60c   : > { %4554 = vrot.lane.b32.xlu2 %v4518_v24, %s6483_s4 }
 0x613   : > { %4549 = vrot.lane.b32.xlu1 %v4518_v24, %s6433_s5  ;;  %s6486_s5 = smov 125  }
 0x656   : > { %v4520_v59 = vpop.permute.xlu2 %4519 }
 0x657   : > { %v4522_v51 = vunpack.i.h.bf16 %v4520_v59  ;;  %v4521_v52 = vunpack.i.l.bf16 %v4520_v59 }
 0x659   : > { %v1749_v57 = vsel %vm1044_vm14, %v4522_v51, %v1645_v18  ;;  %v1750_v58 = vsel %vm1044_vm14, %v4521_v52, %v1646_v1  ;;  %v1695_v1 = vld [vmem:[%s6485_s29 + $0x30] sm:$0xff]  ;;  %v1650_v18 = vld [vmem:[#allocation2 + $0x8] sm:$0xff] }
 0x65e   : > { %v4530_v32 = vpop.permute.xlu2 %4529 }
 0x65f   : > { %v4532_v23 = vunpack.i.h.bf16 %v4530_v32  ;;  %v4531_v8 = vunpack.i.l.bf16 %v4530_v32 }
 0x666   : > { %v4555_v19 = vpop.permute.xlu2 %4554 }
 0x667   : > { %v4557_v61 = vunpack.i.h.bf16 %v4555_v19  ;;  %v4556_v62 = vunpack.i.l.bf16 %v4555_v19  ;;  %v1656_v19 = vld [vmem:[#allocation2 + $0x38] sm:$0xff] }
 0x675   : > { %v4525_v15 = vpop.permute.xlu1 %4524  ;;  %v4535_v12 = vpop.permute.xlu0 %4534 }
 0x676   : > { %v4527_v20 = vunpack.i.h.bf16 %v4525_v15  ;;  %v4526_v21 = vunpack.i.l.bf16 %v4525_v15  ;;  %v4537_v41 = vunpack.i.h.bf16 %v4535_v12  ;;  %v4536_v40 = vunpack.i.l.bf16 %v4535_v12 }
 0x678   : > { %v1751_v34 = vsel %vm1044_vm14, %v4527_v20, %v1647_v30  ;;  %v1752_v35 = vsel %vm1044_vm14, %v4526_v21, %v1648_v31  ;;  %v1652_v31 = vld [vmem:[#allocation2 + $0x18] sm:$0xff]  ;;  %v1653_v21 = vld [vmem:[#allocation2 + $0x20] sm:$0xff] }
 0x679   : > { %v1755_v36 = vsel %vm1049_vm15, %v1751_v34, %v4532_v23  ;;  %v1756_v37 = vsel %vm1049_vm15, %v1752_v35, %v4531_v8 }
 0x67a   : > { %v1759_v45 = vsel %vm1054_vm1, %v1755_v36, %v4537_v41  ;;  %v1760_v46 = vsel %vm1054_vm1, %v1756_v37, %v4536_v40  ;;  %v1673_v41 = vld [vmem:[#allocation2 + $0xc0] sm:$0xff] }
 0x67d   : > { %v4545_v42 = vpop.permute.xlu1 %4544  ;;  %v4540_v47 = vpop.permute.xlu0 %4539 }
 0x67e   : > { %v4547_v43 = vunpack.i.h.bf16 %v4545_v42  ;;  %v4546_v44 = vunpack.i.l.bf16 %v4545_v42  ;;  %v4542_v53 = vunpack.i.h.bf16 %v4540_v47  ;;  %v4541_v54 = vunpack.i.l.bf16 %v4540_v47 }
 0x680   : > { %v5598_v48 = vsel %vm1059_vm2, %v1759_v45, %v4547_v43  ;;  %v5601_v49 = vsel %vm1059_vm2, %v1760_v46, %v4546_v44  ;;  %v1753_v0 = vsel %vm1049_vm15, %v1749_v57, %v4542_v53  ;;  %v1754_v2 = vsel %vm1049_vm15, %v1750_v58, %v4541_v54  ;;  %v1654_v45 = vld [vmem:[#allocation2 + $0x28] sm:$0xff]  ;;  %v1657_v46 = vld [vmem:[#allocation2 + $0x40] sm:$0xff]  ;;  %v1676_v58 = vld [vmem:[#allocation2 + $0xd8] sm:$0xff] }
 0x681   : > { %1850 = vmatpush.msra.mxu3 %v5601_v49  ;;  %v4568_v50 = vpack.i.bf16 %v5598_v48, %v5601_v49  ;;  %v1661_v53 = vld [vmem:[#allocation2 + $0x60] sm:$0xff]  ;;  %v1658_v54 = vld [vmem:[#allocation2 + $0x48] sm:$0xff] }
 0x682   : > { %v1662_v57 = vld [vmem:[#allocation2 + $0x68] sm:$0xff] }
 0x683   : > { %4569 = vrot.lane.b32.xlu2 %v4568_v50, %s6439_s30  ;;  %4559 = vrot.lane.b32.xlu0 %v4568_v50, %s6484_s7 }
 0x684   : > { %1851 = vmatpush.msra.mxu3 %v5598_v48 }
 0x685   : > { %v4550_v56 = vpop.permute.xlu1 %4549 }
 0x686   : > { %v4552_v60 = vunpack.i.h.bf16 %v4550_v56  ;;  %v4551_v33 = vunpack.i.l.bf16 %v4550_v56  ;;  %v1659_v56 = vld [vmem:[#allocation2 + $0x50] sm:$0xff] }
 0x688   : > { %v1757_v4 = vsel %vm1054_vm1, %v1753_v0, %v4552_v60  ;;  %v1758_v5 = vsel %vm1054_vm1, %v1754_v2, %v4551_v33  ;;  %v1660_v60 = vld [vmem:[#allocation2 + $0x58] sm:$0xff]  ;;  %v1665_v33 = vld [vmem:[#allocation2 + $0x80] sm:$0xff]  ;;  %v1666_v0 = vld [vmem:[#allocation2 + $0x88] sm:$0xff] }
 0x689   : > { %v5616_v6 = vsel %vm1059_vm2, %v1757_v4, %v4557_v61  ;;  %v5619_v7 = vsel %vm1059_vm2, %v1758_v5, %v4556_v62  ;;  %v1663_v61 = vld [vmem:[#allocation2 + $0x70] sm:$0xff]  ;;  %v1685_v62 = vld [vmem:[#allocation2 + $0x120] sm:$0xff]  ;;  %v1664_v4 = vld [vmem:[#allocation2 + $0x78] sm:$0xff] }
 0x68a   : > { %1852 = vmatpush.msra.mxu3 %v5619_v7  ;;  %v4563_v9 = vpack.i.bf16 %v5616_v6, %v5619_v7  ;;  %v1669_v2 = vld [vmem:[#allocation2 + $0xa0] sm:$0xff]  ;;  %v1686_v5 = vld [vmem:[#allocation2 + $0x128] sm:$0xff] }
 0x68b   : > { %4579 = vrot.lane.b32.xlu0 %v4568_v50, %s6481_s0 }
 0x68c   : > { %4564 = vrot.lane.b32.xlu1 %v4563_v9, %s6484_s7  ;;  %4574 = vrot.lane.b32.xlu2 %v4563_v9, %s6439_s30 }
 0x68d   : > { %1853 = vmatpush.msra.mxu3 %v5616_v6 }
 0x68e   : > { %4255 = vmatmul.msk.f32.vlgmr.msra.gmra.mxu3 %vm1084_vm3, %v1649_v17 }
 0x693   : > { %4584 = vrot.lane.b32.xlu0 %v4563_v9, %s6481_s0 }
 0x694   : > { %4589 = vrot.lane.b32.xlu1 %v4568_v50, %s6486_s5  ;;  %2040 = vperm.xlu2 %4517, %v1689_v10   ;;  %v1674_v50 = vld [vmem:[#allocation2 + $0xc8] sm:$0xff]  ;;  %v1687_v10 = vld [vmem:[#allocation2 + $0x130] sm:$0xff] }
 0x696   : > { %4256 = vmatmul.msk.f32.gmra.mxu3 %vm1084_vm3, %v1650_v18  ;;  %v1765_v18 = vld [vmem:[%s6396_s12] sm:$0xff] }
 0x69b   : > { %2281 = vperm.xlu0 %4435, %v1693_v11   ;;  %v1668_v11 = vld [vmem:[#allocation2 + $0x98] sm:$0xff] }
 0x69c   : > { %4594 = vrot.lane.b32.xlu1 %v4563_v9, %s6486_s5  ;;  %2286 = vperm.xlu2 %4517, %v1694_v13   ;;  %v1677_v9 = vld [vmem:[#allocation2 + $0xe0] sm:$0xff]  ;;  %v1671_v13 = vld [vmem:[#allocation2 + $0xb0] sm:$0xff] }
 0x69e   : > { %4257 = vmatmul.msk.f32.gmra.mxu3 %vm1084_vm3, %v1651_v22  ;;  %v1767_v22 = vld [vmem:[%s6396_s12 + $0x10] sm:$0xff] }
 0x6a3   : > { %2050 = vperm.xlu0 %4435, %v1691_v14   ;;  %v1678_v14 = vld [vmem:[#allocation2 + $0xe8] sm:$0xff] }
 0x6a4   : > { %2045 = vperm.xlu1 %4436, %v1690_v16   ;;  %2055 = vperm.xlu2 %4517, %v1692_v55   ;;  %v1688_v16 = vld [vmem:[#allocation2 + $0x138] sm:$0xff]  ;;  %v1766_v55 = vld [vmem:[%s6396_s12 + $0x8] sm:$0xff] }
 0x6a6   : > { %4258 = vmatmul.msk.f32.gmra.mxu3 %vm1084_vm3, %v1652_v31  ;;  %v1681_v31 = vld [vmem:[#allocation2 + $0x100] sm:$0xff] }
 0x6ab   : > { %2296 = vperm.xlu0 %4435, %v1696_v63   ;;  %v1768_v63 = vld [vmem:[%s6396_s12 + $0x18] sm:$0xff] }
 0x6ac   : > { %2291 = vperm.xlu1 %4436, %v1695_v1   ;;  %v2388_v1 = vsel %vm1084_vm3, %v1766_v55, 0.0  ;;  %v2389_v17 = vsel %vm1084_vm3, %v1768_v63, 0.0 }
 0x6dd   : > { %v4570_v27 = vpop.permute.xlu2 %4569 }
 0x6de   : > { %v4571_v32 = vunpack.i.l.bf16 %v4570_v27  ;;  %v4572_v35 = vunpack.i.h.bf16 %v4570_v27 }
 0x6e6   : > { %v4575_v34 = vpop.permute.xlu2 %4574 }
 0x6e7   : > { %v4576_v8 = vunpack.i.l.bf16 %v4575_v34  ;;  %v4577_v42 = vunpack.i.h.bf16 %v4575_v34 }
 0x6f5   : > { %v4560_v24 = vpop.permute.xlu0 %4559 }
 0x6f6   : > { %v4561_v3 = vunpack.i.l.bf16 %v4560_v24  ;;  %v4562_v25 = vunpack.i.h.bf16 %v4560_v24  ;;  %v2390_v24 = vadd.f32 %v2389_v17, %v2388_v1 }
 0x6f8   : > { %1809 = vmatpush.msra.mxu2 %v4561_v3  ;;  %2086 = vmatpush.msrb.mxu3 %v4561_v3  ;;  %v2385_v3 = vsel %vm1084_vm3, %v1765_v18, 0.0 }
 0x6fa   : > { %1810 = vmatpush.msra.mxu2 %v4562_v25  ;;  %2087 = vmatpush.msrb.mxu3 %v4562_v25  ;;  %v2386_v25 = vsel %vm1084_vm3, %v1767_v22, 0.0 }
 0x6fb   : > { %v2387_v27 = vadd.f32 %v2386_v25, %v2385_v3 }
 0x6fd   : > { %v5658_v30 = vpop.permute.xlu0 %4579 }
 0x6fe   : > { %v4581_v26 = vunpack.i.l.bf16 %v5658_v30  ;;  %v4565_v59 = vpop.permute.xlu1 %4564  ;;  %v4582_v12 = vunpack.i.h.bf16 %v5658_v30  ;;  %v1672_v30 = vld [vmem:[#allocation2 + $0xb8] sm:$0xff] }
 0x6ff   : > { %v4566_v15 = vunpack.i.l.bf16 %v4565_v59  ;;  %v4567_v20 = vunpack.i.h.bf16 %v4565_v59  ;;  %v1682_v59 = vld [vmem:[#allocation2 + $0x108] sm:$0xff] }
 0x700   : > { %1903 = vmatpush.msra.mxu0 %v4581_v26 }
 0x701   : > { %1811 = vmatpush.msra.mxu2 %v4566_v15  ;;  %2088 = vmatpush.msrb.mxu3 %v4566_v15  ;;  %v1680_v15 = vld [vmem:[#allocation2 + $0xf8] sm:$0xff] }
 0x702   : > { %1904 = vmatpush.msra.mxu0 %v4582_v12 }
 0x703   : > { %1812 = vmatpush.msra.mxu2 %v4567_v20  ;;  %2089 = vmatpush.msrb.mxu3 %v4567_v20  ;;  %v1684_v20 = vld [vmem:[#allocation2 + $0x118] sm:$0xff] }
 0x704   : > { %4251 = vmatmul.msk.f32.vlgmr.msra.gmra.mxu2 %vm1084_vm3, %v1653_v21  ;;  %4271 = vmatmul.msk.f32.vlgmr.msrb.gmra.mxu3 %vm1084_vm3, %v1673_v41 }
 0x705   : > { %2258 = vmatpush.msra.mxu3 %v4571_v32  ;;  %2017 = vmatpush.msrb.mxu2 %v4571_v32  ;;  %v4585_v23 = vpop.permute.xlu0 %4584 }
 0x706   : > { %v4586_v36 = vunpack.i.l.bf16 %v4585_v23  ;;  %v4590_v37 = vpop.permute.xlu1 %4589  ;;  %v4587_v43 = vunpack.i.h.bf16 %v4585_v23 }
 0x707   : > { %2259 = vmatpush.msra.mxu3 %v4572_v35  ;;  %v4591_v40 = vunpack.i.l.bf16 %v4590_v37  ;;  %2018 = vmatpush.msrb.mxu2 %v4572_v35  ;;  %v4592_v44 = vunpack.i.h.bf16 %v4590_v37 }
 0x708   : > { %1905 = vmatpush.msra.mxu0 %v4586_v36 }
 0x709   : > { %2260 = vmatpush.msra.mxu3 %v4576_v8  ;;  %2019 = vmatpush.msrb.mxu2 %v4576_v8 }
 0x70a   : > { %1960 = vmatpush.msra.mxu1 %v4591_v40  ;;  %1906 = vmatpush.msra.mxu0 %v4587_v43 }
 0x70b   : > { %2261 = vmatpush.msra.mxu3 %v4577_v42  ;;  %2020 = vmatpush.msrb.mxu2 %v4577_v42 }
 0x70c   : > { %1961 = vmatpush.msra.mxu1 %v4592_v44  ;;  %2127 = vmatpush.msrb.mxu0 %v5601_v49  ;;  %v1655_v49 = vld [vmem:[#allocation2 + $0x30] sm:$0xff] }
 0x70d   : > { %2213 = vmatpush.msra.mxu2 %v4591_v40  ;;  %4259 = vmatmul.msk.f32.vlgmr.msra.gmra.mxu0 %vm1084_vm3, %v1657_v46 }
 0x70e   : > { %4252 = vmatmul.msk.f32.gmra.mxu2 %vm1084_vm3, %v1654_v45  ;;  %2128 = vmatpush.msrb.mxu0 %v5598_v48  ;;  %v4595_v47 = vpop.permute.xlu1 %4594  ;;  %v1675_v48 = vld [vmem:[#allocation2 + $0xd0] sm:$0xff] }
 0x70f   : > { %2214 = vmatpush.msra.mxu2 %v4592_v44  ;;  %v4596_v51 = vunpack.i.l.bf16 %v4595_v47  ;;  %4272 = vmatmul.msk.f32.gmra.mxu3 %vm1084_vm3, %v1674_v50  ;;  %v4597_v52 = vunpack.i.h.bf16 %v4595_v47 }
 0x710   : > { %2129 = vmatpush.msrb.mxu0 %v5619_v7  ;;  %v1670_v7 = vld [vmem:[#allocation2 + $0xa8] sm:$0xff] }
 0x711   : > { %1962 = vmatpush.msra.mxu1 %v4596_v51  ;;  %2215 = vmatpush.msra.mxu2 %v4596_v51  ;;  %v1855_v21 = vpop.f32.mrf.mxu3  ;;  %v2041_v51 = vpop.permute.xlu2 %2040 }
 0x712   : > { %2130 = vmatpush.msrb.mxu0 %v5616_v6  ;;  %v1667_v6 = vld [vmem:[#allocation2 + $0x90] sm:$0xff] }
 0x713   : > { %1963 = vmatpush.msra.mxu1 %v4597_v52  ;;  %2216 = vmatpush.msra.mxu2 %v4597_v52 }
 0x714   : > { %4263 = vmatmul.msk.f32.vlgmr.msra.gmra.mxu1 %vm1084_vm3, %v1661_v53  ;;  %2329 = vmatpush.msra.mxu0 %v1768_v63 }
 0x715   : > { %4260 = vmatmul.msk.f32.gmra.mxu0 %vm1084_vm3, %v1658_v54  ;;  %2168 = vmatpush.msrb.mxu1 %v4581_v26  ;;  %v1679_v26 = vld [vmem:[#allocation2 + $0xf0] sm:$0xff] }
 0x716   : > { %4253 = vmatmul.msk.f32.gmra.mxu2 %vm1084_vm3, %v1655_v49  ;;  %2330 = vmatpush.msra.mxu0 %v1767_v22 }
 0x717   : > { %4273 = vmatmul.msk.f32.gmra.mxu3 %vm1084_vm3, %v1675_v48  ;;  %2169 = vmatpush.msrb.mxu1 %v4582_v12  ;;  %v1683_v12 = vld [vmem:[#allocation2 + $0x110] sm:$0xff] }
 0x719   : > { %2170 = vmatpush.msrb.mxu1 %v4586_v36  ;;  %v1858_v32 = vpop.f32.mrf.mxu3 }
 0x71b   : > { %2171 = vmatpush.msrb.mxu1 %v4587_v43 }
 0x71c   : > { %4264 = vmatmul.msk.f32.gmra.mxu1 %vm1084_vm3, %v1662_v57 }
 0x71d   : > { %4261 = vmatmul.msk.f32.gmra.mxu0 %vm1084_vm3, %v1659_v56  ;;  %2370 = vmatpush.msra.mxu1 %v1766_v55 }
 0x71e   : > { %4254 = vmatmul.msk.f32.gmra.mxu2 %vm1084_vm3, %v1656_v19  ;;  %v2282_v19 = vpop.permute.xlu0 %2281 }
 0x71f   : > { %4274 = vmatmul.msk.f32.gmra.mxu3 %vm1084_vm3, %v1676_v58  ;;  %2371 = vmatpush.msra.mxu1 %v1765_v18 }
 0x721   : > { %v1861_v35 = vpop.f32.mrf.mxu3 }
 0x724   : > { %4265 = vmatmul.msk.f32.gmra.mxu1 %vm1084_vm3, %v1663_v61 }
 0x725   : > { %4262 = vmatmul.msk.f32.gmra.mxu0 %vm1084_vm3, %v1660_v60  ;;  %v2046_v60 = vpop.permute.xlu1 %2045 }
 0x726   : > { %4267 = vmatmul.msk.f32.vlgmr.msrb.gmra.mxu2 %vm1084_vm3, %v1665_v33 }
 0x727   : > { %4287 = vmatmul.msk.f32.vlgmr.msra.gmra.mxu3 %vm1084_vm3, %v1685_v62  ;;  %2413 = vmatpush.msrb.mxu2 %v2390_v24 }
 0x729   : > { %2414 = vmatpush.msrb.mxu2 %v2387_v27  ;;  %v1864_v8 = vpop.f32.mrf.mxu3 }
 0x72c   : > { %4266 = vmatmul.msk.f32.gmra.mxu1 %vm1084_vm3, %v1664_v4 }
 0x72d   : > { %4275 = vmatmul.msk.f32.vlgmr.msrb.gmra.mxu0 %vm1084_vm3, %v1669_v2  ;;  %v2287_v2 = vpop.permute.xlu2 %2286 }
 0x72e   : > { %4268 = vmatmul.msk.f32.gmra.mxu2 %vm1084_vm3, %v1666_v0 }
 0x72f   : > { %4288 = vmatmul.msk.f32.gmra.mxu3 %vm1084_vm3, %v1686_v5 }
 0x734   : > { %4279 = vmatmul.msk.f32.vlgmr.msrb.gmra.mxu1 %vm1084_vm3, %v1677_v9 }
 0x735   : > { %4276 = vmatmul.msk.f32.gmra.mxu0 %vm1084_vm3, %v1670_v7  ;;  %v2056_v17 = vpop.permute.xlu2 %2055 }
 0x736   : > { %4269 = vmatmul.msk.f32.gmra.mxu2 %vm1084_vm3, %v1667_v6 }
 0x737   : > { %4289 = vmatmul.msk.f32.gmra.mxu3 %vm1084_vm3, %v1687_v10  ;;  %v2051_v10 = vpop.permute.xlu0 %2050 }
 0x73c   : > { %4280 = vmatmul.msk.f32.gmra.mxu1 %vm1084_vm3, %v1678_v14 }
 0x73d   : > { %4277 = vmatmul.msk.f32.gmra.mxu0 %vm1084_vm3, %v1671_v13 }
 0x73e   : > { %4270 = vmatmul.msk.f32.gmra.mxu2 %vm1084_vm3, %v1668_v11 }
 0x73f   : > { %4290 = vmatmul.msk.f32.gmra.mxu3 %vm1084_vm3, %v1688_v16 }
 0x744   : > { %4281 = vmatmul.msk.f32.gmra.mxu1 %vm1084_vm3, %v1679_v26 }
 0x745   : > { %4278 = vmatmul.msk.f32.gmra.mxu0 %vm1084_vm3, %v1672_v30 }
 0x746   : > { %4283 = vmatmul.msk.f32.vlgmr.msra.gmra.mxu2 %vm1084_vm3, %v1681_v31 }
 0x74c   : > { %4282 = vmatmul.msk.f32.gmra.mxu1 %vm1084_vm3, %v1680_v15 }
 0x74e   : > { %4284 = vmatmul.msk.f32.gmra.mxu2 %vm1084_vm3, %v1682_v59 }
 0x756   : > { %4285 = vmatmul.msk.f32.gmra.mxu2 %vm1084_vm3, %v1683_v12 }
 0x75e   : > { %4286 = vmatmul.msk.f32.gmra.mxu2 %vm1084_vm3, %v1684_v20 }
 0x766   : > { %4299 = vmatmul.msk.f32.vlgmr.msrb.gmra.mxu2 %vm831_vm0, %v5301_v39 }
 0x76e   : > { %4300 = vmatmul.msk.f32.gmra.mxu2 %vm831_vm0, %v5299_v38 }
 0x776   : > { %4301 = vmatmul.msk.f32.gmra.mxu2 %vm831_vm0, %v5291_v29 }
 0x77e   : > { %4302 = vmatmul.msk.f32.gmra.mxu2 %vm831_vm0, %v5289_v28 }
 0x787   : > { %v1814_v34 = vpop.f32.mrf.mxu2  ;;  %v2091_v40 = vpop.f32.mrf.mxu3 }
 0x788   : > { %v1856_v38 = vadd.f32 %v1855_v21, %v1814_v34 }
 0x78a   : > { %v1908_v36 = vpop.f32.mrf.mxu0 }
 0x78b   : > { %v1920_v45 = vadd.f32 %v1908_v36, %v1856_v38  ;;  %v2292_v38 = vpop.permute.xlu1 %2291 }
 0x791   : > { %v1817_v23 = vpop.f32.mrf.mxu2  ;;  %v1965_v37 = vpop.f32.mrf.mxu1 }
 0x792   : > { %v1911_v39 = vpop.f32.mrf.mxu0  ;;  %v2094_v44 = vpop.f32.mrf.mxu3  ;;  %v1977_v46 = vadd.f32 %v1965_v37, %v1920_v45  ;;  %v1859_v50 = vadd.f32 %v1858_v32, %v1817_v23 }
 0x794   : > { %v1921_v49 = vadd.f32 %v1911_v39, %v1859_v50 }
 0x799   : > { %v1820_v41 = vpop.f32.mrf.mxu2  ;;  %v1968_v42 = vpop.f32.mrf.mxu1 }
 0x79a   : > { %v1914_v29 = vpop.f32.mrf.mxu0  ;;  %v2097_v54 = vpop.f32.mrf.mxu3  ;;  %v1978_v48 = vadd.f32 %v1968_v42, %v1921_v49  ;;  %v1862_v57 = vadd.f32 %v1861_v35, %v1820_v41 }
 0x79c   : > { %v1922_v0 = vadd.f32 %v1914_v29, %v1862_v57 }
 0x7a1   : > { %v1823_v43 = vpop.f32.mrf.mxu2  ;;  %v1971_v52 = vpop.f32.mrf.mxu1 }
 0x7a2   : > { %v1917_v33 = vpop.f32.mrf.mxu0  ;;  %v1979_v4 = vadd.f32 %v1971_v52, %v1922_v0  ;;  %v2100_v6 = vpop.f32.mrf.mxu3  ;;  %v1865_v7 = vadd.f32 %v1864_v8, %v1823_v43 }
 0x7a3   : > { %v2297_v52 = vpop.permute.xlu0 %2296 }
 0x7a4   : > { %v1923_v14 = vadd.f32 %v1917_v33, %v1865_v7  ;;  %v5013_v7 = vmov 32.0  }
 0x7a5   : > { %4785 = vrcp.f32 %v5013_v7 }
 0x7a9   : > { %v2022_v47 = vpop.f32.mrf.mxu2  ;;  %v1974_v62 = vpop.f32.mrf.mxu1 }
 0x7aa   : > { %v2034_v28 = vadd.f32 %v2022_v47, %v1977_v46  ;;  %v2132_v13 = vpop.f32.mrf.mxu0  ;;  %v1980_v55 = vadd.f32 %v1974_v62, %v1923_v14  ;;  %v2263_v18 = vpop.f32.mrf.mxu3 }
 0x7ab   : > { %v2133_v24 = vadd.f32 %v2132_v13, %v2091_v40 }
 0x7ac   : > { %v2058_v53 = vadd.f32 %v2041_v51, %v2034_v28 }
 0x7ae   : > { %4295 = vmatmul.msk.f32.vlgmr.msra.gmra.mxu1 %vm831_vm0, %v2058_v53 }
 0x7b1   : > { %v2025_v56 = vpop.f32.mrf.mxu2  ;;  %v2173_v16 = vpop.f32.mrf.mxu1 }
 0x7b2   : > { %v2035_v58 = vadd.f32 %v2025_v56, %v1978_v48  ;;  %v2135_v3 = vpop.f32.mrf.mxu0  ;;  %v2185_v25 = vadd.f32 %v2173_v16, %v2133_v24  ;;  %v2266_v59 = vpop.f32.mrf.mxu3 }
 0x7b3   : > { %v2136_v15 = vadd.f32 %v2135_v3, %v2094_v44 }
 0x7b4   : > { %v2059_v61 = vadd.f32 %v2046_v60, %v2035_v58 }
 0x7b6   : > { %4296 = vmatmul.msk.f32.gmra.mxu1 %vm831_vm0, %v2059_v61 }
 0x7b9   : > { %v2028_v5 = vpop.f32.mrf.mxu2  ;;  %v2176_v27 = vpop.f32.mrf.mxu1 }
 0x7ba   : > { %v2036_v9 = vadd.f32 %v2028_v5, %v1979_v4  ;;  %v2186_v20 = vadd.f32 %v2176_v27, %v2136_v15  ;;  %v2138_v21 = vpop.f32.mrf.mxu0  ;;  %v2269_v37 = vpop.f32.mrf.mxu3  ;;  %v5760_v27 = vld [vmem:[%s5233_s1] ss:$0 sm:$0xff]  ;;  %v2529_v15 = vld [vmem:[%s6394_s10 + $0x30] sm:$0xff] }
 0x7bb   : > { %v2139_v8 = vadd.f32 %v2138_v21, %v2097_v54  ;;  %v2525_v21 = vld [vmem:[%s6394_s10 + $0x10] sm:$0xff] }
 0x7bc   : > { %v2060_v11 = vadd.f32 %v2051_v10, %v2036_v9  ;;  %v4786_v9 = vpop.eup %4785 }
 0x7bd   : > { %v2441_v10 = vmul.f32 32.0, %v4786_v9 }
 0x7be   : > { %4297 = vmatmul.msk.f32.gmra.mxu1 %vm831_vm0, %v2060_v11 }
 0x7bf   : > { %v2442_v11 = vsub.f32 1.0, %v2441_v10 }
 0x7c1   : > { %v2031_v63 = vpop.f32.mrf.mxu2  ;;  %v2179_v35 = vpop.f32.mrf.mxu1  ;;  %v2443_v13 = vmul.f32 %v4786_v9, %v2442_v11 }
 0x7c2   : > { %v2037_v1 = vadd.f32 %v2031_v63, %v1980_v55  ;;  %v2187_v41 = vadd.f32 %v2179_v35, %v2139_v8  ;;  %v2141_v42 = vpop.f32.mrf.mxu0  ;;  %v2272_v50 = vpop.f32.mrf.mxu3  ;;  %v2533_v35 = vmul.f32 %v5760_v27, %v2525_v21  ;;  %v2569_v21 = vld [vmem:[%s6395_s11 + $0x30] sm:$0xff] }
 0x7c3   : > { %v2142_v45 = vadd.f32 %v2141_v42, %v2100_v6  ;;  %v2444_v14 = vadd.f32 %v4786_v9, %v2443_v13  ;;  %v2527_v42 = vld [vmem:[%s6394_s10 + $0x20] sm:$0xff] }
 0x7c4   : > { %v2061_v22 = vadd.f32 %v2056_v17, %v2037_v1 }
 0x7c6   : > { %4298 = vmatmul.msk.f32.gmra.mxu1 %vm831_vm0, %v2061_v22 }
 0x7c9   : > { %v2218_v30 = vpop.f32.mrf.mxu2  ;;  %v2182_v44 = vpop.f32.mrf.mxu1 }
 0x7ca   : > { %v2230_v31 = vadd.f32 %v2218_v30, %v2185_v25  ;;  %v2188_v29 = vadd.f32 %v2182_v44, %v2142_v45  ;;  %v2526_v44 = vld [vmem:[%s6394_s10 + $0x18] sm:$0xff] }
 0x7cc   : > { %v2275_v26 = vadd.f32 %v2263_v18, %v2230_v31  ;;  %v2530_v18 = vld [vmem:[%s6394_s10 + $0x38] sm:$0xff] }
 0x7cd   : > { %v2538_v30 = vmul.f32 %v5760_v27, %v2530_v18 }
 0x7ce   : > { %v2299_v12 = vadd.f32 %v2282_v19, %v2275_v26 }
 0x7d0   : > { %4291 = vmatmul.msk.f32.vlgmr.msra.gmra.mxu0 %vm831_vm0, %v2299_v12 }
 0x7d1   : > { %v2221_v32 = vpop.f32.mrf.mxu2 }
 0x7d2   : > { %v2231_v34 = vadd.f32 %v2221_v32, %v2186_v20 }
 0x7d4   : > { %v2276_v23 = vadd.f32 %v2266_v59, %v2231_v34  ;;  %v2560_v59 = vsel %vm1084_vm3, %v2538_v30, 0.0  ;;  %v2537_v34 = vmul.f32 %v5760_v27, %v2529_v15 }
 0x7d6   : > { %v2300_v36 = vadd.f32 %v2287_v2, %v2276_v23 }
 0x7d8   : > { %4292 = vmatmul.msk.f32.gmra.mxu0 %vm831_vm0, %v2300_v36 }
 0x7d9   : > { %v2224_v40 = vpop.f32.mrf.mxu2 }
 0x7da   : > { %v2232_v39 = vadd.f32 %v2224_v40, %v2187_v41  ;;  %v2545_v41 = vsel %vm1084_vm3, %v2533_v35, 0.0 }
 0x7dc   : > { %v2277_v43 = vadd.f32 %v2269_v37, %v2232_v39  ;;  %v2557_v37 = vsel %vm1084_vm3, %v2537_v34, 0.0 }
 0x7de   : > { %v2301_v46 = vadd.f32 %v2292_v38, %v2277_v43  ;;  %v2535_v43 = vmul.f32 %v5760_v27, %v2527_v42 }
 0x7e0   : > { %4293 = vmatmul.msk.f32.gmra.mxu0 %vm831_vm0, %v2301_v46  ;;  %v2551_v45 = vsel %vm1084_vm3, %v2535_v43, 0.0 }
 0x7e1   : > { %v2227_v47 = vpop.f32.mrf.mxu2 }
 0x7e2   : > { %v2233_v28 = vadd.f32 %v2227_v47, %v2188_v29  ;;  %v2534_v29 = vmul.f32 %v5760_v27, %v2526_v44 }
 0x7e4   : > { %v2278_v51 = vadd.f32 %v2272_v50, %v2233_v28  ;;  %v2548_v47 = vsel %vm1084_vm3, %v2534_v29, 0.0  ;;  %v2528_v50 = vld [vmem:[%s6394_s10 + $0x28] sm:$0xff] }
 0x7e5   : > { %v2536_v28 = vmul.f32 %v5760_v27, %v2528_v50 }
 0x7e6   : > { %v2302_v53 = vadd.f32 %v2297_v52, %v2278_v51  ;;  %v2523_v52 = vld [vmem:[%s6394_s10] sm:$0xff] }
 0x7e7   : > { %v2554_v51 = vsel %vm1084_vm3, %v2536_v28, 0.0 }
 0x7e8   : > { %4294 = vmatmul.msk.f32.gmra.mxu0 %vm831_vm0, %v2302_v53  ;;  %vm2445_vm0 = vweird.f32 %v4786_v9  ;;  %v2531_v53 = vmul.f32 %v5760_v27, %v2523_v52 }
 0x7e9   : > { %v5747_v16 = vsel %vm2445_vm0, %v4786_v9, %v2444_v14 }
 0x82b   : > { %v2373_v49 = vpop.f32.mrf.mxu1 }
 0x833   : > { %v2376_v56 = vpop.f32.mrf.mxu1 }
 0x83b   : > { %v2379_v33 = vpop.f32.mrf.mxu1 }
 0x843   : > { %v2382_v2 = vpop.f32.mrf.mxu1 }
 0x84d   : > { %v2332_v54 = vpop.f32.mrf.mxu0 }
 0x84e   : > { %v2374_v48 = vadd.f32 %v2373_v49, %v2332_v54  ;;  %v2539_v49 = vsel %vm1084_vm3, %v2531_v53, 0.0 }
 0x850   : > { %v2428_v19 = vsel %vm1084_vm3, %v2374_v48, 0.0 }
 0x851   : > { %2429 = vadd.xlane.f32.xlu1 %v2428_v19 }
 0x855   : > { %v2335_v57 = vpop.f32.mrf.mxu0 }
 0x856   : > { %v2377_v58 = vadd.f32 %v2376_v56, %v2335_v57  ;;  %v2570_v56 = vld [vmem:[%s6395_s11 + $0x38] sm:$0xff]  ;;  %v2524_v57 = vld [vmem:[%s6394_s10 + $0x8] sm:$0xff] }
 0x858   : > { %v2431_v60 = vsel %vm1084_vm3, %v2377_v58, 0.0 }
 0x859   : > { %2432 = vadd.xlane.f32.xlu0 %v2431_v60 }
 0x85d   : > { %v2338_v61 = vpop.f32.mrf.mxu0 }
 0x85e   : > { %v2380_v62 = vadd.f32 %v2379_v33, %v2338_v61  ;;  %v2532_v33 = vmul.f32 %v5760_v27, %v2524_v57 }
 0x860   : > { %v2434_v0 = vsel %vm1084_vm3, %v2380_v62, 0.0 }
 0x861   : > { %2435 = vadd.xlane.f32.xlu2 %v2434_v0  ;;  %v2542_v0 = vsel %vm1084_vm3, %v2532_v33, 0.0 }
 0x865   : > { %v2341_v4 = vpop.f32.mrf.mxu0 }
 0x866   : > { %v2383_v5 = vadd.f32 %v2382_v2, %v2341_v4 }
 0x868   : > { %v2437_v6 = vsel %vm1084_vm3, %v2383_v5, 0.0 }
 0x869   : > { %2438 = vadd.xlane.f32.xlu1 %v2437_v6 }
 0x8c4   : > { %v2430_v24 = vpop.xlane.xlu1 %2429 }
 0x8c5   : > { %v2447_v23 = vmul.f32 %v5747_v16, %v2430_v24 }
 0x8c7   : > { %v5785_v40 = vsub.f32 %v2374_v48, %v2447_v23 }
 0x8c9   : > { %v2455_v38 = vmul.f32 %v5785_v40, %v5785_v40 }
 0x8cb   : > { %v2459_v46 = vsel %vm1084_vm3, %v2455_v38, 0.0  ;;  %v2566_v38 = vld [vmem:[%s6395_s11 + $0x18] sm:$0xff] }
 0x8cc   : > { %v2433_v55 = vpop.xlane.xlu0 %2432 }
 0x8cd   : > { %v2448_v63 = vmul.f32 %v5747_v16, %v2433_v55 }
 0x8cf   : > { %v5750_v1 = vsub.f32 %v2377_v58, %v2448_v63 }
 0x8d1   : > { %v2456_v17 = vmul.f32 %v5750_v1, %v5750_v1 }
 0x8d3   : > { %v2462_v22 = vsel %vm1084_vm3, %v2456_v17, 0.0 }
 0x8d4   : > { %v2436_v3 = vpop.xlane.xlu2 %2435  ;;  %2463 = vadd.xlane.f32.xlu1 %v2462_v22 }
 0x8d5   : > { %v2449_v25 = vmul.f32 %v5747_v16, %v2436_v3 }
 0x8d7   : > { %v5763_v31 = vsub.f32 %v2380_v62, %v2449_v25 }
 0x8d9   : > { %v2457_v26 = vmul.f32 %v5763_v31, %v5763_v31 }
 0x8db   : > { %v2465_v12 = vsel %vm1084_vm3, %v2457_v26, 0.0 }
 0x8dc   : > { %2466 = vadd.xlane.f32.xlu0 %v2465_v12  ;;  %2561 = vadd.xlane.f32.xlu1 %v2560_v59  ;;  %v2439_v20 = vpop.xlane.xlu1 %2438 }
 0x8dd   : > { %v2450_v32 = vmul.f32 %v5747_v16, %v2439_v20 }
 0x8df   : > { %v5779_v8 = vsub.f32 %v2383_v5, %v2450_v32 }
 0x8e1   : > { %v2458_v36 = vmul.f32 %v5779_v8, %v5779_v8 }
 0x8e3   : > { %v2468_v39 = vsel %vm1084_vm3, %v2458_v36, 0.0 }
 0x8e4   : > { %2469 = vadd.xlane.f32.xlu2 %v2468_v39  ;;  %2558 = vadd.xlane.f32.xlu0 %v2557_v37 }
 0x8e5   : > { %2546 = vadd.xlane.f32.xlu1 %v2545_v41 }
 0x8ec   : > { %2460 = vadd.xlane.f32.xlu2 %v2459_v46  ;;  %2543 = vadd.xlane.f32.xlu0 %v2542_v0 }
 0x8ed   : > { %2552 = vadd.xlane.f32.xlu1 %v2551_v45 }
 0x8f4   : > { %2549 = vadd.xlane.f32.xlu2 %v2548_v47 }
 0x8fc   : > { %2555 = vadd.xlane.f32.xlu2 %v2554_v51 }
 0x904   : > { %2540 = vadd.xlane.f32.xlu2 %v2539_v49 }
 0x947   : > { %v2464_v54 = vpop.xlane.xlu1 %2463 }
 0x948   : > { %v2472_v48 = vmul.f32 %v2464_v54, %v5747_v16 }
 0x94a   : > { %v2476_v19 = vadd.f32 1e-05, %v2472_v48 }
 0x94c   : > { %4787 = vrsqrt.f32 %v2476_v19  ;;  %vm2495_vm2 = vweird.f32 %v2476_v19 }
 0x94f   : > { %v2467_v58 = vpop.xlane.xlu0 %2466  ;;  %v2562_v60 = vpop.xlane.xlu1 %2561 }
 0x950   : > { %v2473_v61 = vmul.f32 %v2467_v58, %v5747_v16  ;;  %v2578_v62 = vadd.f32 %v2570_v56, %v2562_v60 }
 0x952   : > { %v4788_v2 = vpop.eup %4787  ;;  %2684 = vperm.xlu1 %4436, %v2578_v62   ;;  %v2477_v5 = vadd.f32 1e-05, %v2473_v61 }
 0x953   : > { %v2490_v4 = vmul.f32 %v4788_v2, %v2476_v19  ;;  %vm2496_vm1 = vweird.f32 %v4788_v2  ;;  %v2565_v19 = vld [vmem:[%s6395_s11 + $0x10] sm:$0xff] }
 0x954   : > { %4789 = vrsqrt.f32 %v2477_v5  ;;  %vm2497_vm8 = vmor %vm2495_vm2, %vm2496_vm1  ;;  %vm2505_vm11 = vweird.f32 %v2477_v5 }
 0x955   : > { %v2491_v6 = vmul.f32 %v4788_v2, %v2490_v4 }
 0x957   : > { %v2492_v7 = vmul.f32 0.5, %v2491_v6  ;;  %v2470_v9 = vpop.xlane.xlu2 %2469  ;;  %v2559_v32 = vpop.xlane.xlu0 %2558 }
 0x958   : > { %v2577_v23 = vadd.f32 %v2569_v21, %v2559_v32  ;;  %v2474_v45 = vmul.f32 %v2470_v9, %v5747_v16  ;;  %v2547_v56 = vpop.xlane.xlu1 %2546 }
 0x959   : > { %v2493_v10 = vsub.f32 1.5, %v2492_v7  ;;  %v2573_v57 = vadd.f32 %v2565_v19, %v2547_v56  ;;  %v2567_v7 = vld [vmem:[%s6395_s11 + $0x20] sm:$0xff] }
 0x95a   : > { %v4790_v13 = vpop.eup %4789  ;;  %v2478_v46 = vadd.f32 1e-05, %v2474_v45 }
 0x95b   : > { %v2494_v11 = vmul.f32 %v4788_v2, %v2493_v10  ;;  %v2500_v17 = vmul.f32 %v4790_v13, %v2477_v5  ;;  %vm2506_vm9 = vweird.f32 %v4790_v13 }
 0x95c   : > { %vm2507_vm13 = vmor %vm2505_vm11, %vm2506_vm9  ;;  %vm2515_vm6 = vweird.f32 %v2478_v46 }
 0x95d   : > { %v2498_v14 = vsel %vm2497_vm8, %v4788_v2, %v2494_v11  ;;  %v2501_v3 = vmul.f32 %v4790_v13, %v2500_v17 }
 0x95e   : > { %v5822_v55 = vmul.f32 %v2498_v14, %v5750_v1 }
 0x95f   : > { %v2461_v63 = vpop.xlane.xlu2 %2460  ;;  %v2502_v25 = vmul.f32 0.5, %v2501_v3  ;;  %v2544_v2 = vpop.xlane.xlu0 %2543 }
 0x960   : > { %v2471_v18 = vmul.f32 %v2461_v63, %v5747_v16  ;;  %v2582_v22 = vsel %vm1084_vm3, %v5822_v55, 0.0  ;;  %v2553_v0 = vpop.xlane.xlu1 %2552 }
 0x961   : > { %2583 = vadd.xlane.f32.xlu2 %v2582_v22  ;;  %v2503_v59 = vsub.f32 1.5, %v2502_v25  ;;  %v2575_v14 = vadd.f32 %v2567_v7, %v2553_v0  ;;  %v2564_v22 = vld [vmem:[%s6395_s11 + $0x8] sm:$0xff] }
 0x962   : > { %v2475_v24 = vadd.f32 1e-05, %v2471_v18 }
 0x963   : > { %v2504_v20 = vmul.f32 %v4790_v13, %v2503_v59 }
 0x964   : > { %4791 = vrsqrt.f32 %v2475_v24  ;;  %vm2485_vm12 = vweird.f32 %v2475_v24 }
 0x965   : > { %v2508_v35 = vsel %vm2507_vm13, %v4790_v13, %v2504_v20  ;;  %4793 = vrsqrt.f32 %v2478_v46 }
 0x966   : > { %v2521_v41 = vmul.f32 %v2508_v35, %v5763_v31  ;;  %v2568_v31 = vld [vmem:[%s6395_s11 + $0x28] sm:$0xff] }
 0x967   : > { %v2550_v43 = vpop.xlane.xlu2 %2549 }
 0x968   : > { %v2585_v42 = vsel %vm1084_vm3, %v2521_v41, 0.0  ;;  %v2574_v44 = vadd.f32 %v2566_v38, %v2550_v43 }
 0x96a   : > { %v4792_v30 = vpop.eup %4791 }
 0x96b   : > { %v2480_v26 = vmul.f32 %v4792_v30, %v2475_v24  ;;  %vm2486_vm10 = vweird.f32 %v4792_v30  ;;  %v4794_v47 = vpop.eup %4793  ;;  %v2572_v24 = vadd.f32 %v2564_v22, %v2544_v2 }
 0x96c   : > { %vm2487_vm4 = vmor %vm2485_vm12, %vm2486_vm10  ;;  %v2510_v50 = vmul.f32 %v4794_v47, %v2478_v46  ;;  %vm2516_vm5 = vweird.f32 %v4794_v47 }
 0x96d   : > { %v2481_v15 = vmul.f32 %v4792_v30, %v2480_v26  ;;  %vm2517_vm7 = vmor %vm2515_vm6, %vm2516_vm5 }
 0x96e   : > { %v2511_v28 = vmul.f32 %v4794_v47, %v2510_v50 }
 0x96f   : > { %v2482_v12 = vmul.f32 0.5, %v2481_v15 }
 0x970   : > { %v2512_v51 = vmul.f32 0.5, %v2511_v28 }
 0x971   : > { %v2483_v1 = vsub.f32 1.5, %v2482_v12  ;;  %v2563_v12 = vld [vmem:[%s6395_s11] sm:$0xff] }
 0x972   : > { %v2513_v52 = vsub.f32 1.5, %v2512_v51 }
 0x973   : > { %v2484_v34 = vmul.f32 %v4792_v30, %v2483_v1 }
 0x974   : > { %v2514_v53 = vmul.f32 %v4794_v47, %v2513_v52 }
 0x975   : > { %v2488_v36 = vsel %vm2487_vm4, %v4792_v30, %v2484_v34 }
 0x976   : > { %v2519_v37 = vmul.f32 %v2488_v36, %v5785_v40  ;;  %v2556_v40 = vpop.xlane.xlu2 %2555  ;;  %v2518_v49 = vsel %vm2517_vm7, %v4794_v47, %v2514_v53  ;;  %v2416_v53 = vpop.f32.mrf.mxu2  ;;  %vm2803_vm7 = vcmask 277504  }
 0x977   : > { %v2576_v29 = vadd.f32 %v2568_v31, %v2556_v40  ;;  %v2522_v54 = vmul.f32 %v2518_v49, %v5779_v8 }
 0x978   : > { %v2579_v39 = vsel %vm1084_vm3, %v2519_v37, 0.0 }
 0x979   : > { %2580 = vadd.xlane.f32.xlu0 %v2579_v39  ;;  %2679 = vperm.xlu2 %4517, %v2577_v23   ;;  %v2588_v48 = vsel %vm1084_vm3, %v2522_v54, 0.0 }
 0x97c   : > { %2586 = vadd.xlane.f32.xlu1 %v2585_v42 }
 0x97e   : > { %v2541_v58 = vpop.xlane.xlu2 %2540 }
 0x97f   : > { %v2571_v20 = vadd.f32 %v2563_v12, %v2541_v58 }
 0x98d   : > { %2708 = vperm.xlu0 %4435, %v2574_v44  }
 0x995   : > { %2674 = vperm.xlu1 %4436, %v2576_v29  }
 0x9b7   : > { %2589 = vadd.xlane.f32.xlu0 %v2588_v48 }
 0x9c4   : > { %v5853_v4 = vpop.permute.xlu1 %2684 }
 0x9cb   : > { %2703 = vperm.xlu0 %4435, %v2573_v57  }
 0x9d4   : > { %v2584_v60 = vpop.xlane.xlu2 %2583 }
 0x9d5   : > { %v2592_v33 = vmul.f32 %v2584_v60, %v5747_v16 }
 0x9d7   : > { %v5848_v61 = vsub.f32 %v5822_v55, %v2592_v33 }
 0x9d9   : > { %v2600_v8 = vmul.f32 %v5848_v61, %v5848_v61 }
 0x9db   : > { %v2606_v62 = vsel %vm1084_vm3, %v2600_v8, 0.0 }
 0x9dc   : > { %2607 = vadd.xlane.f32.xlu2 %v2606_v62  ;;  %v5884_v1 = vpop.permute.xlu2 %2679  ;;  %v2419_v62 = vpop.f32.mrf.mxu2 }
 0x9ec   : > { %v2581_v5 = vpop.xlane.xlu0 %2580 }
 0x9ed   : > { %v2591_v6 = vmul.f32 %v2581_v5, %v5747_v16 }
 0x9ef   : > { %v5859_v9 = vsub.f32 %v2519_v37, %v2591_v6  ;;  %v2587_v10 = vpop.xlane.xlu1 %2586 }
 0x9f0   : > { %v2593_v11 = vmul.f32 %v2587_v10, %v5747_v16 }
 0x9f1   : > { %v2599_v13 = vmul.f32 %v5859_v9, %v5859_v9 }
 0x9f2   : > { %v5864_v55 = vsub.f32 %v2521_v41, %v2593_v11 }
 0x9f3   : > { %v2603_v63 = vsel %vm1084_vm3, %v2599_v13, 0.0 }
 0x9f4   : > { %2669 = vperm.xlu2 %4517, %v2575_v14   ;;  %v2601_v17 = vmul.f32 %v5864_v55, %v5864_v55 }
 0x9f5   : > { %2604 = vadd.xlane.f32.xlu0 %v2603_v63 }
 0x9f6   : > { %v2609_v18 = vsel %vm1084_vm3, %v2601_v17, 0.0 }
 0x9f7   : > { %2610 = vadd.xlane.f32.xlu1 %v2609_v18 }
 0x9ff   : > { %v5873_v3 = vpop.permute.xlu0 %2708 }
 0xa07   : > { %v2675_v32 = vpop.permute.xlu1 %2674 }
 0xa10   : > { %2698 = vperm.xlu1 %4436, %v2572_v24  }
 0xa2a   : > { %v2590_v25 = vpop.xlane.xlu0 %2589 }
 0xa2b   : > { %v2594_v30 = vmul.f32 %v2590_v25, %v5747_v16 }
 0xa2d   : > { %v5876_v26 = vsub.f32 %v2522_v54, %v2594_v30 }
 0xa2f   : > { %v2602_v59 = vmul.f32 %v5876_v26, %v5876_v26 }
 0xa31   : > { %v2612_v15 = vsel %vm1084_vm3, %v2602_v59, 0.0  ;;  %v2422_v59 = vpop.f32.mrf.mxu2 }
 0xa32   : > { %2613 = vadd.xlane.f32.xlu0 %v2612_v15 }
 0xa3d   : > { %v5886_v21 = vpop.permute.xlu0 %2703 }
 0xa46   : > { %2693 = vperm.xlu0 %4435, %v2571_v20  }
 0xa4f   : > { %v2608_v34 = vpop.xlane.xlu2 %2607 }
 0xa50   : > { %v2616_v35 = vmul.f32 %v2608_v34, %v5747_v16 }
 0xa52   : > { %v2620_v37 = vadd.f32 1e-05, %v2616_v35 }
 0xa54   : > { %4795 = vrsqrt.f32 %v2620_v37  ;;  %vm2639_vm1 = vweird.f32 %v2620_v37 }
 0xa57   : > { %v2670_v22 = vpop.permute.xlu2 %2669 }
 0xa5a   : > { %v4796_v38 = vpop.eup %4795 }
 0xa5b   : > { %v2634_v44 = vmul.f32 %v4796_v38, %v2620_v37  ;;  %vm2640_vm0 = vweird.f32 %v4796_v38 }
 0xa5c   : > { %vm2641_vm2 = vmor %vm2639_vm1, %vm2640_vm0  ;;  %vm2808_vm0 = vcmask 285696  }
 0xa5d   : > { %v2635_v31 = vmul.f32 %v4796_v38, %v2634_v44 }
 0xa5f   : > { %v2636_v47 = vmul.f32 0.5, %v2635_v31 }
 0xa61   : > { %v2637_v51 = vsub.f32 1.5, %v2636_v47 }
 0xa63   : > { %v2638_v56 = vmul.f32 %v4796_v38, %v2637_v51 }
 0xa65   : > { %v2642_v60 = vsel %vm2641_vm2, %v4796_v38, %v2638_v56 }
 0xa66   : > { %v2664_v0 = vmul.f32 %v2642_v60, %v5848_v61 }
 0xa68   : > { %v2605_v23 = vpop.xlane.xlu0 %2604  ;;  %v2688_v11 = vmul.f32 %v2675_v32, %v2664_v0 }
 0xa69   : > { %v2615_v41 = vmul.f32 %v2605_v23, %v5747_v16 }
 0xa6a   : > { %v2611_v36 = vpop.xlane.xlu1 %2610 }
 0xa6b   : > { %v2617_v39 = vmul.f32 %v2611_v36, %v5747_v16  ;;  %v2619_v42 = vadd.f32 1e-05, %v2615_v41 }
 0xa6d   : > { %v2621_v43 = vadd.f32 1e-05, %v2617_v39  ;;  %4797 = vrsqrt.f32 %v2619_v42  ;;  %vm2629_vm10 = vweird.f32 %v2619_v42 }
 0xa6f   : > { %4799 = vrsqrt.f32 %v2621_v43  ;;  %vm2649_vm12 = vweird.f32 %v2621_v43 }
 0xa73   : > { %v4798_v45 = vpop.eup %4797 }
 0xa74   : > { %v2624_v40 = vmul.f32 %v4798_v45, %v2619_v42  ;;  %vm2630_vm8 = vweird.f32 %v4798_v45  ;;  %v2425_v42 = vpop.f32.mrf.mxu2 }
 0xa75   : > { %v4800_v46 = vpop.eup %4799  ;;  %vm2631_vm11 = vmor %vm2629_vm10, %vm2630_vm8 }
 0xa76   : > { %v2644_v29 = vmul.f32 %v4800_v46, %v2621_v43  ;;  %v2625_v50 = vmul.f32 %v4798_v45, %v2624_v40  ;;  %vm2650_vm9 = vweird.f32 %v4800_v46 }
 0xa77   : > { %vm2651_vm13 = vmor %vm2649_vm12, %vm2650_vm9 }
 0xa78   : > { %v2645_v28 = vmul.f32 %v4800_v46, %v2644_v29  ;;  %v2626_v52 = vmul.f32 0.5, %v2625_v50 }
 0xa7a   : > { %v2646_v49 = vmul.f32 0.5, %v2645_v28  ;;  %v2627_v19 = vsub.f32 1.5, %v2626_v52 }
 0xa7c   : > { %v2647_v58 = vsub.f32 1.5, %v2646_v49  ;;  %v2628_v33 = vmul.f32 %v4798_v45, %v2627_v19 }
 0xa7e   : > { %v2648_v8 = vmul.f32 %v4800_v46, %v2647_v58  ;;  %v2632_v5 = vsel %vm2631_vm11, %v4798_v45, %v2628_v33 }
 0xa7f   : > { %v2663_v14 = vmul.f32 %v2632_v5, %v5859_v9 }
 0xa80   : > { %v2652_v6 = vsel %vm2651_vm13, %v4800_v46, %v2648_v8 }
 0xa81   : > { %v2665_v63 = vmul.f32 %v2652_v6, %v5864_v55  ;;  %v2687_v25 = vmul.f32 %v2670_v22, %v2663_v14 }
 0xa82   : > { %v2699_v10 = vpop.permute.xlu1 %2698 }
 0xa83   : > { %v2712_v17 = vadd.f32 %v2699_v10, %v2688_v11  ;;  %v2689_v61 = vmul.f32 %v5884_v1, %v2665_v63 }
 0xa85   : > { %v2716_v15 = vmax.f32 %v2712_v17, 0.0  ;;  %v2713_v9 = vadd.f32 %v5886_v21, %v2689_v61 }
 0xa87   : > { %v5898_v35 = vadd.f32 %v2716_v15, %v2419_v62  ;;  %v2717_v37 = vmax.f32 %v2713_v9, 0.0  ;;  %v2813_v15 = vld [vmem:[%s6398_s14] sm:$0xff] }
 0xa89   : > { %v5907_v43 = vadd.f32 %v2717_v37, %v2422_v59  ;;  %v2815_v59 = vld [vmem:[%s6398_s14 + $0x10] sm:$0xff] }
 0xaa5   : > { %v2614_v54 = vpop.xlane.xlu0 %2613 }
 0xaa6   : > { %v2618_v48 = vmul.f32 %v2614_v54, %v5747_v16 }
 0xaa8   : > { %v2622_v57 = vadd.f32 1e-05, %v2618_v48 }
 0xaaa   : > { %4801 = vrsqrt.f32 %v2622_v57  ;;  %vm2659_vm5 = vweird.f32 %v2622_v57 }
 0xab0   : > { %v4802_v2 = vpop.eup %4801 }
 0xab1   : > { %v2654_v7 = vmul.f32 %v4802_v2, %v2622_v57  ;;  %vm2660_vm4 = vweird.f32 %v4802_v2 }
 0xab2   : > { %vm2661_vm6 = vmor %vm2659_vm5, %vm2660_vm4 }
 0xab3   : > { %v2655_v13 = vmul.f32 %v4802_v2, %v2654_v7 }
 0xab5   : > { %v2656_v18 = vmul.f32 0.5, %v2655_v13 }
 0xab7   : > { %v2657_v24 = vsub.f32 1.5, %v2656_v18 }
 0xab8   : > { %v2694_v30 = vpop.permute.xlu0 %2693 }
 0xab9   : > { %v2658_v12 = vmul.f32 %v4802_v2, %v2657_v24  ;;  %v2711_v20 = vadd.f32 %v2694_v30, %v2687_v25  ;;  %v2816_v30 = vld [vmem:[%s6398_s14 + $0x18] sm:$0xff] }
 0xabb   : > { %v2662_v32 = vsel %vm2661_vm6, %v4802_v2, %v2658_v12  ;;  %v2715_v34 = vmax.f32 %v2711_v20, 0.0  ;;  %v2814_v12 = vld [vmem:[%s6398_s14 + $0x8] sm:$0xff] }
 0xabc   : > { %v2666_v55 = vmul.f32 %v2662_v32, %v5876_v26  ;;  %v2723_v32 = vld [vmem:[#allocation5] sm:$0xff] }
 0xabd   : > { %v5900_v23 = vadd.f32 %v2715_v34, %v2416_v53 }
 0xabe   : > { %v2690_v36 = vmul.f32 %v5853_v4, %v2666_v55  ;;  %v2724_v55 = vld [vmem:[#allocation5 + $0x8] sm:$0xff] }
 0xabf   : > { %v4598_v1 = vpack.i.bf16 %v5900_v23, %v5898_v35 }
 0xac0   : > { %v2714_v41 = vadd.f32 %v5873_v3, %v2690_v36 }
 0xac1   : > { %4599 = vrot.lane.b32.xlu1 %v4598_v1, %s6481_s0 }
 0xac2   : > { %v2718_v39 = vmax.f32 %v2714_v41, 0.0 }
 0xac4   : > { %v5909_v21 = vadd.f32 %v2718_v39, %v2425_v42  ;;  %v2725_v42 = vld [vmem:[#allocation5 + $0x10] sm:$0xff] }
 0xac6   : > { %v4613_v26 = vpack.i.bf16 %v5907_v43, %v5909_v21 }
 0xac8   : > { %4614 = vrot.lane.b32.xlu0 %v4613_v26, %s6487_s9  ;;  %4604 = vrot.lane.b32.xlu2 %v4613_v26, %s6481_s0 }
 0xac9   : > { %4609 = vrot.lane.b32.xlu1 %v4613_v26, %s6482_s13 }
 0xad0   : > { %4624 = vrot.lane.b32.xlu2 %v4613_v26, %s6483_s4  ;;  %4619 = vrot.lane.b32.xlu0 %v4598_v1, %s6482_s13 }
 0xad1   : > { %4634 = vrot.lane.b32.xlu1 %v4598_v1, %s6483_s4 }
 0xad8   : > { %4629 = vrot.lane.b32.xlu2 %v4598_v1, %s6487_s9 }
 0xb22   : > { %v4605_v4 = vpop.permute.xlu2 %4604 }
 0xb23   : > { %v4607_v44 = vunpack.i.h.bf16 %v4605_v4  ;;  %v4606_v45 = vunpack.i.l.bf16 %v4605_v4 }
 0xb25   : > { %v2797_v47 = vsel %vm1044_vm14, %v4607_v44, %v5907_v43  ;;  %v2798_v50 = vsel %vm1044_vm14, %v4606_v45, %v5909_v21  ;;  %v2731_v45 = vld [vmem:[#allocation5 + $0x40] sm:$0xff] }
 0xb2a   : > { %v4625_v38 = vpop.permute.xlu2 %4624 }
 0xb2b   : > { %v4627_v52 = vunpack.i.h.bf16 %v4625_v38  ;;  %v4626_v53 = vunpack.i.l.bf16 %v4625_v38 }
 0xb32   : > { %v4630_v56 = vpop.permute.xlu2 %4629 }
 0xb33   : > { %v4600_v3 = vpop.permute.xlu1 %4599  ;;  %v4632_v0 = vunpack.i.h.bf16 %v4630_v56  ;;  %v4631_v2 = vunpack.i.l.bf16 %v4630_v56 }
 0xb34   : > { %v4602_v57 = vunpack.i.h.bf16 %v4600_v3  ;;  %v4601_v58 = vunpack.i.l.bf16 %v4600_v3 }
 0xb36   : > { %v2795_v10 = vsel %vm1044_vm14, %v4602_v57, %v5900_v23  ;;  %v2796_v11 = vsel %vm1044_vm14, %v4601_v58, %v5898_v35  ;;  %v2736_v58 = vld [vmem:[#allocation5 + $0x68] sm:$0xff] }
 0xb3a   : > { %v4615_v46 = vpop.permute.xlu0 %4614 }
 0xb3b   : > { %v4610_v31 = vpop.permute.xlu1 %4609  ;;  %v4617_v28 = vunpack.i.h.bf16 %v4615_v46  ;;  %v4616_v51 = vunpack.i.l.bf16 %v4615_v46 }
 0xb3c   : > { %v4612_v40 = vunpack.i.h.bf16 %v4610_v31  ;;  %v4611_v29 = vunpack.i.l.bf16 %v4610_v31 }
 0xb3e   : > { %v2801_v49 = vsel %vm1049_vm15, %v2797_v47, %v4612_v40  ;;  %v2802_v54 = vsel %vm1049_vm15, %v2798_v50, %v4611_v29  ;;  %v2727_v40 = vld [vmem:[#allocation5 + $0x20] sm:$0xff]  ;;  %v2726_v50 = vld [vmem:[#allocation5 + $0x18] sm:$0xff] }
 0xb3f   : > { %v2806_v48 = vsel %vm2803_vm7, %v2801_v49, %v4617_v28  ;;  %v2807_v19 = vsel %vm2803_vm7, %v2802_v54, %v4616_v51  ;;  %v2735_v49 = vld [vmem:[#allocation5 + $0x60] sm:$0xff]  ;;  %v2732_v54 = vld [vmem:[#allocation5 + $0x48] sm:$0xff] }
 0xb40   : > { %v2812_v60 = vsel %vm2808_vm0, %v2807_v19, %v4626_v53  ;;  %v2811_v33 = vsel %vm2808_vm0, %v2806_v48, %v4627_v52  ;;  %v2728_v48 = vld [vmem:[#allocation5 + $0x28] sm:$0xff] }
 0xb41   : > { %2898 = vmatpush.msrb.mxu0 %v2812_v60  ;;  %v4648_v8 = vpack.i.bf16 %v2811_v33, %v2812_v60  ;;  %v2733_v60 = vld [vmem:[#allocation5 + $0x50] sm:$0xff] }
 0xb42   : > { %v4620_v62 = vpop.permute.xlu0 %4619 }
 0xb43   : > { %v4622_v5 = vunpack.i.h.bf16 %v4620_v62  ;;  %v4621_v6 = vunpack.i.l.bf16 %v4620_v62  ;;  %v4635_v7 = vpop.permute.xlu1 %4634  ;;  %4649 = vrot.lane.b32.xlu1 %v4648_v8, %s6486_s5  ;;  %4639 = vrot.lane.b32.xlu0 %v4648_v8, %s6484_s7  ;;  %v2734_v62 = vld [vmem:[#allocation5 + $0x58] sm:$0xff] }
 0xb44   : > { %v4637_v13 = vunpack.i.h.bf16 %v4635_v7  ;;  %v4636_v14 = vunpack.i.l.bf16 %v4635_v7  ;;  %2899 = vmatpush.msrb.mxu0 %v2811_v33  ;;  %v2729_v33 = vld [vmem:[#allocation5 + $0x30] sm:$0xff] }
 0xb45   : > { %v2799_v63 = vsel %vm1049_vm15, %v2795_v10, %v4622_v5  ;;  %v2800_v17 = vsel %vm1049_vm15, %v2796_v11, %v4621_v6  ;;  %v2739_v5 = vld [vmem:[#allocation5 + $0x80] sm:$0xff]  ;;  %v2740_v6 = vld [vmem:[#allocation5 + $0x88] sm:$0xff]  ;;  %v2741_v7 = vld [vmem:[#allocation5 + $0x90] sm:$0xff] }
 0xb46   : > { %v2804_v18 = vsel %vm2803_vm7, %v2799_v63, %v4632_v0  ;;  %v2805_v22 = vsel %vm2803_vm7, %v2800_v17, %v4631_v2  ;;  %v2730_v0 = vld [vmem:[#allocation5 + $0x38] sm:$0xff] }
 0xb47   : > { %v2809_v24 = vsel %vm2808_vm0, %v2804_v18, %v4637_v13  ;;  %v2810_v25 = vsel %vm2808_vm0, %v2805_v22, %v4636_v14  ;;  %v2738_v2 = vld [vmem:[#allocation5 + $0x78] sm:$0xff] }
 0xb48   : > { %2900 = vmatpush.msrb.mxu0 %v2810_v25  ;;  %v4643_v61 = vpack.i.bf16 %v2809_v24, %v2810_v25  ;;  %v2742_v10 = vld [vmem:[#allocation5 + $0x98] sm:$0xff] }
 0xb49   : > { %v3201_v18 = vld [vmem:[%s6401_s17 + $0x18] sm:$0xff] }
 0xb4a   : > { %4644 = vrot.lane.b32.xlu2 %v4643_v61, %s6484_s7  ;;  %2901 = vmatpush.msrb.mxu0 %v2809_v24  ;;  %v3209_v22 = vmul.f32 %v5760_v27, %v3201_v18 }
 0xb4b   : > { %4659 = vrot.lane.b32.xlu0 %v4648_v8, %s6488_s15  ;;  %4654 = vrot.lane.b32.xlu1 %v4643_v61, %s6486_s5 }
 0xb4c   : > { %4307 = vmatmul.msk.f32.vlgmr.msrb.gmra.mxu0 %vm1084_vm3, %v2723_v32  ;;  %v3223_v25 = vsel %vm1084_vm3, %v3209_v22, 0.0 }
 0xb52   : > { %4669 = vrot.lane.b32.xlu2 %v4648_v8, %s6481_s0  ;;  %v2737_v8 = vld [vmem:[#allocation5 + $0x70] sm:$0xff] }
 0xb53   : > { %4664 = vrot.lane.b32.xlu0 %v4643_v61, %s6488_s15  ;;  %3103 = vperm.xlu1 %4436, %v2816_v30  }
 0xb54   : > { %4308 = vmatmul.msk.f32.gmra.mxu0 %vm1084_vm3, %v2724_v55 }
 0xb5a   : > { %4674 = vrot.lane.b32.xlu2 %v4643_v61, %s6481_s0 }
 0xb5b   : > { %3098 = vperm.xlu0 %4435, %v2815_v59   ;;  %3088 = vperm.xlu1 %4436, %v2813_v15  }
 0xb5c   : > { %4309 = vmatmul.msk.f32.gmra.mxu0 %vm1084_vm3, %v2725_v42  ;;  %v3205_v42 = vld [vmem:[%s6401_s17 + $0x38] sm:$0xff] }
 0xb62   : > { %3093 = vperm.xlu2 %4517, %v2814_v12  }
 0xb64   : > { %4310 = vmatmul.msk.f32.gmra.mxu0 %vm1084_vm3, %v2726_v50 }
 0xb85   : > { %3224 = vadd.xlane.f32.xlu0 %v3223_v25 }
 0xba4   : > { %v4645_v20 = vpop.permute.xlu2 %4644 }
 0xba5   : > { %v4646_v46 = vunpack.i.l.bf16 %v4645_v20  ;;  %v4647_v31 = vunpack.i.h.bf16 %v4645_v20 }
 0xbac   : > { %v4670_v34 = vpop.permute.xlu2 %4669 }
 0xbad   : > { %v4671_v9 = vunpack.i.l.bf16 %v4670_v34  ;;  %v4672_v36 = vunpack.i.h.bf16 %v4670_v34 }
 0xbaf   : > { %2951 = vmatpush.msrb.mxu1 %v4671_v9 }
 0xbb1   : > { %2952 = vmatpush.msrb.mxu1 %v4672_v36 }
 0xbb4   : > { %v4675_v1 = vpop.permute.xlu2 %4674 }
 0xbb5   : > { %v4676_v37 = vunpack.i.l.bf16 %v4675_v1  ;;  %v4650_v41 = vpop.permute.xlu1 %4649  ;;  %v4640_v39 = vpop.permute.xlu0 %4639  ;;  %v4677_v3 = vunpack.i.h.bf16 %v4675_v1 }
 0xbb6   : > { %v4651_v26 = vunpack.i.l.bf16 %v4650_v41  ;;  %v4641_v4 = vunpack.i.l.bf16 %v4640_v39  ;;  %v4652_v38 = vunpack.i.h.bf16 %v4650_v41  ;;  %v4642_v44 = vunpack.i.h.bf16 %v4640_v39 }
 0xbb7   : > { %2953 = vmatpush.msrb.mxu1 %v4676_v37 }
 0xbb8   : > { %2857 = vmatpush.msrb.mxu3 %v4641_v4  ;;  %3008 = vmatpush.msra.mxu2 %v4651_v26 }
 0xbb9   : > { %2954 = vmatpush.msrb.mxu1 %v4677_v3 }
 0xbba   : > { %2858 = vmatpush.msrb.mxu3 %v4642_v44  ;;  %3009 = vmatpush.msra.mxu2 %v4652_v38  ;;  %v3213_v44 = vmul.f32 %v5760_v27, %v3205_v42 }
 0xbbb   : > { %4311 = vmatmul.msk.f32.vlgmr.msrb.gmra.mxu1 %vm1084_vm3, %v2731_v45 }
 0xbbc   : > { %2859 = vmatpush.msrb.mxu3 %v4646_v46  ;;  %v3235_v50 = vsel %vm1084_vm3, %v3213_v44, 0.0 }
 0xbbd   : > { %v4660_v29 = vpop.permute.xlu0 %4659  ;;  %v4655_v47 = vpop.permute.xlu1 %4654 }
 0xbbe   : > { %v4661_v28 = vunpack.i.l.bf16 %v4660_v29  ;;  %v4656_v51 = vunpack.i.l.bf16 %v4655_v47  ;;  %2860 = vmatpush.msrb.mxu3 %v4647_v31  ;;  %v4662_v52 = vunpack.i.h.bf16 %v4660_v29  ;;  %v4657_v53 = vunpack.i.h.bf16 %v4655_v47  ;;  %v3094_v31 = vpop.permute.xlu2 %3093 }
 0xbbf   : > { %4303 = vmatmul.msk.f32.vlgmr.msrb.gmra.mxu3 %vm1084_vm3, %v2727_v40 }
 0xbc0   : > { %3010 = vmatpush.msra.mxu2 %v4656_v51  ;;  %3065 = vmatpush.msra.mxu3 %v4661_v28 }
 0xbc2   : > { %3011 = vmatpush.msra.mxu2 %v4657_v53  ;;  %3066 = vmatpush.msra.mxu3 %v4662_v52 }
 0xbc3   : > { %4315 = vmatmul.msk.f32.vlgmr.msra.gmra.mxu2 %vm1084_vm3, %v2735_v49  ;;  %4312 = vmatmul.msk.f32.gmra.mxu1 %vm1084_vm3, %v2732_v54 }
 0xbc5   : > { %v4665_v19 = vpop.permute.xlu0 %4664  ;;  %v3104_v61 = vpop.permute.xlu1 %3103 }
 0xbc6   : > { %v4666_v56 = vunpack.i.l.bf16 %v4665_v19  ;;  %v4667_v57 = vunpack.i.h.bf16 %v4665_v19 }
 0xbc7   : > { %4304 = vmatmul.msk.f32.gmra.mxu3 %vm1084_vm3, %v2728_v48 }
 0xbc8   : > { %3067 = vmatpush.msra.mxu3 %v4666_v56 }
 0xbc9   : > { %v2903_v14 = vpop.f32.mrf.mxu0 }
 0xbca   : > { %3068 = vmatpush.msra.mxu3 %v4667_v57 }
 0xbcb   : > { %4316 = vmatmul.msk.f32.gmra.mxu2 %vm1084_vm3, %v2736_v58  ;;  %4313 = vmatmul.msk.f32.gmra.mxu1 %vm1084_vm3, %v2733_v60 }
 0xbcd   : > { %v3089_v1 = vpop.permute.xlu1 %3088  ;;  %v3099_v19 = vpop.permute.xlu0 %3098 }
 0xbcf   : > { %4305 = vmatmul.msk.f32.gmra.mxu3 %vm1084_vm3, %v2729_v33 }
 0xbd1   : > { %v2906_v59 = vpop.f32.mrf.mxu0 }
 0xbd3   : > { %4317 = vmatmul.msk.f32.gmra.mxu2 %vm1084_vm3, %v2737_v8  ;;  %4314 = vmatmul.msk.f32.gmra.mxu1 %vm1084_vm3, %v2734_v62 }
 0xbd7   : > { %4306 = vmatmul.msk.f32.gmra.mxu3 %vm1084_vm3, %v2730_v0 }
 0xbd9   : > { %v2909_v37 = vpop.f32.mrf.mxu0 }
 0xbdb   : > { %4318 = vmatmul.msk.f32.gmra.mxu2 %vm1084_vm3, %v2738_v2 }
 0xbdf   : > { %4319 = vmatmul.msk.f32.vlgmr.msra.gmra.mxu3 %vm1084_vm3, %v2739_v5 }
 0xbe1   : > { %v2912_v28 = vpop.f32.mrf.mxu0 }
 0xbe7   : > { %4320 = vmatmul.msk.f32.gmra.mxu3 %vm1084_vm3, %v2740_v6 }
 0xbef   : > { %4321 = vmatmul.msk.f32.gmra.mxu3 %vm1084_vm3, %v2741_v7 }
 0xbf7   : > { %4322 = vmatmul.msk.f32.gmra.mxu3 %vm1084_vm3, %v2742_v10 }
 0xc38   : > { %v2956_v17 = vpop.f32.mrf.mxu1 }
 0xc40   : > { %v2959_v20 = vpop.f32.mrf.mxu1 }
 0xc42   : > { %v2862_v11 = vpop.f32.mrf.mxu3 }
 0xc43   : > { %v2904_v30 = vadd.f32 %v2903_v14, %v2862_v11  ;;  %v3203_v11 = vld [vmem:[%s6401_s17 + $0x28] sm:$0xff] }
 0xc44   : > { %v3211_v18 = vmul.f32 %v5760_v27, %v3203_v11 }
 0xc45   : > { %v2968_v12 = vadd.f32 %v2956_v17, %v2904_v30  ;;  %v3200_v30 = vld [vmem:[%s6401_s17 + $0x10] sm:$0xff] }
 0xc46   : > { %v3013_v24 = vpop.f32.mrf.mxu2  ;;  %v3229_v25 = vsel %vm1084_vm3, %v3211_v18, 0.0 }
 0xc47   : > { %v3025_v32 = vadd.f32 %v3013_v24, %v2968_v12 }
 0xc48   : > { %v2962_v4 = vpop.f32.mrf.mxu1 }
 0xc4a   : > { %v2865_v13 = vpop.f32.mrf.mxu3 }
 0xc4b   : > { %v2907_v34 = vadd.f32 %v2906_v59, %v2865_v13  ;;  %v3198_v59 = vld [vmem:[%s6401_s17] sm:$0xff] }
 0xc4d   : > { %v2969_v41 = vadd.f32 %v2959_v20, %v2907_v34  ;;  %v3206_v34 = vmul.f32 %v5760_v27, %v3198_v59 }
 0xc4e   : > { %v3016_v9 = vpop.f32.mrf.mxu2 }
 0xc4f   : > { %v3026_v3 = vadd.f32 %v3016_v9, %v2969_v41 }
 0xc50   : > { %v2965_v49 = vpop.f32.mrf.mxu1 }
 0xc52   : > { %v2868_v63 = vpop.f32.mrf.mxu3 }
 0xc53   : > { %v2910_v38 = vadd.f32 %v2909_v37, %v2868_v63  ;;  %v3202_v37 = vld [vmem:[%s6401_s17 + $0x20] sm:$0xff] }
 0xc55   : > { %v2970_v29 = vadd.f32 %v2962_v4, %v2910_v38 }
 0xc56   : > { %v3019_v40 = vpop.f32.mrf.mxu2 }
 0xc57   : > { %v3027_v52 = vadd.f32 %v3019_v40, %v2970_v29  ;;  %v3245_v40 = vld [vmem:[%s6402_s18 + $0x38] sm:$0xff] }
 0xc5a   : > { %v2871_v15 = vpop.f32.mrf.mxu3 }
 0xc5b   : > { %v2913_v53 = vadd.f32 %v2912_v28, %v2871_v15 }
 0xc5d   : > { %v2971_v56 = vadd.f32 %v2965_v49, %v2913_v53 }
 0xc5e   : > { %v3022_v58 = vpop.f32.mrf.mxu2 }
 0xc5f   : > { %v3028_v33 = vadd.f32 %v3022_v58, %v2971_v56 }
 0xc62   : > { %v3070_v55 = vpop.f32.mrf.mxu3 }
 0xc63   : > { %v3082_v36 = vadd.f32 %v3070_v55, %v3025_v32  ;;  %v3208_v32 = vmul.f32 %v5760_v27, %v3200_v30 }
 0xc65   : > { %v3106_v39 = vadd.f32 %v3089_v1, %v3082_v36  ;;  %v3220_v55 = vsel %vm1084_vm3, %v3208_v32, 0.0  ;;  %v3214_v36 = vsel %vm1084_vm3, %v3206_v34, 0.0 }
 0xc67   : > { %v3110_v26 = vsel %vm1084_vm3, %v3106_v39, 0.0 }
 0xc68   : > { %3111 = vadd.xlane.f32.xlu2 %v3110_v26  ;;  %v6037_v26 = vld [vmem:[%s5233_s1] ss:$0 sm:$0xff]  ;;  %s791_s1 = scalar_lea.vmem [#allocation8], %s4224_s25 }
 0xc69   : > { %v3210_v4 = vmul.f32 %v6037_v26, %v3202_v37  ;;  %s4112_s8 = sshll.u32 %s791_s1, 4  ;;  %s4113_s8 = int_to_ptr.vmem [resolvable:$true] %s4112_s8 }
 0xc6a   : > { %v3073_v45 = vpop.f32.mrf.mxu3 }
 0xc6b   : > { %v3083_v46 = vadd.f32 %v3073_v45, %v3026_v3  ;;  %v3226_v44 = vsel %vm1084_vm3, %v3210_v4, 0.0 }
 0xc6d   : > { %v3107_v47 = vadd.f32 %v3094_v31, %v3083_v46 }
 0xc6f   : > { %v3113_v51 = vsel %vm1084_vm3, %v3107_v47, 0.0 }
 0xc70   : > { %3114 = vadd.xlane.f32.xlu1 %v3113_v51  ;;  %3236 = vadd.xlane.f32.xlu2 %v3235_v50 }
 0xc72   : > { %v3076_v54 = vpop.f32.mrf.mxu3 }
 0xc73   : > { %v3084_v48 = vadd.f32 %v3076_v54, %v3027_v52 }
 0xc75   : > { %v3108_v57 = vadd.f32 %v3099_v19, %v3084_v48 }
 0xc77   : > { %v3116_v60 = vsel %vm1084_vm3, %v3108_v57, 0.0 }
 0xc78   : > { %3117 = vadd.xlane.f32.xlu2 %v3116_v60 }
 0xc7a   : > { %v3079_v8 = vpop.f32.mrf.mxu3 }
 0xc7b   : > { %v3085_v62 = vadd.f32 %v3079_v8, %v3028_v33 }
 0xc7d   : > { %v3109_v0 = vadd.f32 %v3104_v61, %v3085_v62  ;;  %v6010_v61 = vpop.xlane.xlu0 %3224 }
 0xc7f   : > { %v3119_v2 = vsel %vm1084_vm3, %v3109_v0, 0.0 }
 0xc80   : > { %3120 = vadd.xlane.f32.xlu0 %v3119_v2 }
 0xcdb   : > { %v3112_v5 = vpop.xlane.xlu2 %3111 }
 0xcdc   : > { %v3122_v6 = vmul.f32 %v3112_v5, %v5747_v16  ;;  %v3244_v5 = vld [vmem:[%s6402_s18 + $0x30] sm:$0xff] }
 0xcde   : > { %v5995_v7 = vsub.f32 %v3106_v39, %v3122_v6  ;;  %v3204_v39 = vld [vmem:[%s6401_s17 + $0x30] sm:$0xff] }
 0xcdf   : > { %v3212_v3 = vmul.f32 %v6037_v26, %v3204_v39 }
 0xce0   : > { %v3130_v10 = vmul.f32 %v5995_v7, %v5995_v7 }
 0xce1   : > { %v3232_v46 = vsel %vm1084_vm3, %v3212_v3, 0.0 }
 0xce2   : > { %v3134_v13 = vsel %vm1084_vm3, %v3130_v10, 0.0 }
 0xce3   : > { %v3115_v14 = vpop.xlane.xlu1 %3114  ;;  %3135 = vadd.xlane.f32.xlu0 %v3134_v13  ;;  %v3237_v63 = vpop.xlane.xlu2 %3236 }
 0xce4   : > { %v3123_v17 = vmul.f32 %v3115_v14, %v5747_v16  ;;  %v3253_v29 = vadd.f32 %v3245_v40, %v3237_v63  ;;  %v3240_v40 = vld [vmem:[%s6402_s18 + $0x10] sm:$0xff] }
 0xce6   : > { %v6005_v22 = vsub.f32 %v3107_v47, %v3123_v17  ;;  %v3199_v47 = vld [vmem:[%s6401_s17 + $0x8] sm:$0xff] }
 0xce7   : > { %v3207_v50 = vmul.f32 %v6037_v26, %v3199_v47 }
 0xce8   : > { %v3131_v24 = vmul.f32 %v6005_v22, %v6005_v22 }
 0xce9   : > { %v3217_v28 = vsel %vm1084_vm3, %v3207_v50, 0.0 }
 0xcea   : > { %v3137_v15 = vsel %vm1084_vm3, %v3131_v24, 0.0 }
 0xceb   : > { %3138 = vadd.xlane.f32.xlu2 %v3137_v15  ;;  %3230 = vadd.xlane.f32.xlu0 %v3229_v25  ;;  %v3118_v12 = vpop.xlane.xlu2 %3117 }
 0xcec   : > { %v3124_v20 = vmul.f32 %v3118_v12, %v5747_v16 }
 0xcee   : > { %v6022_v9 = vsub.f32 %v3108_v57, %v3124_v20 }
 0xcf0   : > { %v3132_v1 = vmul.f32 %v6022_v9, %v6022_v9 }
 0xcf2   : > { %v3140_v41 = vsel %vm1084_vm3, %v3132_v1, 0.0 }
 0xcf3   : > { %v3121_v27 = vpop.xlane.xlu0 %3120  ;;  %3221 = vadd.xlane.f32.xlu2 %v3220_v55  ;;  %3215 = vadd.xlane.f32.xlu0 %v3214_v36 }
 0xcf4   : > { %v3125_v42 = vmul.f32 %v3121_v27, %v5747_v16  ;;  %3141 = vadd.xlane.f32.xlu1 %v3140_v41 }
 0xcf6   : > { %v6041_v38 = vsub.f32 %v3109_v0, %v3125_v42 }
 0xcf8   : > { %v3133_v45 = vmul.f32 %v6041_v38, %v6041_v38 }
 0xcfa   : > { %v3143_v31 = vsel %vm1084_vm3, %v3133_v45, 0.0 }
 0xcfb   : > { %3227 = vadd.xlane.f32.xlu2 %v3226_v44  ;;  %3144 = vadd.xlane.f32.xlu0 %v3143_v31 }
 0xcfc   : > { %3233 = vadd.xlane.f32.xlu1 %v3232_v46 }
 0xd04   : > { %3218 = vadd.xlane.f32.xlu1 %v3217_v28 }
 0xd13   : > { %3359 = vperm.xlu2 %4517, %v3253_v29  }
 0xd56   : > { %v3136_v51 = vpop.xlane.xlu0 %3135 }
 0xd57   : > { %v3146_v52 = vmul.f32 %v3136_v51, %v5747_v16  ;;  %v3241_v51 = vld [vmem:[%s6402_s18 + $0x18] sm:$0xff] }
 0xd59   : > { %v3150_v53 = vadd.f32 1e-05, %v3146_v52  ;;  %v3249_v52 = vadd.f32 %v3241_v51, %v6010_v61 }
 0xd5b   : > { %4803 = vrsqrt.f32 %v3150_v53  ;;  %vm3160_vm2 = vweird.f32 %v3150_v53 }
 0xd5e   : > { %v6057_v49 = vpop.xlane.xlu0 %3230  ;;  %v3139_v0 = vpop.xlane.xlu2 %3138 }
 0xd5f   : > { %v3147_v11 = vmul.f32 %v3139_v0, %v5747_v16 }
 0xd61   : > { %v4804_v54 = vpop.eup %4803  ;;  %v3151_v25 = vadd.f32 1e-05, %v3147_v11 }
 0xd62   : > { %v3155_v48 = vmul.f32 %v4804_v54, %v3150_v53  ;;  %vm3161_vm1 = vweird.f32 %v4804_v54  ;;  %v3243_v53 = vld [vmem:[%s6402_s18 + $0x28] sm:$0xff] }
 0xd63   : > { %vm3162_vm8 = vmor %vm3160_vm2, %vm3161_vm1  ;;  %vm3170_vm6 = vweird.f32 %v3151_v25 }
 0xd64   : > { %v3156_v19 = vmul.f32 %v4804_v54, %v3155_v48 }
 0xd66   : > { %v3157_v56 = vmul.f32 0.5, %v3156_v19  ;;  %v6059_v57 = vpop.xlane.xlu0 %3215  ;;  %v3222_v29 = vpop.xlane.xlu2 %3221 }
 0xd67   : > { %v3142_v58 = vpop.xlane.xlu1 %3141  ;;  %v3248_v50 = vadd.f32 %v3240_v40, %v3222_v29 }
 0xd68   : > { %v3158_v60 = vsub.f32 1.5, %v3157_v56  ;;  %v3148_v33 = vmul.f32 %v3142_v58, %v5747_v16 }
 0xd6a   : > { %v3152_v8 = vadd.f32 1e-05, %v3148_v33  ;;  %v3159_v62 = vmul.f32 %v4804_v54, %v3158_v60 }
 0xd6c   : > { %4805 = vrsqrt.f32 %v3152_v8  ;;  %v3163_v2 = vsel %vm3162_vm8, %v4804_v54, %v3159_v62  ;;  %vm3180_vm10 = vweird.f32 %v3152_v8  ;;  %v3251_v54 = vadd.f32 %v3243_v53, %v6057_v49 }
 0xd6d   : > { %v6066_v6 = vmul.f32 %v3163_v2, %v5995_v7 }
 0xd6e   : > { %v3145_v10 = vpop.xlane.xlu0 %3144 }
 0xd6f   : > { %v3149_v13 = vmul.f32 %v3145_v10, %v5747_v16  ;;  %v3234_v14 = vpop.xlane.xlu1 %3233  ;;  %v3254_v63 = vsel %vm1084_vm3, %v6066_v6, 0.0 }
 0xd70   : > { %v3252_v17 = vadd.f32 %v3244_v5, %v3234_v14  ;;  %3255 = vadd.xlane.f32.xlu1 %v3254_v63  ;;  %v3239_v63 = vld [vmem:[%s6402_s18 + $0x8] sm:$0xff] }
 0xd71   : > { %v3153_v18 = vadd.f32 1e-05, %v3149_v13 }
 0xd72   : > { %v4806_v24 = vpop.eup %4805  ;;  %3354 = vperm.xlu0 %4435, %v3252_v17  }
 0xd73   : > { %v3175_v30 = vmul.f32 %v4806_v24, %v3152_v8  ;;  %4807 = vrsqrt.f32 %v3153_v18  ;;  %vm3181_vm9 = vweird.f32 %v4806_v24  ;;  %vm3190_vm13 = vweird.f32 %v3153_v18 }
 0xd74   : > { %4809 = vrsqrt.f32 %v3151_v25  ;;  %vm3182_vm11 = vmor %vm3180_vm10, %vm3181_vm9 }
 0xd75   : > { %v3176_v59 = vmul.f32 %v4806_v24, %v3175_v30 }
 0xd77   : > { %v3177_v7 = vmul.f32 0.5, %v3176_v59  ;;  %v3219_v48 = vpop.xlane.xlu1 %3218 }
 0xd79   : > { %v4808_v15 = vpop.eup %4807  ;;  %v3178_v12 = vsub.f32 1.5, %v3177_v7  ;;  %v3238_v7 = vld [vmem:[%s6402_s18] sm:$0xff] }
 0xd7a   : > { %v3185_v20 = vmul.f32 %v4808_v15, %v3153_v18  ;;  %v4810_v55 = vpop.eup %4809  ;;  %vm3191_vm12 = vweird.f32 %v4808_v15 }
 0xd7b   : > { %v3179_v32 = vmul.f32 %v4806_v24, %v3178_v12  ;;  %v3165_v41 = vmul.f32 %v4810_v55, %v3151_v25  ;;  %vm3192_vm4 = vmor %vm3190_vm13, %vm3191_vm12  ;;  %vm3171_vm5 = vweird.f32 %v4810_v55  ;;  %v3242_v12 = vld [vmem:[%s6402_s18 + $0x20] sm:$0xff] }
 0xd7c   : > { %v3186_v34 = vmul.f32 %v4808_v15, %v3185_v20  ;;  %vm3172_vm1 = vmor %vm3170_vm6, %vm3171_vm5 }
 0xd7d   : > { %v3183_v36 = vsel %vm3182_vm11, %v4806_v24, %v3179_v32  ;;  %v3166_v4 = vmul.f32 %v4810_v55, %v3165_v41  ;;  %v3247_v24 = vadd.f32 %v3239_v63, %v3219_v48 }
 0xd7e   : > { %v3187_v1 = vmul.f32 0.5, %v3186_v34  ;;  %v3196_v37 = vmul.f32 %v3183_v36, %v6022_v9 }
 0xd7f   : > { %v3167_v46 = vmul.f32 0.5, %v3166_v4 }
 0xd80   : > { %v3188_v39 = vsub.f32 1.5, %v3187_v1  ;;  %v3260_v27 = vsel %vm1084_vm3, %v3196_v37, 0.0 }
 0xd81   : > { %3261 = vadd.xlane.f32.xlu2 %v3260_v27  ;;  %v3168_v31 = vsub.f32 1.5, %v3167_v46 }
 0xd82   : > { %v3189_v42 = vmul.f32 %v4808_v15, %v3188_v39 }
 0xd83   : > { %v3169_v9 = vmul.f32 %v4810_v55, %v3168_v31 }
 0xd84   : > { %v3193_v3 = vsel %vm3192_vm4, %v4808_v15, %v3189_v42  ;;  %v3246_v15 = vadd.f32 %v3238_v7, %v6059_v57 }
 0xd85   : > { %v3197_v44 = vmul.f32 %v3193_v3, %v6041_v38  ;;  %v3173_v47 = vsel %vm3172_vm1, %v4810_v55, %v3169_v9 }
 0xd86   : > { %v3195_v28 = vmul.f32 %v3173_v47, %v6005_v22  ;;  %v3228_v22 = vpop.xlane.xlu2 %3227 }
 0xd87   : > { %v3263_v45 = vsel %vm1084_vm3, %v3197_v44, 0.0  ;;  %v3250_v20 = vadd.f32 %v3242_v12, %v3228_v22 }
 0xd88   : > { %3264 = vadd.xlane.f32.xlu1 %v3263_v45  ;;  %v3257_v38 = vsel %vm1084_vm3, %v3195_v28, 0.0 }
 0xd8e   : > { %v6096_v33 = vpop.permute.xlu2 %3359 }
 0xd99   : > { %3378 = vperm.xlu2 %4517, %v3248_v50  }
 0xd9c   : > { %3258 = vadd.xlane.f32.xlu0 %v3257_v38 }
 0xda1   : > { %3383 = vperm.xlu1 %4436, %v3249_v52  }
 0xdb0   : > { %3349 = vperm.xlu0 %4435, %v3251_v54  }
 0xde3   : > { %v3256_v19 = vpop.xlane.xlu1 %3255 }
 0xde4   : > { %v3266_v56 = vmul.f32 %v3256_v19, %v5747_v16  ;;  %v3355_v14 = vpop.permute.xlu0 %3354 }
 0xde6   : > { %v6091_v58 = vsub.f32 %v6066_v6, %v3266_v56 }
 0xde8   : > { %v3274_v60 = vmul.f32 %v6091_v58, %v6091_v58 }
 0xdea   : > { %v3278_v61 = vsel %vm1084_vm3, %v3274_v60, 0.0 }
 0xdeb   : > { %3279 = vadd.xlane.f32.xlu1 %v3278_v61 }
 0xdf4   : > { %v3262_v8 = vpop.xlane.xlu2 %3261 }
 0xdf5   : > { %v3268_v49 = vmul.f32 %v3262_v8, %v5747_v16 }
 0xdf7   : > { %v3272_v62 = vsub.f32 %v3196_v37, %v3268_v49 }
 0xdf9   : > { %v3276_v0 = vmul.f32 %v3272_v62, %v3272_v62 }
 0xdfb   : > { %v3265_v2 = vpop.xlane.xlu1 %3264  ;;  %v3284_v5 = vsel %vm1084_vm3, %v3276_v0, 0.0 }
 0xdfc   : > { %v3269_v10 = vmul.f32 %v3265_v2, %v5747_v16  ;;  %3285 = vadd.xlane.f32.xlu2 %v3284_v5  ;;  %v3379_v34 = vpop.permute.xlu2 %3378 }
 0xdfe   : > { %v6101_v6 = vsub.f32 %v3197_v44, %v3269_v10 }
 0xe00   : > { %v3277_v11 = vmul.f32 %v6101_v6, %v6101_v6 }
 0xe02   : > { %v3287_v13 = vsel %vm1084_vm3, %v3277_v11, 0.0 }
 0xe03   : > { %3288 = vadd.xlane.f32.xlu1 %v3287_v13 }
 0xe0f   : > { %v3259_v17 = vpop.xlane.xlu0 %3258 }
 0xe10   : > { %v3267_v18 = vmul.f32 %v3259_v17, %v5747_v16 }
 0xe12   : > { %v6110_v25 = vsub.f32 %v3195_v28, %v3267_v18 }
 0xe13   : > { %v3384_v32 = vpop.permute.xlu1 %3383 }
 0xe14   : > { %3373 = vperm.xlu2 %4517, %v3247_v24   ;;  %v3275_v30 = vmul.f32 %v6110_v25, %v6110_v25 }
 0xe16   : > { %v3281_v59 = vsel %vm1084_vm3, %v3275_v30, 0.0 }
 0xe17   : > { %3282 = vadd.xlane.f32.xlu0 %v3281_v59 }
 0xe1c   : > { %3368 = vperm.xlu1 %4436, %v3246_v15  }
 0xe22   : > { %v3350_v9 = vpop.permute.xlu0 %3349 }
 0xe2b   : > { %3344 = vperm.xlu0 %4435, %v3250_v20  }
 0xe5e   : > { %v3280_v55 = vpop.xlane.xlu1 %3279 }
 0xe5f   : > { %v3290_v41 = vmul.f32 %v3280_v55, %v5747_v16 }
 0xe61   : > { %v3294_v27 = vadd.f32 1e-05, %v3290_v41 }
 0xe63   : > { %vm3304_vm4 = vweird.f32 %v3294_v27 }
 0xe6f   : > { %v3286_v36 = vpop.xlane.xlu2 %3285 }
 0xe70   : > { %v3292_v1 = vmul.f32 %v3286_v36, %v5747_v16 }
 0xe72   : > { %v3296_v37 = vadd.f32 1e-05, %v3292_v1 }
 0xe74   : > { %4811 = vrsqrt.f32 %v3296_v37  ;;  %vm3324_vm8 = vweird.f32 %v3296_v37 }
 0xe76   : > { %v3289_v39 = vpop.xlane.xlu1 %3288 }
 0xe77   : > { %v3293_v57 = vmul.f32 %v3289_v39, %v5747_v16  ;;  %v3374_v36 = vpop.permute.xlu2 %3373 }
 0xe79   : > { %v3297_v42 = vadd.f32 1e-05, %v3293_v57 }
 0xe7a   : > { %v4812_v4 = vpop.eup %4811 }
 0xe7b   : > { %v3319_v3 = vmul.f32 %v4812_v4, %v3296_v37  ;;  %4813 = vrsqrt.f32 %v3297_v42  ;;  %vm3325_vm2 = vweird.f32 %v4812_v4  ;;  %vm3334_vm11 = vweird.f32 %v3297_v42 }
 0xe7c   : > { %4815 = vrsqrt.f32 %v3294_v27  ;;  %vm3326_vm9 = vmor %vm3324_vm8, %vm3325_vm2 }
 0xe7d   : > { %v3320_v44 = vmul.f32 %v4812_v4, %v3319_v3 }
 0xe7f   : > { %v3321_v45 = vmul.f32 0.5, %v3320_v44 }
 0xe81   : > { %v4814_v46 = vpop.eup %4813  ;;  %v3322_v31 = vsub.f32 1.5, %v3321_v45 }
 0xe82   : > { %v3329_v40 = vmul.f32 %v4814_v46, %v3297_v42  ;;  %v4816_v29 = vpop.eup %4815  ;;  %vm3335_vm10 = vweird.f32 %v4814_v46 }
 0xe83   : > { %v3323_v47 = vmul.f32 %v4812_v4, %v3322_v31  ;;  %v3299_v38 = vmul.f32 %v4816_v29, %v3294_v27  ;;  %vm3336_vm12 = vmor %vm3334_vm11, %vm3335_vm10  ;;  %vm3305_vm13 = vweird.f32 %v4816_v29 }
 0xe84   : > { %v3330_v50 = vmul.f32 %v4814_v46, %v3329_v40  ;;  %vm3306_vm5 = vmor %vm3304_vm4, %vm3305_vm13 }
 0xe85   : > { %v3327_v28 = vsel %vm3326_vm9, %v4812_v4, %v3323_v47  ;;  %v3300_v54 = vmul.f32 %v4816_v29, %v3299_v38 }
 0xe86   : > { %v3331_v51 = vmul.f32 0.5, %v3330_v50  ;;  %v3340_v52 = vmul.f32 %v3327_v28, %v3272_v62 }
 0xe87   : > { %v3301_v49 = vmul.f32 0.5, %v3300_v54 }
 0xe88   : > { %v3332_v53 = vsub.f32 1.5, %v3331_v51  ;;  %v3364_v19 = vmul.f32 %v3355_v14, %v3340_v52 }
 0xe89   : > { %v3302_v5 = vsub.f32 1.5, %v3301_v49 }
 0xe8a   : > { %v3333_v48 = vmul.f32 %v4814_v46, %v3332_v53  ;;  %v3283_v22 = vpop.xlane.xlu0 %3282  ;;  %v3388_v0 = vadd.f32 %v3379_v34, %v3364_v19 }
 0xe8b   : > { %v3291_v56 = vmul.f32 %v3283_v22, %v5747_v16  ;;  %v3303_v14 = vmul.f32 %v4816_v29, %v3302_v5 }
 0xe8c   : > { %v3337_v60 = vsel %vm3336_vm12, %v4814_v46, %v3333_v48  ;;  %v3392_v10 = vmax.f32 %v3388_v0, 0.0 }
 0xe8d   : > { %v3341_v61 = vmul.f32 %v3337_v60, %v6101_v6  ;;  %v3295_v8 = vadd.f32 1e-05, %v3291_v56  ;;  %v3307_v24 = vsel %vm3306_vm5, %v4816_v29, %v3303_v14 }
 0xe8e   : > { %v3338_v30 = vmul.f32 %v3307_v24, %v6091_v58  ;;  %v3417_v24 = vld [vmem:[%s6400_s16 + $0x18] sm:$0xff] }
 0xe8f   : > { %v3365_v2 = vmul.f32 %v6096_v33, %v3341_v61  ;;  %4817 = vrsqrt.f32 %v3295_v8  ;;  %vm3314_vm1 = vweird.f32 %v3295_v8 }
 0xe91   : > { %v3389_v62 = vadd.f32 %v3384_v32, %v3365_v2  ;;  %v3369_v32 = vpop.permute.xlu1 %3368 }
 0xe93   : > { %v3393_v11 = vmax.f32 %v3389_v62, 0.0 }
 0xe95   : > { %v4818_v13 = vpop.eup %4817  ;;  %v4693_v63 = vpack.i.bf16 %v3392_v10, %v3393_v11 }
 0xe96   : > { %v3309_v17 = vmul.f32 %v4818_v13, %v3295_v8  ;;  %vm3315_vm6 = vweird.f32 %v4818_v13 }
 0xe97   : > { %4694 = vrot.lane.b32.xlu1 %v4693_v63, %s6487_s9  ;;  %4684 = vrot.lane.b32.xlu0 %v4693_v63, %s6481_s0  ;;  %vm3316_vm2 = vmor %vm3314_vm1, %vm3315_vm6 }
 0xe98   : > { %v3310_v6 = vmul.f32 %v4818_v13, %v3309_v17 }
 0xe9a   : > { %v3311_v18 = vmul.f32 0.5, %v3310_v6 }
 0xe9c   : > { %v3312_v33 = vsub.f32 1.5, %v3311_v18 }
 0xe9d   : > { %v3345_v59 = vpop.permute.xlu0 %3344 }
 0xe9e   : > { %v3313_v7 = vmul.f32 %v4818_v13, %v3312_v33  ;;  %v3362_v15 = vmul.f32 %v3345_v59, %v3338_v30  ;;  %v3416_v33 = vld [vmem:[%s6400_s16 + $0x10] sm:$0xff]  ;;  %v3414_v30 = vld [vmem:[%s6400_s16] sm:$0xff]  ;;  %v3415_v59 = vld [vmem:[%s6400_s16 + $0x8] sm:$0xff] }
 0xe9f   : > { %4704 = vrot.lane.b32.xlu0 %v4693_v63, %s6483_s4 }
 0xea0   : > { %v3317_v12 = vsel %vm3316_vm2, %v4818_v13, %v3313_v7  ;;  %v3386_v55 = vadd.f32 %v3369_v32, %v3362_v15  ;;  %v3395_v32 = vld [vmem:[#allocation7 + $0x8] sm:$0xff] }
 0xea1   : > { %v3339_v20 = vmul.f32 %v3317_v12, %v6110_v25 }
 0xea2   : > { %v3390_v41 = vmax.f32 %v3386_v55, 0.0 }
 0xea3   : > { %v3363_v34 = vmul.f32 %v3350_v9, %v3339_v20  ;;  %v3394_v20 = vld [vmem:[#allocation7] sm:$0xff] }
 0xea5   : > { %v3387_v1 = vadd.f32 %v3374_v36, %v3363_v34 }
 0xea7   : > { %v3391_v37 = vmax.f32 %v3387_v1, 0.0  ;;  %v3396_v1 = vld [vmem:[#allocation7 + $0x10] sm:$0xff] }
 0xea9   : > { %v4708_v39 = vpack.i.bf16 %v3390_v41, %v3391_v37 }
 0xeab   : > { %4709 = vrot.lane.b32.xlu0 %v4708_v39, %s6487_s9  ;;  %4699 = vrot.lane.b32.xlu1 %v4708_v39, %s6482_s13 }
 0xeac   : > { %4679 = vrot.lane.b32.xlu2 %v4708_v39, %s6481_s0 }
 0xeb4   : > { %4689 = vrot.lane.b32.xlu2 %v4693_v63, %s6482_s13 }
 0xebc   : > { %4714 = vrot.lane.b32.xlu2 %v4708_v39, %s6483_s4  ;;  %s4110_s4 = scalar_lea.hbm %s6408_s24, %s4345_s6 }
 0xebd   : > { %s4114_s3 = sshll.u32 %s4110_s4, 4  ;;  %s4115_s3 = int_to_ptr.hbm [resolvable:$true] %s4114_s3 }
 0xf06   : > { %v4680_v58 = vpop.permute.xlu2 %4679 }
 0xf07   : > { %v4682_v48 = vunpack.i.h.bf16 %v4680_v58  ;;  %v4681_v22 = vunpack.i.l.bf16 %v4680_v58 }
 0xf09   : > { %v4685_v25 = vpop.permute.xlu0 %4684  ;;  %v4695_v42 = vpop.permute.xlu1 %4694  ;;  %v3470_v2 = vsel %vm1044_vm14, %v4682_v48, %v3390_v41  ;;  %v3471_v62 = vsel %vm1044_vm14, %v4681_v22, %v3391_v37  ;;  %v3400_v48 = vld [vmem:[#allocation7 + $0x30] sm:$0xff]  ;;  %v3403_v22 = vld [vmem:[#allocation7 + $0x48] sm:$0xff] }
 0xf0a   : > { %v4687_v57 = vunpack.i.h.bf16 %v4685_v25  ;;  %v4686_v27 = vunpack.i.l.bf16 %v4685_v25  ;;  %v4697_v31 = vunpack.i.h.bf16 %v4695_v42  ;;  %v4696_v9 = vunpack.i.l.bf16 %v4695_v42 }
 0xf0c   : > { %v3472_v45 = vsel %vm1044_vm14, %v4687_v57, %v3392_v10  ;;  %v3473_v46 = vsel %vm1044_vm14, %v4686_v27, %v3393_v11  ;;  %v3397_v57 = vld [vmem:[#allocation7 + $0x18] sm:$0xff] }
 0xf0e   : > { %v4690_v4 = vpop.permute.xlu2 %4689 }
 0xf0f   : > { %v4692_v3 = vunpack.i.h.bf16 %v4690_v4  ;;  %v4691_v44 = vunpack.i.l.bf16 %v4690_v4 }
 0xf11   : > { %v3476_v40 = vsel %vm1049_vm15, %v3472_v45, %v4692_v3  ;;  %v3477_v29 = vsel %vm1049_vm15, %v3473_v46, %v4691_v44  ;;  %v4705_v47 = vpop.permute.xlu0 %4704  ;;  %v3406_v3 = vld [vmem:[#allocation7 + $0x60] sm:$0xff] }
 0xf12   : > { %v4707_v50 = vunpack.i.h.bf16 %v4705_v47  ;;  %v4706_v28 = vunpack.i.l.bf16 %v4705_v47  ;;  %v3480_v38 = vsel %vm2803_vm7, %v3476_v40, %v4697_v31  ;;  %v3481_v51 = vsel %vm2803_vm7, %v3477_v29, %v4696_v9  ;;  %v3398_v31 = vld [vmem:[#allocation7 + $0x20] sm:$0xff]  ;;  %v3407_v47 = vld [vmem:[#allocation7 + $0x68] sm:$0xff] }
 0xf14   : > { %v3484_v52 = vsel %vm2808_vm0, %v3480_v38, %v4707_v50  ;;  %v3485_v53 = vsel %vm2808_vm0, %v3481_v51, %v4706_v28  ;;  %v3399_v28 = vld [vmem:[#allocation7 + $0x28] sm:$0xff]  ;;  %v3402_v38 = vld [vmem:[#allocation7 + $0x40] sm:$0xff] }
 0xf15   : > { %3567 = vmatpush.msra.mxu1 %v3485_v53  ;;  %v4733_v54 = vpack.i.bf16 %v3484_v52, %v3485_v53  ;;  %v3408_v53 = vld [vmem:[#allocation7 + $0x70] sm:$0xff] }
 0xf16   : > { %v4715_v19 = vpop.permute.xlu2 %4714 }
 0xf17   : > { %4734 = vrot.lane.b32.xlu2 %v4733_v54, %s6481_s0  ;;  %4719 = vrot.lane.b32.xlu1 %v4733_v54, %s6484_s7  ;;  %v4717_v5 = vunpack.i.h.bf16 %v4715_v19  ;;  %v4716_v10 = vunpack.i.l.bf16 %v4715_v19  ;;  %v3409_v19 = vld [vmem:[#allocation7 + $0x78] sm:$0xff] }
 0xf18   : > { %3568 = vmatpush.msra.mxu1 %v3484_v52 }
 0xf1d   : > { %v4710_v56 = vpop.permute.xlu0 %4709  ;;  %v4700_v60 = vpop.permute.xlu1 %4699 }
 0xf1e   : > { %v4712_v61 = vunpack.i.h.bf16 %v4710_v56  ;;  %v4711_v8 = vunpack.i.l.bf16 %v4710_v56  ;;  %v4702_v49 = vunpack.i.h.bf16 %v4700_v60  ;;  %v4701_v0 = vunpack.i.l.bf16 %v4700_v60  ;;  %v3401_v56 = vld [vmem:[#allocation7 + $0x38] sm:$0xff]  ;;  %v3404_v60 = vld [vmem:[#allocation7 + $0x50] sm:$0xff] }
 0xf1f   : > { %4744 = vrot.lane.b32.xlu1 %v4733_v54, %s6486_s5 }
 0xf20   : > { %v3474_v11 = vsel %vm1049_vm15, %v3470_v2, %v4702_v49  ;;  %v3475_v13 = vsel %vm1049_vm15, %v3471_v62, %v4701_v0  ;;  %v3411_v49 = vld [vmem:[#allocation7 + $0x88] sm:$0xff]  ;;  %v3412_v0 = vld [vmem:[#allocation7 + $0x90] sm:$0xff]  ;;  %v3413_v2 = vld [vmem:[#allocation7 + $0x98] sm:$0xff] }
 0xf21   : > { %v3478_v63 = vsel %vm2803_vm7, %v3474_v11, %v4712_v61  ;;  %v3479_v17 = vsel %vm2803_vm7, %v3475_v13, %v4711_v8  ;;  %v3405_v61 = vld [vmem:[#allocation7 + $0x58] sm:$0xff]  ;;  %v3410_v8 = vld [vmem:[#allocation7 + $0x80] sm:$0xff] }
 0xf22   : > { %v3482_v14 = vsel %vm2808_vm0, %v3478_v63, %v4717_v5  ;;  %v3483_v6 = vsel %vm2808_vm0, %v3479_v17, %v4716_v10  ;;  %v3870_v10 = vld [vmem:[%s6403_s19 + $0x18] sm:$0xff] }
 0xf23   : > { %3569 = vmatpush.msra.mxu1 %v3483_v6  ;;  %v4738_v18 = vpack.i.bf16 %v3482_v14, %v3483_v6  ;;  %v3878_v11 = vmul.f32 %v6037_v26, %v3870_v10 }
 0xf25   : > { %4739 = vrot.lane.b32.xlu2 %v4738_v18, %s6486_s5  ;;  %4724 = vrot.lane.b32.xlu0 %v4738_v18, %s6484_s7  ;;  %v3892_v13 = vsel %vm1084_vm3, %v3878_v11, 0.0  ;;  %s4100_s5 = scalar_lea.sflag [#allocation4], %s789_s21  ;;  %s4941_s7 = sshra.s32 %s4115_s3, 4  ;;  %s4942_s7 = int_to_ptr.hbm [resolvable:$true] %s4941_s7 }
 0xf26   : > { %3570 = vmatpush.msra.mxu1 %v3482_v14  ;;  %p4948_p3 = scmp.lt.s32.totalorder %s4942_s7, %s6408_s24 }
 0xf27   : > { %4749 = vrot.lane.b32.xlu1 %v4733_v54, %s6488_s15  ;;  %4327 = vmatmul.msk.f32.vlgmr.msra.gmra.mxu1 %vm1084_vm3, %v3394_v20 }
 0xf2d   : > { %3772 = vperm.xlu2 %4517, %v3417_v24   ;;  %4729 = vrot.lane.b32.xlu0 %v4738_v18, %s6481_s0  ;;  %s4943_s0 = scalar_lea.hbm %s4942_s7, 4 }
 0xf2e   : > { %p4944_p0 = scmp.ne.s32.totalorder %s4942_s7, %s4943_s0  ;;  %p4949_p4 = scmp.lt.s32.totalorder %s4947_s27, %s4943_s0 }
 0xf2f   : > { %3767 = vperm.xlu1 %4436, %v3416_v33   ;;  %4328 = vmatmul.msk.f32.gmra.mxu1 %vm1084_vm3, %v3395_v32 }
 0xf30   : > { %p4945_p1 = pnand %p4944_p0, %p5177_p5  ;;  %p4950_p7 = por %p4949_p4, %p4948_p3 }
 0xf32   : > { %p4946_p2 = pneg %p4945_p1 }
 0xf34   : > { %p4951_p8 = pnand %p4950_p7, %p4946_p2 }
 0xf35   : > { %3757 = vperm.xlu2 %4517, %v3414_v30   ;;  %4754 = vrot.lane.b32.xlu0 %v4738_v18, %s6488_s15 }
 0xf37   : > { %4329 = vmatmul.msk.f32.gmra.mxu1 %vm1084_vm3, %v3396_v1 }
 0xf3d   : > { %3762 = vperm.xlu0 %4435, %v3415_v59  }
 0xf3f   : > { %4330 = vmatmul.msk.f32.gmra.mxu1 %vm1084_vm3, %v3397_v57 }
 0xf67   : > { %3893 = vadd.xlane.f32.xlu0 %v3892_v13 }
 0xf71   : > { %v4735_v7 = vpop.permute.xlu2 %4734 }
 0xf72   : > { %v4736_v15 = vunpack.i.l.bf16 %v4735_v7  ;;  %v4737_v12 = vunpack.i.h.bf16 %v4735_v7 }
 0xf74   : > { %3620 = vmatpush.msrb.mxu2 %v4736_v15 }
 0xf76   : > { %3621 = vmatpush.msrb.mxu2 %v4737_v12 }
 0xf7f   : > { %v4740_v39 = vpop.permute.xlu2 %4739 }
 0xf80   : > { %v4741_v25 = vunpack.i.l.bf16 %v4740_v39  ;;  %v4742_v42 = vunpack.i.h.bf16 %v4740_v39 }
 0xf87   : > { %v3773_v18 = vpop.permute.xlu2 %3772 }
 0xf89   : > { %v4720_v34 = vpop.permute.xlu1 %4719 }
 0xf8a   : > { %v4721_v55 = vunpack.i.l.bf16 %v4720_v34  ;;  %v4722_v36 = vunpack.i.h.bf16 %v4720_v34 }
 0xf8c   : > { %3526 = vmatpush.msra.mxu0 %v4721_v55 }
 0xf8e   : > { %3527 = vmatpush.msra.mxu0 %v4722_v36 }
 0xf8f   : > { %v3758_v55 = vpop.permute.xlu2 %3757 }
 0xf91   : > { %v4745_v37 = vpop.permute.xlu1 %4744 }
 0xf92   : > { %v4746_v41 = vunpack.i.l.bf16 %v4745_v37  ;;  %v4747_v58 = vunpack.i.h.bf16 %v4745_v37 }
 0xf94   : > { %3677 = vmatpush.msrb.mxu3 %v4746_v41  ;;  %v3874_v41 = vld [vmem:[%s6403_s19 + $0x38] sm:$0xff] }
 0xf95   : > { %v3882_v57 = vmul.f32 %v6037_v26, %v3874_v41 }
 0xf96   : > { %3678 = vmatpush.msrb.mxu3 %v4747_v58 }
 0xf97   : > { %v4725_v27 = vpop.permute.xlu0 %4724 }
 0xf98   : > { %v4726_v4 = vunpack.i.l.bf16 %v4725_v27  ;;  %3679 = vmatpush.msrb.mxu3 %v4741_v25  ;;  %v4727_v45 = vunpack.i.h.bf16 %v4725_v27 }
 0xf99   : > { %v4750_v44 = vpop.permute.xlu1 %4749 }
 0xf9a   : > { %v4751_v46 = vunpack.i.l.bf16 %v4750_v44  ;;  %3528 = vmatpush.msra.mxu0 %v4726_v4  ;;  %3680 = vmatpush.msrb.mxu3 %v4742_v42  ;;  %v4752_v9 = vunpack.i.h.bf16 %v4750_v44 }
 0xf9b   : > { %4335 = vmatmul.msk.f32.vlgmr.msrb.gmra.mxu3 %vm1084_vm3, %v3406_v3 }
 0xf9c   : > { %3529 = vmatpush.msra.mxu0 %v4727_v45 }
 0xf9d   : > { %4323 = vmatmul.msk.f32.vlgmr.msra.gmra.mxu0 %vm1084_vm3, %v3398_v31  ;;  %v3904_v31 = vsel %vm1084_vm3, %v3882_v57, 0.0 }
 0xf9e   : > { %3734 = vmatpush.msrb.mxu0 %v4751_v46 }
 0xf9f   : > { %v4730_v40 = vpop.permute.xlu0 %4729 }
 0xfa0   : > { %v4731_v29 = vunpack.i.l.bf16 %v4730_v40  ;;  %3735 = vmatpush.msrb.mxu0 %v4752_v9  ;;  %v4732_v50 = vunpack.i.h.bf16 %v4730_v40 }
 0xfa2   : > { %3622 = vmatpush.msrb.mxu2 %v4731_v29 }
 0xfa3   : > { %4336 = vmatmul.msk.f32.gmra.mxu3 %vm1084_vm3, %v3407_v47 }
 0xfa4   : > { %3623 = vmatpush.msrb.mxu2 %v4732_v50  ;;  %v3572_v63 = vpop.f32.mrf.mxu1 }
 0xfa5   : > { %4324 = vmatmul.msk.f32.gmra.mxu0 %vm1084_vm3, %v3399_v28  ;;  %4331 = vmatmul.msk.f32.vlgmr.msrb.gmra.mxu2 %vm1084_vm3, %v3402_v38 }
 0xfa7   : > { %v4755_v51 = vpop.permute.xlu0 %4754 }
 0xfa8   : > { %v4756_v52 = vunpack.i.l.bf16 %v4755_v51  ;;  %v4757_v54 = vunpack.i.h.bf16 %v4755_v51  ;;  %v3768_v51 = vpop.permute.xlu1 %3767 }
 0xfaa   : > { %3736 = vmatpush.msrb.mxu0 %v4756_v52 }
 0xfab   : > { %4337 = vmatmul.msk.f32.gmra.mxu3 %vm1084_vm3, %v3408_v53 }
 0xfac   : > { %3737 = vmatpush.msrb.mxu0 %v4757_v54  ;;  %v3575_v30 = vpop.f32.mrf.mxu1 }
 0xfad   : > { %4325 = vmatmul.msk.f32.gmra.mxu0 %vm1084_vm3, %v3400_v48  ;;  %4332 = vmatmul.msk.f32.gmra.mxu2 %vm1084_vm3, %v3403_v22 }
 0xfaf   : > { %v3763_v3 = vpop.permute.xlu0 %3762 }
 0xfb3   : > { %4338 = vmatmul.msk.f32.gmra.mxu3 %vm1084_vm3, %v3409_v19 }
 0xfb4   : > { %v3578_v37 = vpop.f32.mrf.mxu1 }
 0xfb5   : > { %4326 = vmatmul.msk.f32.gmra.mxu0 %vm1084_vm3, %v3401_v56  ;;  %4333 = vmatmul.msk.f32.gmra.mxu2 %vm1084_vm3, %v3404_v60 }
 0xfbc   : > { %v3581_v40 = vpop.f32.mrf.mxu1 }
 0xfbd   : > { %4334 = vmatmul.msk.f32.gmra.mxu2 %vm1084_vm3, %v3405_v61  ;;  %4339 = vmatmul.msk.f32.vlgmr.msrb.gmra.mxu0 %vm1084_vm3, %v3410_v8 }
 0xfc5   : > { %4340 = vmatmul.msk.f32.gmra.mxu0 %vm1084_vm3, %v3411_v49 }
 0xfcd   : > { %4341 = vmatmul.msk.f32.gmra.mxu0 %vm1084_vm3, %v3412_v0 }
 0xfd5   : > { %4342 = vmatmul.msk.f32.gmra.mxu0 %vm1084_vm3, %v3413_v2 }
0x101a   : > { %v3531_v62 = vpop.f32.mrf.mxu0 }
0x101b   : > { %v3573_v33 = vadd.f32 %v3572_v63, %v3531_v62  ;;  %v6213_v62 = vpop.xlane.xlu0 %3893 }
0x101e   : > { %v3682_v6 = vpop.f32.mrf.mxu3 }
0x1022   : > { %v3534_v5 = vpop.f32.mrf.mxu0 }
0x1023   : > { %v3576_v32 = vadd.f32 %v3575_v30, %v3534_v5  ;;  %v3872_v5 = vld [vmem:[%s6403_s19 + $0x28] sm:$0xff]  ;;  %v3867_v30 = vld [vmem:[%s6403_s19] sm:$0xff] }
0x1024   : > { %v3880_v63 = vmul.f32 %v6037_v26, %v3872_v5 }
0x1026   : > { %v3685_v12 = vpop.f32.mrf.mxu3 }
0x1028   : > { %v3625_v14 = vpop.f32.mrf.mxu2 }
0x1029   : > { %v3637_v59 = vadd.f32 %v3625_v14, %v3573_v33 }
0x102a   : > { %v3537_v17 = vpop.f32.mrf.mxu0 }
0x102b   : > { %v3694_v15 = vadd.f32 %v3682_v6, %v3637_v59  ;;  %v3579_v42 = vadd.f32 %v3578_v37, %v3537_v17  ;;  %v3898_v6 = vsel %vm1084_vm3, %v3880_v63, 0.0 }
0x102e   : > { %v3688_v44 = vpop.f32.mrf.mxu3 }
0x1030   : > { %v3628_v7 = vpop.f32.mrf.mxu2 }
0x1031   : > { %v3638_v36 = vadd.f32 %v3628_v7, %v3576_v32 }
0x1032   : > { %v3540_v24 = vpop.f32.mrf.mxu0 }
0x1033   : > { %v3695_v25 = vadd.f32 %v3685_v12, %v3638_v36  ;;  %v3582_v28 = vadd.f32 %v3581_v40, %v3540_v24  ;;  %v3869_v24 = vld [vmem:[%s6403_s19 + $0x10] sm:$0xff]  ;;  %v3875_v12 = vmul.f32 %v6037_v26, %v3867_v30 }
0x1034   : > { %v3873_v36 = vld [vmem:[%s6403_s19 + $0x30] sm:$0xff] }
0x1036   : > { %v3691_v54 = vpop.f32.mrf.mxu3 }
0x1038   : > { %v3631_v58 = vpop.f32.mrf.mxu2 }
0x1039   : > { %v3639_v45 = vadd.f32 %v3631_v58, %v3579_v42  ;;  %v3881_v58 = vmul.f32 %v6037_v26, %v3873_v36 }
0x103a   : > { %v3739_v20 = vpop.f32.mrf.mxu0 }
0x103b   : > { %v3751_v34 = vadd.f32 %v3739_v20, %v3694_v15  ;;  %v3696_v29 = vadd.f32 %v3688_v44, %v3639_v45  ;;  %v3877_v15 = vmul.f32 %v6037_v26, %v3869_v24  ;;  %v3914_v44 = vld [vmem:[%s6404_s20 + $0x38] sm:$0xff] }
0x103d   : > { %v3775_v1 = vadd.f32 %v3758_v55, %v3751_v34  ;;  %v3889_v34 = vsel %vm1084_vm3, %v3877_v15, 0.0  ;;  %v3883_v55 = vsel %vm1084_vm3, %v3875_v12, 0.0 }
0x103f   : > { %v3779_v39 = vsel %vm1084_vm3, %v3775_v1, 0.0 }
0x1040   : > { %3780 = vadd.xlane.f32.xlu1 %v3779_v39  ;;  %v3634_v47 = vpop.f32.mrf.mxu2 }
0x1041   : > { %v3640_v52 = vadd.f32 %v3634_v47, %v3582_v28 }
0x1042   : > { %v3742_v27 = vpop.f32.mrf.mxu0 }
0x1043   : > { %v3752_v4 = vadd.f32 %v3742_v27, %v3695_v25  ;;  %v3697_v22 = vadd.f32 %v3691_v54, %v3640_v52  ;;  %v3901_v27 = vsel %vm1084_vm3, %v3881_v58, 0.0 }
0x1045   : > { %v3776_v46 = vadd.f32 %v3763_v3, %v3752_v4 }
0x1047   : > { %v3782_v9 = vsel %vm1084_vm3, %v3776_v46, 0.0 }
0x1048   : > { %3783 = vadd.xlane.f32.xlu2 %v3782_v9  ;;  %3905 = vadd.xlane.f32.xlu1 %v3904_v31 }
0x104a   : > { %v3745_v50 = vpop.f32.mrf.mxu0 }
0x104b   : > { %v3753_v38 = vadd.f32 %v3745_v50, %v3696_v29 }
0x104d   : > { %v3777_v53 = vadd.f32 %v3768_v51, %v3753_v38 }
0x104f   : > { %v3785_v48 = vsel %vm1084_vm3, %v3777_v53, 0.0 }
0x1050   : > { %3786 = vadd.xlane.f32.xlu0 %v3785_v48 }
0x1052   : > { %v3748_v19 = vpop.f32.mrf.mxu0 }
0x1053   : > { %v3754_v56 = vadd.f32 %v3748_v19, %v3697_v22 }
0x1055   : > { %v3778_v60 = vadd.f32 %v3773_v18, %v3754_v56 }
0x1057   : > { %v3788_v61 = vsel %vm1084_vm3, %v3778_v60, 0.0 }
0x1058   : > { %3789 = vadd.xlane.f32.xlu1 %v3788_v61 }
0x10b3   : > { %v3781_v8 = vpop.xlane.xlu1 %3780 }
0x10b4   : > { %v3791_v49 = vmul.f32 %v3781_v8, %v5747_v16 }
0x10b6   : > { %v6209_v0 = vsub.f32 %v3775_v1, %v3791_v49  ;;  %v3871_v1 = vld [vmem:[%s6403_s19 + $0x20] sm:$0xff] }
0x10b7   : > { %v3879_v25 = vmul.f32 %v6037_v26, %v3871_v1 }
0x10b8   : > { %v3799_v2 = vmul.f32 %v6209_v0, %v6209_v0 }
0x10b9   : > { %v3895_v42 = vsel %vm1084_vm3, %v3879_v25, 0.0 }
0x10ba   : > { %v3803_v10 = vsel %vm1084_vm3, %v3799_v2, 0.0 }
0x10bb   : > { %v3784_v11 = vpop.xlane.xlu2 %3783  ;;  %3804 = vadd.xlane.f32.xlu0 %v3803_v10  ;;  %v3906_v18 = vpop.xlane.xlu1 %3905 }
0x10bc   : > { %v3792_v13 = vmul.f32 %v3784_v11, %v5747_v16  ;;  %v3922_v45 = vadd.f32 %v3914_v44, %v3906_v18 }
0x10be   : > { %v6221_v17 = vsub.f32 %v3776_v46, %v3792_v13  ;;  %v3868_v46 = vld [vmem:[%s6403_s19 + $0x8] sm:$0xff] }
0x10bf   : > { %v3876_v31 = vmul.f32 %v6037_v26, %v3868_v46 }
0x10c0   : > { %v3800_v14 = vmul.f32 %v6221_v17, %v6221_v17 }
0x10c1   : > { %v3886_v9 = vsel %vm1084_vm3, %v3876_v31, 0.0 }
0x10c2   : > { %v3806_v33 = vsel %vm1084_vm3, %v3800_v14, 0.0 }
0x10c3   : > { %v3787_v59 = vpop.xlane.xlu0 %3786  ;;  %3807 = vadd.xlane.f32.xlu1 %v3806_v33  ;;  %3899 = vadd.xlane.f32.xlu0 %v3898_v6 }
0x10c4   : > { %v3793_v7 = vmul.f32 %v3787_v59, %v5747_v16 }
0x10c6   : > { %v6236_v20 = vsub.f32 %v3777_v53, %v3793_v7 }
0x10c8   : > { %v3801_v32 = vmul.f32 %v6236_v20, %v6236_v20 }
0x10ca   : > { %v3809_v37 = vsel %vm1084_vm3, %v3801_v32, 0.0 }
0x10cb   : > { %3810 = vadd.xlane.f32.xlu2 %v3809_v37  ;;  %3890 = vadd.xlane.f32.xlu1 %v3889_v34  ;;  %v3790_v41 = vpop.xlane.xlu1 %3789 }
0x10cc   : > { %3884 = vadd.xlane.f32.xlu0 %v3883_v55  ;;  %v3794_v39 = vmul.f32 %v3790_v41, %v5747_v16 }
0x10ce   : > { %v6252_v57 = vsub.f32 %v3778_v60, %v3794_v39  ;;  %v3913_v60 = vld [vmem:[%s6404_s20 + $0x30] sm:$0xff] }
0x10d0   : > { %v3802_v4 = vmul.f32 %v6252_v57, %v6252_v57 }
0x10d2   : > { %v3812_v3 = vsel %vm1084_vm3, %v3802_v4, 0.0 }
0x10d3   : > { %3902 = vadd.xlane.f32.xlu2 %v3901_v27  ;;  %3896 = vadd.xlane.f32.xlu1 %v3895_v42 }
0x10d4   : > { %3813 = vadd.xlane.f32.xlu0 %v3812_v3  ;;  %v3909_v3 = vld [vmem:[%s6404_s20 + $0x10] sm:$0xff] }
0x10db   : > { %3887 = vadd.xlane.f32.xlu2 %v3886_v9  ;;  %v3910_v9 = vld [vmem:[%s6404_s20 + $0x18] sm:$0xff] }
0x10ec   : > { %4028 = vperm.xlu1 %4436, %v3922_v45  }
0x112e   : > { %v3805_v40 = vpop.xlane.xlu0 %3804 }
0x112f   : > { %v3815_v29 = vmul.f32 %v3805_v40, %v5747_v16  ;;  %v3918_v40 = vadd.f32 %v3910_v9, %v6213_v62 }
0x1131   : > { %v3819_v47 = vadd.f32 1e-05, %v3815_v29  ;;  %v3912_v29 = vld [vmem:[%s6404_s20 + $0x28] sm:$0xff] }
0x1133   : > { %4819 = vrsqrt.f32 %v3819_v47  ;;  %vm3829_vm15 = vweird.f32 %v3819_v47 }
0x1136   : > { %v6268_v50 = vpop.xlane.xlu0 %3899  ;;  %v3808_v56 = vpop.xlane.xlu1 %3807 }
0x1137   : > { %v3816_v49 = vmul.f32 %v3808_v56, %v5747_v16 }
0x1139   : > { %v4820_v28 = vpop.eup %4819  ;;  %v3820_v14 = vadd.f32 1e-05, %v3816_v49 }
0x113a   : > { %v3824_v38 = vmul.f32 %v4820_v28, %v3819_v47  ;;  %vm3830_vm14 = vweird.f32 %v4820_v28  ;;  %v3920_v47 = vadd.f32 %v3912_v29, %v6268_v50 }
0x113b   : > { %vm3831_vm7 = vmor %vm3829_vm15, %vm3830_vm14  ;;  %vm3839_vm4 = vweird.f32 %v3820_v14 }
0x113c   : > { %v3825_v51 = vmul.f32 %v4820_v28, %v3824_v38 }
0x113e   : > { %v3826_v52 = vmul.f32 0.5, %v3825_v51  ;;  %v3811_v53 = vpop.xlane.xlu2 %3810  ;;  %v3891_v45 = vpop.xlane.xlu1 %3890 }
0x113f   : > { %v3817_v54 = vmul.f32 %v3811_v53, %v5747_v16  ;;  %v6271_v48 = vpop.xlane.xlu0 %3884  ;;  %v3917_v46 = vadd.f32 %v3909_v3, %v3891_v45 }
0x1140   : > { %v3827_v26 = vsub.f32 1.5, %v3826_v52 }
0x1141   : > { %v3821_v22 = vadd.f32 1e-05, %v3817_v54 }
0x1142   : > { %v3828_v19 = vmul.f32 %v4820_v28, %v3827_v26 }
0x1143   : > { %4821 = vrsqrt.f32 %v3821_v22  ;;  %vm3849_vm8 = vweird.f32 %v3821_v22 }
0x1144   : > { %v3832_v61 = vsel %vm3831_vm7, %v4820_v28, %v3828_v19 }
0x1145   : > { %v6277_v8 = vmul.f32 %v3832_v61, %v6209_v0 }
0x1146   : > { %v3903_v2 = vpop.xlane.xlu2 %3902 }
0x1147   : > { %v3921_v5 = vadd.f32 %v3913_v60, %v3903_v2  ;;  %v3814_v10 = vpop.xlane.xlu0 %3813  ;;  %v3923_v11 = vsel %vm1084_vm3, %v6277_v8, 0.0 }
0x1148   : > { %v3818_v13 = vmul.f32 %v3814_v10, %v5747_v16  ;;  %3924 = vadd.xlane.f32.xlu2 %v3923_v11  ;;  %v3907_v11 = vld [vmem:[%s6404_s20] sm:$0xff] }
0x1149   : > { %v4822_v63 = vpop.eup %4821  ;;  %4023 = vperm.xlu0 %4435, %v3921_v5  }
0x114a   : > { %v3844_v6 = vmul.f32 %v4822_v63, %v3821_v22  ;;  %v3822_v18 = vadd.f32 1e-05, %v3818_v13  ;;  %vm3850_vm0 = vweird.f32 %v4822_v63 }
0x114b   : > { %vm3851_vm9 = vmor %vm3849_vm8, %vm3850_vm0 }
0x114c   : > { %v3845_v24 = vmul.f32 %v4822_v63, %v3844_v6  ;;  %4823 = vrsqrt.f32 %v3822_v18  ;;  %vm3859_vm11 = vweird.f32 %v3822_v18 }
0x114d   : > { %4825 = vrsqrt.f32 %v3820_v14 }
0x114e   : > { %v3846_v0 = vmul.f32 0.5, %v3845_v24  ;;  %v3888_v28 = vpop.xlane.xlu2 %3887  ;;  %v3911_v24 = vld [vmem:[%s6404_s20 + $0x20] sm:$0xff] }
0x1150   : > { %v3847_v33 = vsub.f32 1.5, %v3846_v0 }
0x1152   : > { %v4824_v30 = vpop.eup %4823  ;;  %v3848_v59 = vmul.f32 %v4822_v63, %v3847_v33  ;;  %v4068_v33 = vld [vmem:[%s6407_s23] sm:$0xf] }
0x1153   : > { %v3854_v7 = vmul.f32 %v4824_v30, %v3822_v18  ;;  %v4826_v15 = vpop.eup %4825  ;;  %vm3860_vm10 = vweird.f32 %v4824_v30 }
0x1154   : > { %v3852_v12 = vsel %vm3851_vm9, %v4822_v63, %v3848_v59  ;;  %v3834_v55 = vmul.f32 %v4826_v15, %v3820_v14  ;;  %vm3861_vm12 = vmor %vm3859_vm11, %vm3860_vm10  ;;  %vm3840_vm13 = vweird.f32 %v4826_v15  ;;  %v3915_v14 = vadd.f32 %v3907_v11, %v6271_v48  ;;  %v3908_v48 = vld [vmem:[%s6404_s20 + $0x8] sm:$0xff] }
0x1155   : > { %v3855_v32 = vmul.f32 %v4824_v30, %v3854_v7  ;;  %v3865_v34 = vmul.f32 %v3852_v12, %v6236_v20  ;;  %vm3841_vm5 = vmor %vm3839_vm4, %vm3840_vm13  ;;  %vm4097_vm13 = vcmask 257024  }
0x1156   : > { %v3835_v41 = vmul.f32 %v4826_v15, %v3834_v55 }
0x1157   : > { %v3856_v36 = vmul.f32 0.5, %v3855_v32  ;;  %v3929_v1 = vsel %vm1084_vm3, %v3865_v34, 0.0 }
0x1158   : > { %3930 = vadd.xlane.f32.xlu1 %v3929_v1  ;;  %v3836_v27 = vmul.f32 0.5, %v3835_v41 }
0x1159   : > { %v3857_v37 = vsub.f32 1.5, %v3856_v36 }
0x115a   : > { %v3837_v4 = vsub.f32 1.5, %v3836_v27 }
0x115b   : > { %v3858_v39 = vmul.f32 %v4824_v30, %v3857_v37 }
0x115c   : > { %v3838_v20 = vmul.f32 %v4826_v15, %v3837_v4 }
0x115d   : > { %v3862_v58 = vsel %vm3861_vm12, %v4824_v30, %v3858_v39  ;;  %v3916_v30 = vadd.f32 %v3908_v48, %v3888_v28 }
0x115e   : > { %v3866_v25 = vmul.f32 %v3862_v58, %v6252_v57  ;;  %v3842_v44 = vsel %vm3841_vm5, %v4826_v15, %v3838_v20 }
0x115f   : > { %v3864_v31 = vmul.f32 %v3842_v44, %v6221_v17  ;;  %v3897_v17 = vpop.xlane.xlu1 %3896 }
0x1160   : > { %v3932_v42 = vsel %vm1084_vm3, %v3866_v25, 0.0  ;;  %v3919_v0 = vadd.f32 %v3911_v24, %v3897_v17 }
0x1161   : > { %3933 = vadd.xlane.f32.xlu2 %v3932_v42  ;;  %v3926_v57 = vsel %vm1084_vm3, %v3864_v31, 0.0 }
0x1167   : > { %v6307_v54 = vpop.permute.xlu1 %4028 }
0x1171   : > { %4047 = vperm.xlu1 %4436, %v3917_v46  }
0x1173   : > { %3927 = vadd.xlane.f32.xlu0 %v3926_v57 }
0x1179   : > { %4052 = vperm.xlu2 %4517, %v3918_v40  }
0x1187   : > { %4018 = vperm.xlu0 %4435, %v3920_v47  }
0x11bb   : > { %v3925_v38 = vpop.xlane.xlu2 %3924  ;;  %v4024_v5 = vpop.permute.xlu0 %4023 }
0x11bc   : > { %v3935_v51 = vmul.f32 %v3925_v38, %v5747_v16 }
0x11be   : > { %v6302_v52 = vsub.f32 %v6277_v8, %v3935_v51 }
0x11c0   : > { %v3943_v53 = vmul.f32 %v6302_v52, %v6302_v52 }
0x11c2   : > { %v3947_v62 = vsel %vm1084_vm3, %v3943_v53, 0.0 }
0x11c3   : > { %3948 = vadd.xlane.f32.xlu2 %v3947_v62 }
0x11cb   : > { %v3931_v26 = vpop.xlane.xlu1 %3930 }
0x11cc   : > { %v3937_v50 = vmul.f32 %v3931_v26, %v5747_v16 }
0x11ce   : > { %v3941_v22 = vsub.f32 %v3865_v34, %v3937_v50 }
0x11d0   : > { %v3945_v19 = vmul.f32 %v3941_v22, %v3941_v22 }
0x11d2   : > { %v3953_v56 = vsel %vm1084_vm3, %v3945_v19, 0.0 }
0x11d3   : > { %3954 = vadd.xlane.f32.xlu1 %v3953_v56 }
0x11d4   : > { %v3934_v60 = vpop.xlane.xlu2 %3933 }
0x11d5   : > { %v3938_v61 = vmul.f32 %v3934_v60, %v5747_v16 }
0x11d7   : > { %v6312_v8 = vsub.f32 %v3866_v25, %v3938_v61 }
0x11d9   : > { %v3946_v49 = vmul.f32 %v6312_v8, %v6312_v8 }
0x11db   : > { %v3956_v2 = vsel %vm1084_vm3, %v3946_v49, 0.0 }
0x11dc   : > { %3957 = vadd.xlane.f32.xlu2 %v3956_v2  ;;  %v4053_v7 = vpop.permute.xlu2 %4052 }
0x11e3   : > { %v4048_v59 = vpop.permute.xlu1 %4047 }
0x11e6   : > { %v3928_v10 = vpop.xlane.xlu0 %3927 }
0x11e7   : > { %v3936_v13 = vmul.f32 %v3928_v10, %v5747_v16 }
0x11e9   : > { %v6321_v63 = vsub.f32 %v3864_v31, %v3936_v13 }
0x11eb   : > { %v3944_v6 = vmul.f32 %v6321_v63, %v6321_v63 }
0x11ec   : > { %4037 = vperm.xlu1 %4436, %v3915_v14  }
0x11ed   : > { %v3950_v18 = vsel %vm1084_vm3, %v3944_v6, 0.0 }
0x11ee   : > { %3951 = vadd.xlane.f32.xlu0 %v3950_v18 }
0x11f4   : > { %4013 = vperm.xlu2 %4517, %v3919_v0  }
0x11f9   : > { %v4019_v4 = vpop.permute.xlu0 %4018 }
0x11fc   : > { %4071 = vperm.xlu2 %4517, %v4068_v33  }
0x1202   : > { %4042 = vperm.xlu0 %4435, %v3916_v30  }
0x1236   : > { %v3949_v12 = vpop.xlane.xlu2 %3948 }
0x1237   : > { %v3959_v55 = vmul.f32 %v3949_v12, %v5747_v16 }
0x1239   : > { %v3963_v41 = vadd.f32 1e-05, %v3959_v55 }
0x123b   : > { %vm3973_vm8 = vweird.f32 %v3963_v41 }
0x1246   : > { %v3955_v15 = vpop.xlane.xlu1 %3954 }
0x1247   : > { %v3961_v32 = vmul.f32 %v3955_v15, %v5747_v16 }
0x1249   : > { %v3965_v34 = vadd.f32 1e-05, %v3961_v32 }
0x124b   : > { %4827 = vrsqrt.f32 %v3965_v34  ;;  %vm3993_vm1 = vweird.f32 %v3965_v34 }
0x124f   : > { %v3958_v36 = vpop.xlane.xlu2 %3957 }
0x1250   : > { %v3962_v1 = vmul.f32 %v3958_v36, %v5747_v16 }
0x1251   : > { %v4828_v37 = vpop.eup %4827 }
0x1252   : > { %v3988_v39 = vmul.f32 %v4828_v37, %v3965_v34  ;;  %v3966_v58 = vadd.f32 1e-05, %v3962_v1  ;;  %vm3994_vm6 = vweird.f32 %v4828_v37 }
0x1253   : > { %vm3995_vm2 = vmor %vm3993_vm1, %vm3994_vm6 }
0x1254   : > { %v3989_v25 = vmul.f32 %v4828_v37, %v3988_v39  ;;  %4829 = vrsqrt.f32 %v3966_v58  ;;  %vm4003_vm15 = vweird.f32 %v3966_v58 }
0x1255   : > { %4831 = vrsqrt.f32 %v3963_v41 }
0x1256   : > { %v3990_v27 = vmul.f32 0.5, %v3989_v25 }
0x1257   : > { %v4014_v6 = vpop.permute.xlu2 %4013 }
0x1258   : > { %v3991_v42 = vsub.f32 1.5, %v3990_v27 }
0x125a   : > { %v4830_v20 = vpop.eup %4829  ;;  %v3992_v3 = vmul.f32 %v4828_v37, %v3991_v42 }
0x125b   : > { %v3998_v44 = vmul.f32 %v4830_v20, %v3966_v58  ;;  %v4832_v45 = vpop.eup %4831  ;;  %vm4004_vm14 = vweird.f32 %v4830_v20 }
0x125c   : > { %v3996_v46 = vsel %vm3995_vm2, %v4828_v37, %v3992_v3  ;;  %v3968_v57 = vmul.f32 %v4832_v45, %v3963_v41  ;;  %vm4005_vm7 = vmor %vm4003_vm15, %vm4004_vm14  ;;  %vm3974_vm0 = vweird.f32 %v4832_v45 }
0x125d   : > { %v3999_v31 = vmul.f32 %v4830_v20, %v3998_v44  ;;  %v4009_v40 = vmul.f32 %v3996_v46, %v3941_v22  ;;  %vm3975_vm9 = vmor %vm3973_vm8, %vm3974_vm0 }
0x125e   : > { %v3969_v17 = vmul.f32 %v4832_v45, %v3968_v57 }
0x125f   : > { %v4000_v9 = vmul.f32 0.5, %v3999_v31  ;;  %v4033_v53 = vmul.f32 %v4024_v5, %v4009_v40 }
0x1260   : > { %v3970_v50 = vmul.f32 0.5, %v3969_v17 }
0x1261   : > { %v4001_v29 = vsub.f32 1.5, %v4000_v9  ;;  %v3952_v47 = vpop.xlane.xlu0 %3951  ;;  %v4057_v56 = vadd.f32 %v4048_v59, %v4033_v53 }
0x1262   : > { %v3960_v28 = vmul.f32 %v3952_v47, %v5747_v16  ;;  %v3971_v60 = vsub.f32 1.5, %v3970_v50 }
0x1263   : > { %v4002_v38 = vmul.f32 %v4830_v20, %v4001_v29  ;;  %v4061_v2 = vmax.f32 %v4057_v56, 0.0 }
0x1264   : > { %v3964_v51 = vadd.f32 1e-05, %v3960_v28  ;;  %v3972_v11 = vmul.f32 %v4832_v45, %v3971_v60 }
0x1265   : > { %v4006_v62 = vsel %vm4005_vm7, %v4830_v20, %v4002_v38  ;;  %v4065_v5 = vadd.f32 %v4061_v2, %v5907_v43 }
0x1266   : > { %v4010_v26 = vmul.f32 %v4006_v62, %v6312_v8  ;;  %4833 = vrsqrt.f32 %v3964_v51  ;;  %vm3983_vm11 = vweird.f32 %v3964_v51 }
0x1268   : > { %v4034_v19 = vmul.f32 %v6307_v54, %v4010_v26  ;;  %v3976_v54 = vsel %vm3975_vm9, %v4832_v45, %v3972_v11 }
0x1269   : > { %v4007_v24 = vmul.f32 %v3976_v54, %v6302_v52  ;;  %v4067_v52 = vld [vmem:[%s6406_s22] sm:$0xf] }
0x126a   : > { %v4058_v22 = vadd.f32 %v4053_v7, %v4034_v19 }
0x126b   : > { %v4031_v33 = vmul.f32 %v4014_v6, %v4007_v24 }
0x126c   : > { %v4834_v61 = vpop.eup %4833  ;;  %v4062_v49 = vmax.f32 %v4058_v22, 0.0 }
0x126d   : > { %v3978_v16 = vmul.f32 %v4834_v61, %v3964_v51  ;;  %vm3984_vm10 = vweird.f32 %v4834_v61 }
0x126e   : > { %v4066_v10 = vadd.f32 %v4062_v49, %v5909_v21  ;;  %vm3985_vm12 = vmor %vm3983_vm11, %vm3984_vm10  ;;  %v4038_v21 = vpop.permute.xlu1 %4037 }
0x126f   : > { %v3979_v13 = vmul.f32 %v4834_v61, %v3978_v16  ;;  %v4055_v48 = vadd.f32 %v4038_v21, %v4031_v33 }
0x1270   : > { %4089 = vmatpush.msrb.mxu1 %v4066_v10 }
0x1271   : > { %v3980_v8 = vmul.f32 0.5, %v3979_v13  ;;  %v4059_v15 = vmax.f32 %v4055_v48, 0.0 }
0x1272   : > { %4090 = vmatpush.msrb.mxu1 %v4065_v5 }
0x1273   : > { %v3981_v14 = vsub.f32 1.5, %v3980_v8  ;;  %v4063_v34 = vadd.f32 %v4059_v15, %v5900_v23 }
0x1274   : > { %v4043_v59 = vpop.permute.xlu0 %4042 }
0x1275   : > { %v3982_v18 = vmul.f32 %v4834_v61, %v3981_v14 }
0x1277   : > { %v3986_v0 = vsel %vm3985_vm12, %v4834_v61, %v3982_v18 }
0x1278   : > { %v4008_v43 = vmul.f32 %v3986_v0, %v6321_v63 }
0x127a   : > { %v4032_v30 = vmul.f32 %v4019_v4, %v4008_v43 }
0x127c   : > { %v4056_v7 = vadd.f32 %v4043_v59, %v4032_v30 }
0x127e   : > { %v4060_v12 = vmax.f32 %v4056_v7, 0.0 }
0x1280   : > { %v4064_v32 = vadd.f32 %v4060_v12, %v5898_v35  ;;  %v4072_v35 = vpop.permute.xlu2 %4071 }
0x1282   : > { %4091 = vmatpush.msrb.mxu1 %v4064_v32 }
0x1284   : > { %4092 = vmatpush.msrb.mxu1 %v4063_v34 }
0x1285   : > { %4343 = vmatmul.msk.f32.vlgmr.msrb.gmra.mxu1 %vm1084_vm3, %v4067_v52 }
0x1302   : > { %v4094_v23 = vpop.f32.mrf.mxu1 }
0x1303   : > { %v4095_v63 = vadd.f32 %v4094_v23, %v4072_v35 }
0x1305   : > { %4098 = vst.msk [vmem:[%s791_s1] sm:$0xf] %vm4097_vm13, %v4095_v63 }
0x1306   : > { %4954 = shalt.err (!%p4951_p8)
}
0x1307   : > { %4365 = dma.vmem_to_hbm [thread:$0]  (%p5177_p5), %s4113_s8, 64, %s4115_s3, %s4100_s5  }
0x1308 PF: > { %s6490_s21 = sld [smem:[#allocation14_spill]] }
0x1309   : > { %s6491_s6 = sld [smem:[#allocation12_spill]] }
0x130e   : > { %p4387_p9 = scmp.ge.s32.totalorder %s6490_s21, 2 }
0x130f   : > { %s4126_s13 = sand.u32 1, %s6491_s6  }
0x1310   : > { %p4378_p10 = pnand %p4387_p9, %p5181_p6  ;;  %s4127_s4 = scalar_lea.sflag [#allocation4], %s4126_s13 }
0x1312   : > { %p4379_p11 = pneg %p4378_p10 }
0x1314   : > { %4980 = dma.done.wait (%p4379_p11), %s4127_s4, 64  }
0x1315   : > { %4982 = vsyncadd (%p4379_p11), %s4127_s4, 4294967232  ;;  %s6493_s21 = sld [smem:[#allocation15_spill]]  ;;  %s6496_s5 = smov %s4989_s26 }
0x1316   : > { %s6494_s1 = sld [smem:[#allocation13_spill]] }
0x1317   : > { %s6495_s27 = sld [smem:[#allocation16_spill]] }
0x131b   : > { %p36_p12 = scmp.ge.s32.totalorder %s6493_s21, 4  }
0x131c   : > { %s6497_s26 = smov %s6494_s1 }
0x131d   : > { %6498 = sst [smem:[#allocation12_spill]] %s6495_s27  ;;  %38 = sbr.rel (!%p36_p12) target bundleno = 19 (0x13), region = 167 }
0x1322   :  { %4133 = vsyncpa [#allocation3], 1 }
0x1323   :  { %4135 = vsyncpa [#allocation3 + $0x1], 1 }
0x1324   :  { %4136 = vsyncpa [#allocation6], 1 }
0x1325   :  { %4137 = vsyncpa [#allocation4], 1 }
0x1326   :  { %4139 = vsyncpa [#allocation4 + $0x1], 1 }

</bundles_post_ra>
